<compile_context>
chip_gen: v6e
topology: v6e:2x2x1
jax: 0.10.0
libtpu: 0.0.40
codegen_flags: <defaults>
</compile_context>

<pallas_src>
import jax
import jax.numpy as jnp
from jax import lax
from jax.experimental import pallas as pl
from jax.experimental.pallas import tpu as pltpu


# ----------------------------- Pallas kernel -------------------------------

def _make_lstm_kernel(num_layers: int, seq_len: int, hidden: int):
    H = hidden
    G = 4 * H            # fused gate width [i | f | o | g]
    SIG = 3 * H          # sigmoid gates are the first 3H lanes
    L = seq_len
    f32 = jnp.float32
    bf16 = jnp.bfloat16

    def kernel(*refs):
        idx = 0
        xseq_ref = refs[idx]; idx += 1
        layer_refs = refs[idx:idx + 3 * num_layers]; idx += 3 * num_layers
        fc1_w_ref, fc1_b_ref, fc2_w_ref, fc2_b_ref = refs[idx:idx + 4]; idx += 4
        out_ref = refs[idx]; idx += 1
        xg_ref = refs[idx]; idx += 1                       # (L, B, 4H) f32 scratch

        B = out_ref.shape[0]

        # --- layer-0 input projection (input_size == 1): one broadcast over
        # all timesteps, no matmul needed.
        wih0 = layer_refs[0][...]            # (1, G) f32
        b0 = layer_refs[2][...]              # (1, G) f32 (b_ih + b_hh)
        xg_ref[...] = (xseq_ref[...] * wih0.reshape(1, 1, G)
                       + b0.reshape(1, 1, G))

        h_last = jnp.zeros((B, H), bf16)
        for k in range(num_layers):
            whh = layer_refs[3 * k + 1][...]          # (H, 4H) bf16
            has_next = (k + 1 < num_layers)
            if has_next:
                wih_next = layer_refs[3 * (k + 1)][...]        # (H, 4H) bf16
                b_next = layer_refs[3 * (k + 1) + 2][...]      # (1, 4H) f32
            else:
                wih_next = None
                b_next = None

            def step(t, carry, whh=whh, wih_next=wih_next, b_next=b_next,
                     has_next=has_next):
                h_bf, c = carry
                # one fused (B,H)@(H,4H) bf16 recurrent matmul per step
                gates = xg_ref[t] + jnp.dot(h_bf, whh,
                                            preferred_element_type=f32)
                sig = jax.nn.sigmoid(gates[:, :SIG])   # one EUP pass: i|f|o
                i_g = sig[:, :H]
                f_g = sig[:, H:2 * H]
                o_g = sig[:, 2 * H:SIG]
                g_g = jnp.tanh(gates[:, SIG:])
                c_new = f_g * c + i_g * g_g
                h_new = (o_g * jnp.tanh(c_new)).astype(bf16)
                if has_next:
                    # fused next-layer input projection: independent of the
                    # next recurrence step, hides under the serial h-chain;
                    # lane-dense (B, 4H) store.
                    xg_ref[t] = (jnp.dot(h_new, wih_next,
                                         preferred_element_type=f32) + b_next)
                return (h_new, c_new)

            h_last, _ = lax.fori_loop(
                0, L, step,
                (jnp.zeros((B, H), bf16), jnp.zeros((B, H), f32)),
                unroll=True)

        # ---- head: fc1 + ReLU, dropout(identity), fc2 + ReLU, LogSoftmax ----
        h32 = h_last.astype(f32)
        z1 = (jnp.dot(h32, fc1_w_ref[...], preferred_element_type=f32)
              + fc1_b_ref[...])
        a1 = jnp.maximum(z1, 0.0)
        # TODO(synk): nn.Dropout(0.2) is identity at inference; training-mode RNG dropout not implemented.
        z2 = (jnp.dot(a1, fc2_w_ref[...], preferred_element_type=f32)
              + fc2_b_ref[...])
        a2 = jnp.maximum(z2, 0.0)

        m = jnp.max(a2, axis=1, keepdims=True)
        lse = jnp.log(jnp.sum(jnp.exp(a2 - m), axis=1, keepdims=True)) + m
        out_ref[...] = a2 - lse

    return kernel


# ----------------------------- JAX glue / wrapper ---------------------------

def _pack_lstm_layer(w_ih, w_hh, b_ih, b_hh, H):
    """torch LSTM layer params -> kernel layout.

    torch packs gates row-wise as [i, f, g, o]; the kernel wants [i, f, o, g]
    (sigmoid gates contiguous, tanh gate last), weights transposed so the
    kernel computes (B, in) @ (in, 4H), biases pre-summed, and the recurrent
    weight in bf16 (single MXU pass; accumulation stays f32 in-kernel).
    """
    order = (0, 1, 3, 2)

    def reorder(a):
        return jnp.concatenate([a[g * H:(g + 1) * H] for g in order], axis=0)

    wih = jnp.transpose(reorder(w_ih)).astype(jnp.float32)    # (in, 4H)
    whh = jnp.transpose(reorder(w_hh)).astype(jnp.bfloat16)   # (H, 4H)
    b = (reorder(b_ih) + reorder(b_hh)).reshape(1, 4 * H).astype(jnp.float32)
    return wih, whh, b


def nlayer_lstm_forward(x, params, hidden_size, num_layers, batch_block=128):
    B, L = x.shape
    H = hidden_size
    G = 4 * H
    x = x.astype(jnp.float32)

    # Pad batch to a sublane-dense multiple of 8, then to a multiple of the
    # per-grid-step batch block so the ("parallel",) batch grid covers it.
    B8 = max(8, ((B + 7) // 8) * 8)
    B_blk = min(B8, batch_block)
    B_pad = ((B8 + B_blk - 1) // B_blk) * B_blk
    if B_pad != B:
        x = jnp.pad(x, ((0, B_pad - B), (0, 0)))

    xseq = jnp.transpose(x)[:, :, None]            # (L, B_pad, 1), time-major

    args = [xseq]
    for k in range(num_layers):
        wih, whh, b = _pack_lstm_layer(params[f'w_ih_l{k}'], params[f'w_hh_l{k}'],
                                       params[f'b_ih_l{k}'], params[f'b_hh_l{k}'], H)
        if k > 0:
            wih = wih.astype(jnp.bfloat16)   # used as a matmul operand in-kernel
        args += [wih, whh, b]

    fc1_w = params['fc1_w'].T.astype(jnp.float32)          # (H, H)
    fc1_b = params['fc1_b'].reshape(1, H).astype(jnp.float32)
    fc2_w = params['fc2_w'].T.astype(jnp.float32)          # (H, n_labels)
    fc2_b = params['fc2_b'].reshape(1, -1).astype(jnp.float32)
    n_labels = fc2_w.shape[1]
    args += [fc1_w, fc1_b, fc2_w, fc2_b]

    # Batch blocks ride a "parallel" grid axis (sharded across TCs on v7x);
    # all weights use constant index maps (full-array blocks, VMEM-resident).
    in_specs = [pl.BlockSpec((L, B_blk, 1), lambda i: (0, i, 0))]
    in_specs += [pl.BlockSpec(a.shape, lambda i: (0, 0)) for a in args[1:]]

    out = pl.pallas_call(
        _make_lstm_kernel(num_layers, L, H),
        out_shape=jax.ShapeDtypeStruct((B_pad, n_labels), jnp.float32),
        grid_spec=pltpu.PrefetchScalarGridSpec(
            num_scalar_prefetch=0,
            grid=(B_pad // B_blk,),
            in_specs=in_specs,
            out_specs=pl.BlockSpec((B_blk, n_labels), lambda i: (i, 0)),
            scratch_shapes=[pltpu.VMEM((L, B_blk, G), jnp.float32)]),
        compiler_params=pltpu.CompilerParams(
            dimension_semantics=("parallel",)),
    )(*args)
    return out[:B]


# ----------------------------- plain-JAX reference --------------------------

def _lstm_cell_ref(x, h, c, w_ih, w_hh, b_ih, b_hh, H):
    g = x @ w_ih.T + b_ih + h @ w_hh.T + b_hh        # torch gate order [i,f,g,o]
    i = jax.nn.sigmoid(g[:, :H])
    f = jax.nn.sigmoid(g[:, H:2 * H])
    gg = jnp.tanh(g[:, 2 * H:3 * H])
    o = jax.nn.sigmoid(g[:, 3 * H:])
    c_new = f * c + i * gg
    h_new = o * jnp.tanh(c_new)
    return h_new, c_new


def reference_forward(x, params, H, num_layers):
    B, L = x.shape
    x = x.astype(jnp.float32)
    layer_in = x[:, :, None]                          # (B, L, 1)
    for k in range(num_layers):
        w_ih, w_hh = params[f'w_ih_l{k}'], params[f'w_hh_l{k}']
        b_ih, b_hh = params[f'b_ih_l{k}'], params[f'b_hh_l{k}']

        def step(carry, x_t):
            h, c = carry
            h, c = _lstm_cell_ref(x_t, h, c, w_ih, w_hh, b_ih, b_hh, H)
            return (h, c), h

        init = (jnp.zeros((B, H), jnp.float32), jnp.zeros((B, H), jnp.float32))
        _, hs = lax.scan(step, init, jnp.swapaxes(layer_in, 0, 1))
        layer_in = jnp.swapaxes(hs, 0, 1)             # (B, L, H)

    h_last = layer_in[:, -1, :]
    a1 = jnp.maximum(h_last @ params['fc1_w'].T + params['fc1_b'], 0.0)
    a2 = jnp.maximum(a1 @ params['fc2_w'].T + params['fc2_b'], 0.0)
    return jax.nn.log_softmax(a2, axis=1)


# ----------------------------- params & main --------------------------------

def init_params(key, H, n_labels, num_layers):
    keys = jax.random.split(key, 4 * num_layers + 4)

    def u(k, shape, fan_in):
        bound = 1.0 / (fan_in ** 0.5)
        return jax.random.uniform(k, shape, jnp.float32, -bound, bound)

    p = {}
    idx = 0
    for k_ in range(num_layers):
        in_size = 1 if k_ == 0 else H
        p[f'w_ih_l{k_}'] = u(keys[idx], (4 * H, in_size), H); idx += 1
        p[f'w_hh_l{k_}'] = u(keys[idx], (4 * H, H), H); idx += 1
        p[f'b_ih_l{k_}'] = u(keys[idx], (4 * H,), H); idx += 1
        p[f'b_hh_l{k_}'] = u(keys[idx], (4 * H,), H); idx += 1
    p['fc1_w'] = u(keys[idx], (H, H), H); idx += 1
    p['fc1_b'] = u(keys[idx], (H,), H); idx += 1
    p['fc2_w'] = u(keys[idx], (n_labels, H), H); idx += 1
    p['fc2_b'] = u(keys[idx], (n_labels,), H); idx += 1
    return p


if __name__ == "__main__":
    B, L, H, N_LABELS, NUM_LAYERS = 4, 16, 32, 6, 2   # batch, seq, hidden, labels, layers

    key = jax.random.PRNGKey(0)
    kx, kp = jax.random.split(key)
    x = jax.random.normal(kx, (B, L), jnp.float32)
    params = init_params(kp, H, N_LABELS, NUM_LAYERS)

    out = jax.block_until_ready(nlayer_lstm_forward(x, params, H, NUM_LAYERS))
    ref = jax.block_until_ready(reference_forward(x, params, H, NUM_LAYERS))

    assert out.shape == (B, N_LABELS)
    # bf16 matmul operands (f32 accumulation) -> compare with a bf16-sized budget.
    if not bool(jnp.allclose(out, ref, atol=2e-2, rtol=2e-2)):
        raise AssertionError(
            f"Pallas kernel mismatch vs reference, max abs err = "
            f"{float(jnp.max(jnp.abs(out - ref)))}")
    print("KERNEL_OK")
</pallas_src>

<mosaic_0001>
module attributes {stable_mosaic.version = 11 : i64} {
  func.func @kernel(%arg0: i32, %arg1: memref<16x8x1xf32, #tpu.memory_space<vmem>>, %arg2: memref<1x128xf32, #tpu.memory_space<vmem>>, %arg3: memref<32x128xbf16, #tpu.memory_space<vmem>>, %arg4: memref<1x128xf32, #tpu.memory_space<vmem>>, %arg5: memref<32x128xbf16, #tpu.memory_space<vmem>>, %arg6: memref<32x128xbf16, #tpu.memory_space<vmem>>, %arg7: memref<1x128xf32, #tpu.memory_space<vmem>>, %arg8: memref<32x32xf32, #tpu.memory_space<vmem>>, %arg9: memref<1x32xf32, #tpu.memory_space<vmem>>, %arg10: memref<32x6xf32, #tpu.memory_space<vmem>>, %arg11: memref<1x6xf32, #tpu.memory_space<vmem>>, %arg12: memref<8x6xf32, #tpu.memory_space<vmem>>, %arg13: memref<16x8x128xf32, #tpu.memory_space<vmem>>) attributes {dimension_semantics = [#tpu.dimension_semantics<parallel>], iteration_bounds = array<i64: 1>, scalar_prefetch = 0 : i64, scratch_operands = 1 : i64, tpu.core_type = #tpu.core_type<tc>, window_params = [{transform_indices = @transform_0, window_bounds = array<i64: 16, 8, 1>}, {pipeline_mode = #tpu.pipeline_mode<synchronous>, transform_indices = @transform_1, window_bounds = array<i64: 1, 128>}, {pipeline_mode = #tpu.pipeline_mode<synchronous>, transform_indices = @transform_2, window_bounds = array<i64: 32, 128>}, {pipeline_mode = #tpu.pipeline_mode<synchronous>, transform_indices = @transform_3, window_bounds = array<i64: 1, 128>}, {pipeline_mode = #tpu.pipeline_mode<synchronous>, transform_indices = @transform_4, window_bounds = array<i64: 32, 128>}, {pipeline_mode = #tpu.pipeline_mode<synchronous>, transform_indices = @transform_5, window_bounds = array<i64: 32, 128>}, {pipeline_mode = #tpu.pipeline_mode<synchronous>, transform_indices = @transform_6, window_bounds = array<i64: 1, 128>}, {pipeline_mode = #tpu.pipeline_mode<synchronous>, transform_indices = @transform_7, window_bounds = array<i64: 32, 32>}, {pipeline_mode = #tpu.pipeline_mode<synchronous>, transform_indices = @transform_8, window_bounds = array<i64: 1, 32>}, {pipeline_mode = #tpu.pipeline_mode<synchronous>, transform_indices = @transform_9, window_bounds = array<i64: 32, 6>}, {pipeline_mode = #tpu.pipeline_mode<synchronous>, transform_indices = @transform_10, window_bounds = array<i64: 1, 6>}, {transform_indices = @transform_11, window_bounds = array<i64: 8, 6>}]} {
    %c0 = arith.constant 0 : index
    %c0_0 = arith.constant 0 : index
    %0 = vector.load %arg2[%c0, %c0_0] : memref<1x128xf32, #tpu.memory_space<vmem>>, vector<1x128xf32>
    %c0_1 = arith.constant 0 : index
    %c0_2 = arith.constant 0 : index
    %1 = vector.load %arg4[%c0_1, %c0_2] : memref<1x128xf32, #tpu.memory_space<vmem>>, vector<1x128xf32>
    %c0_3 = arith.constant 0 : index
    %c0_4 = arith.constant 0 : index
    %c0_5 = arith.constant 0 : index
    %2 = vector.load %arg1[%c0_3, %c0_4, %c0_5] : memref<16x8x1xf32, #tpu.memory_space<vmem>>, vector<16x8x1xf32>
    %3 = vector.shape_cast %0 : vector<1x128xf32> to vector<1x1x128xf32>
    %4 = vector.broadcast %2 : vector<16x8x1xf32> to vector<16x8x128xf32>
    %5 = vector.broadcast %3 : vector<1x1x128xf32> to vector<16x8x128xf32>
    %6 = arith.mulf %4, %5 : vector<16x8x128xf32>
    %7 = vector.shape_cast %1 : vector<1x128xf32> to vector<1x1x128xf32>
    %8 = vector.broadcast %7 : vector<1x1x128xf32> to vector<16x8x128xf32>
    %9 = arith.addf %6, %8 : vector<16x8x128xf32>
    %c0_6 = arith.constant 0 : index
    %c0_7 = arith.constant 0 : index
    %c0_8 = arith.constant 0 : index
    %10 = vector.load %arg13[%c0_6, %c0_7, %c0_8] : memref<16x8x128xf32, #tpu.memory_space<vmem>>, vector<16x8x128xf32>
    tpu.vector_store %arg13[%c0_6, %c0_7, %c0_8], %9 {strides = array<i32>} : memref<16x8x128xf32, #tpu.memory_space<vmem>>, vector<16x8x128xf32>,
    %c0_9 = arith.constant 0 : index
    %c0_10 = arith.constant 0 : index
    %11 = vector.load %arg3[%c0_9, %c0_10] : memref<32x128xbf16, #tpu.memory_space<vmem>>, vector<32x128xbf16>
    %c0_11 = arith.constant 0 : index
    %c0_12 = arith.constant 0 : index
    %12 = vector.load %arg5[%c0_11, %c0_12] : memref<32x128xbf16, #tpu.memory_space<vmem>>, vector<32x128xbf16>
    %c0_13 = arith.constant 0 : index
    %c0_14 = arith.constant 0 : index
    %13 = vector.load %arg7[%c0_13, %c0_14] : memref<1x128xf32, #tpu.memory_space<vmem>>, vector<1x128xf32>
    %cst = arith.constant 0.000000e+00 : bf16
    %14 = vector.broadcast %cst : bf16 to vector<8x32xbf16>
    %cst_15 = arith.constant 0.000000e+00 : f32
    %15 = vector.broadcast %cst_15 : f32 to vector<8x32xf32>
    %c0_i32 = arith.constant 0 : i32
    %16 = arith.index_cast %c0_i32 : i32 to index
    %c0_16 = arith.constant 0 : index
    %c0_17 = arith.constant 0 : index
    %17 = vector.load %arg13[%16, %c0_16, %c0_17] : memref<16x8x128xf32, #tpu.memory_space<vmem>>, vector<1x8x128xf32>
    %18 = vector.shape_cast %17 : vector<1x8x128xf32> to vector<8x128xf32>
    %cst_18 = arith.constant dense<0.000000e+00> : vector<8x128xf32>
    %19 = tpu.matmul %14, %11, %cst_18 {dimension_numbers = #tpu.dot_dimension_numbers<[1], [0], [0], [1], [0, 0, 1, 1], [], []>} : vector<8x32xbf16>, vector<32x128xbf16>, vector<8x128xf32> -> vector<8x128xf32>
    %20 = arith.addf %18, %19 : vector<8x128xf32>
    %21 = vector.extract_strided_slice %20 {offsets = [0, 0], sizes = [8, 96], strides = [1, 1]} : vector<8x128xf32> to vector<8x96xf32>
    %22 = arith.negf %21 : vector<8x96xf32>
    %23 = math.exp %22 : vector<8x96xf32>
    %cst_19 = arith.constant 1.000000e+00 : f32
    %24 = vector.broadcast %cst_19 : f32 to vector<8x96xf32>
    %25 = arith.addf %24, %23 : vector<8x96xf32>
    %26 = arith.divf %24, %25 : vector<8x96xf32>
    %27 = vector.extract_strided_slice %26 {offsets = [0, 0], sizes = [8, 32], strides = [1, 1]} : vector<8x96xf32> to vector<8x32xf32>
    %28 = vector.extract_strided_slice %26 {offsets = [0, 32], sizes = [8, 32], strides = [1, 1]} : vector<8x96xf32> to vector<8x32xf32>
    %29 = vector.extract_strided_slice %26 {offsets = [0, 64], sizes = [8, 32], strides = [1, 1]} : vector<8x96xf32> to vector<8x32xf32>
    %30 = vector.extract_strided_slice %20 {offsets = [0, 96], sizes = [8, 32], strides = [1, 1]} : vector<8x128xf32> to vector<8x32xf32>
    %31 = math.tanh %30 : vector<8x32xf32>
    %32 = arith.mulf %28, %15 : vector<8x32xf32>
    %33 = arith.mulf %27, %31 : vector<8x32xf32>
    %34 = arith.addf %32, %33 : vector<8x32xf32>
    %35 = math.tanh %34 : vector<8x32xf32>
    %36 = arith.mulf %29, %35 : vector<8x32xf32>
    %37 = arith.truncf %36 : vector<8x32xf32> to vector<8x32xbf16>
    %cst_20 = arith.constant dense<0.000000e+00> : vector<8x128xf32>
    %38 = tpu.matmul %37, %12, %cst_20 {dimension_numbers = #tpu.dot_dimension_numbers<[1], [0], [0], [1], [0, 0, 1, 1], [], []>} : vector<8x32xbf16>, vector<32x128xbf16>, vector<8x128xf32> -> vector<8x128xf32>
    %39 = vector.broadcast %13 : vector<1x128xf32> to vector<8x128xf32>
    %40 = arith.addf %38, %39 : vector<8x128xf32>
    %41 = arith.index_cast %c0_i32 : i32 to index
    %c0_21 = arith.constant 0 : index
    %c0_22 = arith.constant 0 : index
    %42 = vector.load %arg13[%41, %c0_21, %c0_22] : memref<16x8x128xf32, #tpu.memory_space<vmem>>, vector<1x8x128xf32>
    %43 = vector.shape_cast %42 : vector<1x8x128xf32> to vector<8x128xf32>
    %44 = vector.shape_cast %40 : vector<8x128xf32> to vector<1x8x128xf32>
    tpu.vector_store %arg13[%41, %c0_21, %c0_22], %44 {strides = array<i32>} : memref<16x8x128xf32, #tpu.memory_space<vmem>>, vector<1x8x128xf32>,
    %c1_i32 = arith.constant 1 : i32
    %45 = arith.index_cast %c1_i32 : i32 to index
    %c0_23 = arith.constant 0 : index
    %c0_24 = arith.constant 0 : index
    %46 = vector.load %arg13[%45, %c0_23, %c0_24] : memref<16x8x128xf32, #tpu.memory_space<vmem>>, vector<1x8x128xf32>
    %47 = vector.shape_cast %46 : vector<1x8x128xf32> to vector<8x128xf32>
    %cst_25 = arith.constant dense<0.000000e+00> : vector<8x128xf32>
    %48 = tpu.matmul %37, %11, %cst_25 {dimension_numbers = #tpu.dot_dimension_numbers<[1], [0], [0], [1], [0, 0, 1, 1], [], []>} : vector<8x32xbf16>, vector<32x128xbf16>, vector<8x128xf32> -> vector<8x128xf32>
    %49 = arith.addf %47, %48 : vector<8x128xf32>
    %50 = vector.extract_strided_slice %49 {offsets = [0, 0], sizes = [8, 96], strides = [1, 1]} : vector<8x128xf32> to vector<8x96xf32>
    %51 = arith.negf %50 : vector<8x96xf32>
    %52 = math.exp %51 : vector<8x96xf32>
    %cst_26 = arith.constant 1.000000e+00 : f32
    %53 = vector.broadcast %cst_26 : f32 to vector<8x96xf32>
    %54 = arith.addf %53, %52 : vector<8x96xf32>
    %55 = arith.divf %53, %54 : vector<8x96xf32>
    %56 = vector.extract_strided_slice %55 {offsets = [0, 0], sizes = [8, 32], strides = [1, 1]} : vector<8x96xf32> to vector<8x32xf32>
    %57 = vector.extract_strided_slice %55 {offsets = [0, 32], sizes = [8, 32], strides = [1, 1]} : vector<8x96xf32> to vector<8x32xf32>
    %58 = vector.extract_strided_slice %55 {offsets = [0, 64], sizes = [8, 32], strides = [1, 1]} : vector<8x96xf32> to vector<8x32xf32>
    %59 = vector.extract_strided_slice %49 {offsets = [0, 96], sizes = [8, 32], strides = [1, 1]} : vector<8x128xf32> to vector<8x32xf32>
    %60 = math.tanh %59 : vector<8x32xf32>
    %61 = arith.mulf %57, %34 : vector<8x32xf32>
    %62 = arith.mulf %56, %60 : vector<8x32xf32>
    %63 = arith.addf %61, %62 : vector<8x32xf32>
    %64 = math.tanh %63 : vector<8x32xf32>
    %65 = arith.mulf %58, %64 : vector<8x32xf32>
    %66 = arith.truncf %65 : vector<8x32xf32> to vector<8x32xbf16>
    %cst_27 = arith.constant dense<0.000000e+00> : vector<8x128xf32>
    %67 = tpu.matmul %66, %12, %cst_27 {dimension_numbers = #tpu.dot_dimension_numbers<[1], [0], [0], [1], [0, 0, 1, 1], [], []>} : vector<8x32xbf16>, vector<32x128xbf16>, vector<8x128xf32> -> vector<8x128xf32>
    %68 = vector.broadcast %13 : vector<1x128xf32> to vector<8x128xf32>
    %69 = arith.addf %67, %68 : vector<8x128xf32>
    %70 = arith.index_cast %c1_i32 : i32 to index
    %c0_28 = arith.constant 0 : index
    %c0_29 = arith.constant 0 : index
    %71 = vector.load %arg13[%70, %c0_28, %c0_29] : memref<16x8x128xf32, #tpu.memory_space<vmem>>, vector<1x8x128xf32>
    %72 = vector.shape_cast %71 : vector<1x8x128xf32> to vector<8x128xf32>
    %73 = vector.shape_cast %69 : vector<8x128xf32> to vector<1x8x128xf32>
    tpu.vector_store %arg13[%70, %c0_28, %c0_29], %73 {strides = array<i32>} : memref<16x8x128xf32, #tpu.memory_space<vmem>>, vector<1x8x128xf32>,
    %c2_i32 = arith.constant 2 : i32
    %74 = arith.index_cast %c2_i32 : i32 to index
    %c0_30 = arith.constant 0 : index
    %c0_31 = arith.constant 0 : index
    %75 = vector.load %arg13[%74, %c0_30, %c0_31] : memref<16x8x128xf32, #tpu.memory_space<vmem>>, vector<1x8x128xf32>
    %76 = vector.shape_cast %75 : vector<1x8x128xf32> to vector<8x128xf32>
    %cst_32 = arith.constant dense<0.000000e+00> : vector<8x128xf32>
    %77 = tpu.matmul %66, %11, %cst_32 {dimension_numbers = #tpu.dot_dimension_numbers<[1], [0], [0], [1], [0, 0, 1, 1], [], []>} : vector<8x32xbf16>, vector<32x128xbf16>, vector<8x128xf32> -> vector<8x128xf32>
    %78 = arith.addf %76, %77 : vector<8x128xf32>
    %79 = vector.extract_strided_slice %78 {offsets = [0, 0], sizes = [8, 96], strides = [1, 1]} : vector<8x128xf32> to vector<8x96xf32>
    %80 = arith.negf %79 : vector<8x96xf32>
    %81 = math.exp %80 : vector<8x96xf32>
    %cst_33 = arith.constant 1.000000e+00 : f32
    %82 = vector.broadcast %cst_33 : f32 to vector<8x96xf32>
    %83 = arith.addf %82, %81 : vector<8x96xf32>
    %84 = arith.divf %82, %83 : vector<8x96xf32>
    %85 = vector.extract_strided_slice %84 {offsets = [0, 0], sizes = [8, 32], strides = [1, 1]} : vector<8x96xf32> to vector<8x32xf32>
    %86 = vector.extract_strided_slice %84 {offsets = [0, 32], sizes = [8, 32], strides = [1, 1]} : vector<8x96xf32> to vector<8x32xf32>
    %87 = vector.extract_strided_slice %84 {offsets = [0, 64], sizes = [8, 32], strides = [1, 1]} : vector<8x96xf32> to vector<8x32xf32>
    %88 = vector.extract_strided_slice %78 {offsets = [0, 96], sizes = [8, 32], strides = [1, 1]} : vector<8x128xf32> to vector<8x32xf32>
    %89 = math.tanh %88 : vector<8x32xf32>
    %90 = arith.mulf %86, %63 : vector<8x32xf32>
    %91 = arith.mulf %85, %89 : vector<8x32xf32>
    %92 = arith.addf %90, %91 : vector<8x32xf32>
    %93 = math.tanh %92 : vector<8x32xf32>
    %94 = arith.mulf %87, %93 : vector<8x32xf32>
    %95 = arith.truncf %94 : vector<8x32xf32> to vector<8x32xbf16>
    %cst_34 = arith.constant dense<0.000000e+00> : vector<8x128xf32>
    %96 = tpu.matmul %95, %12, %cst_34 {dimension_numbers = #tpu.dot_dimension_numbers<[1], [0], [0], [1], [0, 0, 1, 1], [], []>} : vector<8x32xbf16>, vector<32x128xbf16>, vector<8x128xf32> -> vector<8x128xf32>
    %97 = vector.broadcast %13 : vector<1x128xf32> to vector<8x128xf32>
    %98 = arith.addf %96, %97 : vector<8x128xf32>
    %99 = arith.index_cast %c2_i32 : i32 to index
    %c0_35 = arith.constant 0 : index
    %c0_36 = arith.constant 0 : index
    %100 = vector.load %arg13[%99, %c0_35, %c0_36] : memref<16x8x128xf32, #tpu.memory_space<vmem>>, vector<1x8x128xf32>
    %101 = vector.shape_cast %100 : vector<1x8x128xf32> to vector<8x128xf32>
    %102 = vector.shape_cast %98 : vector<8x128xf32> to vector<1x8x128xf32>
    tpu.vector_store %arg13[%99, %c0_35, %c0_36], %102 {strides = array<i32>} : memref<16x8x128xf32, #tpu.memory_space<vmem>>, vector<1x8x128xf32>,
    %c3_i32 = arith.constant 3 : i32
    %103 = arith.index_cast %c3_i32 : i32 to index
    %c0_37 = arith.constant 0 : index
    %c0_38 = arith.constant 0 : index
    %104 = vector.load %arg13[%103, %c0_37, %c0_38] : memref<16x8x128xf32, #tpu.memory_space<vmem>>, vector<1x8x128xf32>
    %105 = vector.shape_cast %104 : vector<1x8x128xf32> to vector<8x128xf32>
    %cst_39 = arith.constant dense<0.000000e+00> : vector<8x128xf32>
    %106 = tpu.matmul %95, %11, %cst_39 {dimension_numbers = #tpu.dot_dimension_numbers<[1], [0], [0], [1], [0, 0, 1, 1], [], []>} : vector<8x32xbf16>, vector<32x128xbf16>, vector<8x128xf32> -> vector<8x128xf32>
    %107 = arith.addf %105, %106 : vector<8x128xf32>
    %108 = vector.extract_strided_slice %107 {offsets = [0, 0], sizes = [8, 96], strides = [1, 1]} : vector<8x128xf32> to vector<8x96xf32>
    %109 = arith.negf %108 : vector<8x96xf32>
    %110 = math.exp %109 : vector<8x96xf32>
    %cst_40 = arith.constant 1.000000e+00 : f32
    %111 = vector.broadcast %cst_40 : f32 to vector<8x96xf32>
    %112 = arith.addf %111, %110 : vector<8x96xf32>
    %113 = arith.divf %111, %112 : vector<8x96xf32>
    %114 = vector.extract_strided_slice %113 {offsets = [0, 0], sizes = [8, 32], strides = [1, 1]} : vector<8x96xf32> to vector<8x32xf32>
    %115 = vector.extract_strided_slice %113 {offsets = [0, 32], sizes = [8, 32], strides = [1, 1]} : vector<8x96xf32> to vector<8x32xf32>
    %116 = vector.extract_strided_slice %113 {offsets = [0, 64], sizes = [8, 32], strides = [1, 1]} : vector<8x96xf32> to vector<8x32xf32>
    %117 = vector.extract_strided_slice %107 {offsets = [0, 96], sizes = [8, 32], strides = [1, 1]} : vector<8x128xf32> to vector<8x32xf32>
    %118 = math.tanh %117 : vector<8x32xf32>
    %119 = arith.mulf %115, %92 : vector<8x32xf32>
    %120 = arith.mulf %114, %118 : vector<8x32xf32>
    %121 = arith.addf %119, %120 : vector<8x32xf32>
    %122 = math.tanh %121 : vector<8x32xf32>
    %123 = arith.mulf %116, %122 : vector<8x32xf32>
    %124 = arith.truncf %123 : vector<8x32xf32> to vector<8x32xbf16>
    %cst_41 = arith.constant dense<0.000000e+00> : vector<8x128xf32>
    %125 = tpu.matmul %124, %12, %cst_41 {dimension_numbers = #tpu.dot_dimension_numbers<[1], [0], [0], [1], [0, 0, 1, 1], [], []>} : vector<8x32xbf16>, vector<32x128xbf16>, vector<8x128xf32> -> vector<8x128xf32>
    %126 = vector.broadcast %13 : vector<1x128xf32> to vector<8x128xf32>
    %127 = arith.addf %125, %126 : vector<8x128xf32>
    %128 = arith.index_cast %c3_i32 : i32 to index
    %c0_42 = arith.constant 0 : index
    %c0_43 = arith.constant 0 : index
    %129 = vector.load %arg13[%128, %c0_42, %c0_43] : memref<16x8x128xf32, #tpu.memory_space<vmem>>, vector<1x8x128xf32>
    %130 = vector.shape_cast %129 : vector<1x8x128xf32> to vector<8x128xf32>
    %131 = vector.shape_cast %127 : vector<8x128xf32> to vector<1x8x128xf32>
    tpu.vector_store %arg13[%128, %c0_42, %c0_43], %131 {strides = array<i32>} : memref<16x8x128xf32, #tpu.memory_space<vmem>>, vector<1x8x128xf32>,
    %c4_i32 = arith.constant 4 : i32
    %132 = arith.index_cast %c4_i32 : i32 to index
    %c0_44 = arith.constant 0 : index
    %c0_45 = arith.constant 0 : index
    %133 = vector.load %arg13[%132, %c0_44, %c0_45] : memref<16x8x128xf32, #tpu.memory_space<vmem>>, vector<1x8x128xf32>
    %134 = vector.shape_cast %133 : vector<1x8x128xf32> to vector<8x128xf32>
    %cst_46 = arith.constant dense<0.000000e+00> : vector<8x128xf32>
    %135 = tpu.matmul %124, %11, %cst_46 {dimension_numbers = #tpu.dot_dimension_numbers<[1], [0], [0], [1], [0, 0, 1, 1], [], []>} : vector<8x32xbf16>, vector<32x128xbf16>, vector<8x128xf32> -> vector<8x128xf32>
    %136 = arith.addf %134, %135 : vector<8x128xf32>
    %137 = vector.extract_strided_slice %136 {offsets = [0, 0], sizes = [8, 96], strides = [1, 1]} : vector<8x128xf32> to vector<8x96xf32>
    %138 = arith.negf %137 : vector<8x96xf32>
    %139 = math.exp %138 : vector<8x96xf32>
    %cst_47 = arith.constant 1.000000e+00 : f32
    %140 = vector.broadcast %cst_47 : f32 to vector<8x96xf32>
    %141 = arith.addf %140, %139 : vector<8x96xf32>
    %142 = arith.divf %140, %141 : vector<8x96xf32>
    %143 = vector.extract_strided_slice %142 {offsets = [0, 0], sizes = [8, 32], strides = [1, 1]} : vector<8x96xf32> to vector<8x32xf32>
    %144 = vector.extract_strided_slice %142 {offsets = [0, 32], sizes = [8, 32], strides = [1, 1]} : vector<8x96xf32> to vector<8x32xf32>
    %145 = vector.extract_strided_slice %142 {offsets = [0, 64], sizes = [8, 32], strides = [1, 1]} : vector<8x96xf32> to vector<8x32xf32>
    %146 = vector.extract_strided_slice %136 {offsets = [0, 96], sizes = [8, 32], strides = [1, 1]} : vector<8x128xf32> to vector<8x32xf32>
    %147 = math.tanh %146 : vector<8x32xf32>
    %148 = arith.mulf %144, %121 : vector<8x32xf32>
    %149 = arith.mulf %143, %147 : vector<8x32xf32>
    %150 = arith.addf %148, %149 : vector<8x32xf32>
    %151 = math.tanh %150 : vector<8x32xf32>
    %152 = arith.mulf %145, %151 : vector<8x32xf32>
    %153 = arith.truncf %152 : vector<8x32xf32> to vector<8x32xbf16>
    %cst_48 = arith.constant dense<0.000000e+00> : vector<8x128xf32>
    %154 = tpu.matmul %153, %12, %cst_48 {dimension_numbers = #tpu.dot_dimension_numbers<[1], [0], [0], [1], [0, 0, 1, 1], [], []>} : vector<8x32xbf16>, vector<32x128xbf16>, vector<8x128xf32> -> vector<8x128xf32>
    %155 = vector.broadcast %13 : vector<1x128xf32> to vector<8x128xf32>
    %156 = arith.addf %154, %155 : vector<8x128xf32>
    %157 = arith.index_cast %c4_i32 : i32 to index
    %c0_49 = arith.constant 0 : index
    %c0_50 = arith.constant 0 : index
    %158 = vector.load %arg13[%157, %c0_49, %c0_50] : memref<16x8x128xf32, #tpu.memory_space<vmem>>, vector<1x8x128xf32>
    %159 = vector.shape_cast %158 : vector<1x8x128xf32> to vector<8x128xf32>
    %160 = vector.shape_cast %156 : vector<8x128xf32> to vector<1x8x128xf32>
    tpu.vector_store %arg13[%157, %c0_49, %c0_50], %160 {strides = array<i32>} : memref<16x8x128xf32, #tpu.memory_space<vmem>>, vector<1x8x128xf32>,
    %c5_i32 = arith.constant 5 : i32
    %161 = arith.index_cast %c5_i32 : i32 to index
    %c0_51 = arith.constant 0 : index
    %c0_52 = arith.constant 0 : index
    %162 = vector.load %arg13[%161, %c0_51, %c0_52] : memref<16x8x128xf32, #tpu.memory_space<vmem>>, vector<1x8x128xf32>
    %163 = vector.shape_cast %162 : vector<1x8x128xf32> to vector<8x128xf32>
    %cst_53 = arith.constant dense<0.000000e+00> : vector<8x128xf32>
    %164 = tpu.matmul %153, %11, %cst_53 {dimension_numbers = #tpu.dot_dimension_numbers<[1], [0], [0], [1], [0, 0, 1, 1], [], []>} : vector<8x32xbf16>, vector<32x128xbf16>, vector<8x128xf32> -> vector<8x128xf32>
    %165 = arith.addf %163, %164 : vector<8x128xf32>
    %166 = vector.extract_strided_slice %165 {offsets = [0, 0], sizes = [8, 96], strides = [1, 1]} : vector<8x128xf32> to vector<8x96xf32>
    %167 = arith.negf %166 : vector<8x96xf32>
    %168 = math.exp %167 : vector<8x96xf32>
    %cst_54 = arith.constant 1.000000e+00 : f32
    %169 = vector.broadcast %cst_54 : f32 to vector<8x96xf32>
    %170 = arith.addf %169, %168 : vector<8x96xf32>
    %171 = arith.divf %169, %170 : vector<8x96xf32>
    %172 = vector.extract_strided_slice %171 {offsets = [0, 0], sizes = [8, 32], strides = [1, 1]} : vector<8x96xf32> to vector<8x32xf32>
    %173 = vector.extract_strided_slice %171 {offsets = [0, 32], sizes = [8, 32], strides = [1, 1]} : vector<8x96xf32> to vector<8x32xf32>
    %174 = vector.extract_strided_slice %171 {offsets = [0, 64], sizes = [8, 32], strides = [1, 1]} : vector<8x96xf32> to vector<8x32xf32>
    %175 = vector.extract_strided_slice %165 {offsets = [0, 96], sizes = [8, 32], strides = [1, 1]} : vector<8x128xf32> to vector<8x32xf32>
    %176 = math.tanh %175 : vector<8x32xf32>
    %177 = arith.mulf %173, %150 : vector<8x32xf32>
    %178 = arith.mulf %172, %176 : vector<8x32xf32>
    %179 = arith.addf %177, %178 : vector<8x32xf32>
    %180 = math.tanh %179 : vector<8x32xf32>
    %181 = arith.mulf %174, %180 : vector<8x32xf32>
    %182 = arith.truncf %181 : vector<8x32xf32> to vector<8x32xbf16>
    %cst_55 = arith.constant dense<0.000000e+00> : vector<8x128xf32>
    %183 = tpu.matmul %182, %12, %cst_55 {dimension_numbers = #tpu.dot_dimension_numbers<[1], [0], [0], [1], [0, 0, 1, 1], [], []>} : vector<8x32xbf16>, vector<32x128xbf16>, vector<8x128xf32> -> vector<8x128xf32>
    %184 = vector.broadcast %13 : vector<1x128xf32> to vector<8x128xf32>
    %185 = arith.addf %183, %184 : vector<8x128xf32>
    %186 = arith.index_cast %c5_i32 : i32 to index
    %c0_56 = arith.constant 0 : index
    %c0_57 = arith.constant 0 : index
    %187 = vector.load %arg13[%186, %c0_56, %c0_57] : memref<16x8x128xf32, #tpu.memory_space<vmem>>, vector<1x8x128xf32>
    %188 = vector.shape_cast %187 : vector<1x8x128xf32> to vector<8x128xf32>
    %189 = vector.shape_cast %185 : vector<8x128xf32> to vector<1x8x128xf32>
    tpu.vector_store %arg13[%186, %c0_56, %c0_57], %189 {strides = array<i32>} : memref<16x8x128xf32, #tpu.memory_space<vmem>>, vector<1x8x128xf32>,
    %c6_i32 = arith.constant 6 : i32
    %190 = arith.index_cast %c6_i32 : i32 to index
    %c0_58 = arith.constant 0 : index
    %c0_59 = arith.constant 0 : index
    %191 = vector.load %arg13[%190, %c0_58, %c0_59] : memref<16x8x128xf32, #tpu.memory_space<vmem>>, vector<1x8x128xf32>
    %192 = vector.shape_cast %191 : vector<1x8x128xf32> to vector<8x128xf32>
    %cst_60 = arith.constant dense<0.000000e+00> : vector<8x128xf32>
    %193 = tpu.matmul %182, %11, %cst_60 {dimension_numbers = #tpu.dot_dimension_numbers<[1], [0], [0], [1], [0, 0, 1, 1], [], []>} : vector<8x32xbf16>, vector<32x128xbf16>, vector<8x128xf32> -> vector<8x128xf32>
    %194 = arith.addf %192, %193 : vector<8x128xf32>
    %195 = vector.extract_strided_slice %194 {offsets = [0, 0], sizes = [8, 96], strides = [1, 1]} : vector<8x128xf32> to vector<8x96xf32>
    %196 = arith.negf %195 : vector<8x96xf32>
    %197 = math.exp %196 : vector<8x96xf32>
    %cst_61 = arith.constant 1.000000e+00 : f32
    %198 = vector.broadcast %cst_61 : f32 to vector<8x96xf32>
    %199 = arith.addf %198, %197 : vector<8x96xf32>
    %200 = arith.divf %198, %199 : vector<8x96xf32>
    %201 = vector.extract_strided_slice %200 {offsets = [0, 0], sizes = [8, 32], strides = [1, 1]} : vector<8x96xf32> to vector<8x32xf32>
    %202 = vector.extract_strided_slice %200 {offsets = [0, 32], sizes = [8, 32], strides = [1, 1]} : vector<8x96xf32> to vector<8x32xf32>
    %203 = vector.extract_strided_slice %200 {offsets = [0, 64], sizes = [8, 32], strides = [1, 1]} : vector<8x96xf32> to vector<8x32xf32>
    %204 = vector.extract_strided_slice %194 {offsets = [0, 96], sizes = [8, 32], strides = [1, 1]} : vector<8x128xf32> to vector<8x32xf32>
    %205 = math.tanh %204 : vector<8x32xf32>
    %206 = arith.mulf %202, %179 : vector<8x32xf32>
    %207 = arith.mulf %201, %205 : vector<8x32xf32>
    %208 = arith.addf %206, %207 : vector<8x32xf32>
    %209 = math.tanh %208 : vector<8x32xf32>
    %210 = arith.mulf %203, %209 : vector<8x32xf32>
    %211 = arith.truncf %210 : vector<8x32xf32> to vector<8x32xbf16>
    %cst_62 = arith.constant dense<0.000000e+00> : vector<8x128xf32>
    %212 = tpu.matmul %211, %12, %cst_62 {dimension_numbers = #tpu.dot_dimension_numbers<[1], [0], [0], [1], [0, 0, 1, 1], [], []>} : vector<8x32xbf16>, vector<32x128xbf16>, vector<8x128xf32> -> vector<8x128xf32>
    %213 = vector.broadcast %13 : vector<1x128xf32> to vector<8x128xf32>
    %214 = arith.addf %212, %213 : vector<8x128xf32>
    %215 = arith.index_cast %c6_i32 : i32 to index
    %c0_63 = arith.constant 0 : index
    %c0_64 = arith.constant 0 : index
    %216 = vector.load %arg13[%215, %c0_63, %c0_64] : memref<16x8x128xf32, #tpu.memory_space<vmem>>, vector<1x8x128xf32>
    %217 = vector.shape_cast %216 : vector<1x8x128xf32> to vector<8x128xf32>
    %218 = vector.shape_cast %214 : vector<8x128xf32> to vector<1x8x128xf32>
    tpu.vector_store %arg13[%215, %c0_63, %c0_64], %218 {strides = array<i32>} : memref<16x8x128xf32, #tpu.memory_space<vmem>>, vector<1x8x128xf32>,
    %c7_i32 = arith.constant 7 : i32
    %219 = arith.index_cast %c7_i32 : i32 to index
    %c0_65 = arith.constant 0 : index
    %c0_66 = arith.constant 0 : index
    %220 = vector.load %arg13[%219, %c0_65, %c0_66] : memref<16x8x128xf32, #tpu.memory_space<vmem>>, vector<1x8x128xf32>
    %221 = vector.shape_cast %220 : vector<1x8x128xf32> to vector<8x128xf32>
    %cst_67 = arith.constant dense<0.000000e+00> : vector<8x128xf32>
    %222 = tpu.matmul %211, %11, %cst_67 {dimension_numbers = #tpu.dot_dimension_numbers<[1], [0], [0], [1], [0, 0, 1, 1], [], []>} : vector<8x32xbf16>, vector<32x128xbf16>, vector<8x128xf32> -> vector<8x128xf32>
    %223 = arith.addf %221, %222 : vector<8x128xf32>
    %224 = vector.extract_strided_slice %223 {offsets = [0, 0], sizes = [8, 96], strides = [1, 1]} : vector<8x128xf32> to vector<8x96xf32>
    %225 = arith.negf %224 : vector<8x96xf32>
    %226 = math.exp %225 : vector<8x96xf32>
    %cst_68 = arith.constant 1.000000e+00 : f32
    %227 = vector.broadcast %cst_68 : f32 to vector<8x96xf32>
    %228 = arith.addf %227, %226 : vector<8x96xf32>
    %229 = arith.divf %227, %228 : vector<8x96xf32>
    %230 = vector.extract_strided_slice %229 {offsets = [0, 0], sizes = [8, 32], strides = [1, 1]} : vector<8x96xf32> to vector<8x32xf32>
    %231 = vector.extract_strided_slice %229 {offsets = [0, 32], sizes = [8, 32], strides = [1, 1]} : vector<8x96xf32> to vector<8x32xf32>
    %232 = vector.extract_strided_slice %229 {offsets = [0, 64], sizes = [8, 32], strides = [1, 1]} : vector<8x96xf32> to vector<8x32xf32>
    %233 = vector.extract_strided_slice %223 {offsets = [0, 96], sizes = [8, 32], strides = [1, 1]} : vector<8x128xf32> to vector<8x32xf32>
    %234 = math.tanh %233 : vector<8x32xf32>
    %235 = arith.mulf %231, %208 : vector<8x32xf32>
    %236 = arith.mulf %230, %234 : vector<8x32xf32>
    %237 = arith.addf %235, %236 : vector<8x32xf32>
    %238 = math.tanh %237 : vector<8x32xf32>
    %239 = arith.mulf %232, %238 : vector<8x32xf32>
    %240 = arith.truncf %239 : vector<8x32xf32> to vector<8x32xbf16>
    %cst_69 = arith.constant dense<0.000000e+00> : vector<8x128xf32>
    %241 = tpu.matmul %240, %12, %cst_69 {dimension_numbers = #tpu.dot_dimension_numbers<[1], [0], [0], [1], [0, 0, 1, 1], [], []>} : vector<8x32xbf16>, vector<32x128xbf16>, vector<8x128xf32> -> vector<8x128xf32>
    %242 = vector.broadcast %13 : vector<1x128xf32> to vector<8x128xf32>
    %243 = arith.addf %241, %242 : vector<8x128xf32>
    %244 = arith.index_cast %c7_i32 : i32 to index
    %c0_70 = arith.constant 0 : index
    %c0_71 = arith.constant 0 : index
    %245 = vector.load %arg13[%244, %c0_70, %c0_71] : memref<16x8x128xf32, #tpu.memory_space<vmem>>, vector<1x8x128xf32>
    %246 = vector.shape_cast %245 : vector<1x8x128xf32> to vector<8x128xf32>
    %247 = vector.shape_cast %243 : vector<8x128xf32> to vector<1x8x128xf32>
    tpu.vector_store %arg13[%244, %c0_70, %c0_71], %247 {strides = array<i32>} : memref<16x8x128xf32, #tpu.memory_space<vmem>>, vector<1x8x128xf32>,
    %c8_i32 = arith.constant 8 : i32
    %248 = arith.index_cast %c8_i32 : i32 to index
    %c0_72 = arith.constant 0 : index
    %c0_73 = arith.constant 0 : index
    %249 = vector.load %arg13[%248, %c0_72, %c0_73] : memref<16x8x128xf32, #tpu.memory_space<vmem>>, vector<1x8x128xf32>
    %250 = vector.shape_cast %249 : vector<1x8x128xf32> to vector<8x128xf32>
    %cst_74 = arith.constant dense<0.000000e+00> : vector<8x128xf32>
    %251 = tpu.matmul %240, %11, %cst_74 {dimension_numbers = #tpu.dot_dimension_numbers<[1], [0], [0], [1], [0, 0, 1, 1], [], []>} : vector<8x32xbf16>, vector<32x128xbf16>, vector<8x128xf32> -> vector<8x128xf32>
    %252 = arith.addf %250, %251 : vector<8x128xf32>
    %253 = vector.extract_strided_slice %252 {offsets = [0, 0], sizes = [8, 96], strides = [1, 1]} : vector<8x128xf32> to vector<8x96xf32>
    %254 = arith.negf %253 : vector<8x96xf32>
    %255 = math.exp %254 : vector<8x96xf32>
    %cst_75 = arith.constant 1.000000e+00 : f32
    %256 = vector.broadcast %cst_75 : f32 to vector<8x96xf32>
    %257 = arith.addf %256, %255 : vector<8x96xf32>
    %258 = arith.divf %256, %257 : vector<8x96xf32>
    %259 = vector.extract_strided_slice %258 {offsets = [0, 0], sizes = [8, 32], strides = [1, 1]} : vector<8x96xf32> to vector<8x32xf32>
    %260 = vector.extract_strided_slice %258 {offsets = [0, 32], sizes = [8, 32], strides = [1, 1]} : vector<8x96xf32> to vector<8x32xf32>
    %261 = vector.extract_strided_slice %258 {offsets = [0, 64], sizes = [8, 32], strides = [1, 1]} : vector<8x96xf32> to vector<8x32xf32>
    %262 = vector.extract_strided_slice %252 {offsets = [0, 96], sizes = [8, 32], strides = [1, 1]} : vector<8x128xf32> to vector<8x32xf32>
    %263 = math.tanh %262 : vector<8x32xf32>
    %264 = arith.mulf %260, %237 : vector<8x32xf32>
    %265 = arith.mulf %259, %263 : vector<8x32xf32>
    %266 = arith.addf %264, %265 : vector<8x32xf32>
    %267 = math.tanh %266 : vector<8x32xf32>
    %268 = arith.mulf %261, %267 : vector<8x32xf32>
    %269 = arith.truncf %268 : vector<8x32xf32> to vector<8x32xbf16>
    %cst_76 = arith.constant dense<0.000000e+00> : vector<8x128xf32>
    %270 = tpu.matmul %269, %12, %cst_76 {dimension_numbers = #tpu.dot_dimension_numbers<[1], [0], [0], [1], [0, 0, 1, 1], [], []>} : vector<8x32xbf16>, vector<32x128xbf16>, vector<8x128xf32> -> vector<8x128xf32>
    %271 = vector.broadcast %13 : vector<1x128xf32> to vector<8x128xf32>
    %272 = arith.addf %270, %271 : vector<8x128xf32>
    %273 = arith.index_cast %c8_i32 : i32 to index
    %c0_77 = arith.constant 0 : index
    %c0_78 = arith.constant 0 : index
    %274 = vector.load %arg13[%273, %c0_77, %c0_78] : memref<16x8x128xf32, #tpu.memory_space<vmem>>, vector<1x8x128xf32>
    %275 = vector.shape_cast %274 : vector<1x8x128xf32> to vector<8x128xf32>
    %276 = vector.shape_cast %272 : vector<8x128xf32> to vector<1x8x128xf32>
    tpu.vector_store %arg13[%273, %c0_77, %c0_78], %276 {strides = array<i32>} : memref<16x8x128xf32, #tpu.memory_space<vmem>>, vector<1x8x128xf32>,
    %c9_i32 = arith.constant 9 : i32
    %277 = arith.index_cast %c9_i32 : i32 to index
    %c0_79 = arith.constant 0 : index
    %c0_80 = arith.constant 0 : index
    %278 = vector.load %arg13[%277, %c0_79, %c0_80] : memref<16x8x128xf32, #tpu.memory_space<vmem>>, vector<1x8x128xf32>
    %279 = vector.shape_cast %278 : vector<1x8x128xf32> to vector<8x128xf32>
    %cst_81 = arith.constant dense<0.000000e+00> : vector<8x128xf32>
    %280 = tpu.matmul %269, %11, %cst_81 {dimension_numbers = #tpu.dot_dimension_numbers<[1], [0], [0], [1], [0, 0, 1, 1], [], []>} : vector<8x32xbf16>, vector<32x128xbf16>, vector<8x128xf32> -> vector<8x128xf32>
    %281 = arith.addf %279, %280 : vector<8x128xf32>
    %282 = vector.extract_strided_slice %281 {offsets = [0, 0], sizes = [8, 96], strides = [1, 1]} : vector<8x128xf32> to vector<8x96xf32>
    %283 = arith.negf %282 : vector<8x96xf32>
    %284 = math.exp %283 : vector<8x96xf32>
    %cst_82 = arith.constant 1.000000e+00 : f32
    %285 = vector.broadcast %cst_82 : f32 to vector<8x96xf32>
    %286 = arith.addf %285, %284 : vector<8x96xf32>
    %287 = arith.divf %285, %286 : vector<8x96xf32>
    %288 = vector.extract_strided_slice %287 {offsets = [0, 0], sizes = [8, 32], strides = [1, 1]} : vector<8x96xf32> to vector<8x32xf32>
    %289 = vector.extract_strided_slice %287 {offsets = [0, 32], sizes = [8, 32], strides = [1, 1]} : vector<8x96xf32> to vector<8x32xf32>
    %290 = vector.extract_strided_slice %287 {offsets = [0, 64], sizes = [8, 32], strides = [1, 1]} : vector<8x96xf32> to vector<8x32xf32>
    %291 = vector.extract_strided_slice %281 {offsets = [0, 96], sizes = [8, 32], strides = [1, 1]} : vector<8x128xf32> to vector<8x32xf32>
    %292 = math.tanh %291 : vector<8x32xf32>
    %293 = arith.mulf %289, %266 : vector<8x32xf32>
    %294 = arith.mulf %288, %292 : vector<8x32xf32>
    %295 = arith.addf %293, %294 : vector<8x32xf32>
    %296 = math.tanh %295 : vector<8x32xf32>
    %297 = arith.mulf %290, %296 : vector<8x32xf32>
    %298 = arith.truncf %297 : vector<8x32xf32> to vector<8x32xbf16>
    %cst_83 = arith.constant dense<0.000000e+00> : vector<8x128xf32>
    %299 = tpu.matmul %298, %12, %cst_83 {dimension_numbers = #tpu.dot_dimension_numbers<[1], [0], [0], [1], [0, 0, 1, 1], [], []>} : vector<8x32xbf16>, vector<32x128xbf16>, vector<8x128xf32> -> vector<8x128xf32>
    %300 = vector.broadcast %13 : vector<1x128xf32> to vector<8x128xf32>
    %301 = arith.addf %299, %300 : vector<8x128xf32>
    %302 = arith.index_cast %c9_i32 : i32 to index
    %c0_84 = arith.constant 0 : index
    %c0_85 = arith.constant 0 : index
    %303 = vector.load %arg13[%302, %c0_84, %c0_85] : memref<16x8x128xf32, #tpu.memory_space<vmem>>, vector<1x8x128xf32>
    %304 = vector.shape_cast %303 : vector<1x8x128xf32> to vector<8x128xf32>
    %305 = vector.shape_cast %301 : vector<8x128xf32> to vector<1x8x128xf32>
    tpu.vector_store %arg13[%302, %c0_84, %c0_85], %305 {strides = array<i32>} : memref<16x8x128xf32, #tpu.memory_space<vmem>>, vector<1x8x128xf32>,
    %c10_i32 = arith.constant 10 : i32
    %306 = arith.index_cast %c10_i32 : i32 to index
    %c0_86 = arith.constant 0 : index
    %c0_87 = arith.constant 0 : index
    %307 = vector.load %arg13[%306, %c0_86, %c0_87] : memref<16x8x128xf32, #tpu.memory_space<vmem>>, vector<1x8x128xf32>
    %308 = vector.shape_cast %307 : vector<1x8x128xf32> to vector<8x128xf32>
    %cst_88 = arith.constant dense<0.000000e+00> : vector<8x128xf32>
    %309 = tpu.matmul %298, %11, %cst_88 {dimension_numbers = #tpu.dot_dimension_numbers<[1], [0], [0], [1], [0, 0, 1, 1], [], []>} : vector<8x32xbf16>, vector<32x128xbf16>, vector<8x128xf32> -> vector<8x128xf32>
    %310 = arith.addf %308, %309 : vector<8x128xf32>
    %311 = vector.extract_strided_slice %310 {offsets = [0, 0], sizes = [8, 96], strides = [1, 1]} : vector<8x128xf32> to vector<8x96xf32>
    %312 = arith.negf %311 : vector<8x96xf32>
    %313 = math.exp %312 : vector<8x96xf32>
    %cst_89 = arith.constant 1.000000e+00 : f32
    %314 = vector.broadcast %cst_89 : f32 to vector<8x96xf32>
    %315 = arith.addf %314, %313 : vector<8x96xf32>
    %316 = arith.divf %314, %315 : vector<8x96xf32>
    %317 = vector.extract_strided_slice %316 {offsets = [0, 0], sizes = [8, 32], strides = [1, 1]} : vector<8x96xf32> to vector<8x32xf32>
    %318 = vector.extract_strided_slice %316 {offsets = [0, 32], sizes = [8, 32], strides = [1, 1]} : vector<8x96xf32> to vector<8x32xf32>
    %319 = vector.extract_strided_slice %316 {offsets = [0, 64], sizes = [8, 32], strides = [1, 1]} : vector<8x96xf32> to vector<8x32xf32>
    %320 = vector.extract_strided_slice %310 {offsets = [0, 96], sizes = [8, 32], strides = [1, 1]} : vector<8x128xf32> to vector<8x32xf32>
    %321 = math.tanh %320 : vector<8x32xf32>
    %322 = arith.mulf %318, %295 : vector<8x32xf32>
    %323 = arith.mulf %317, %321 : vector<8x32xf32>
    %324 = arith.addf %322, %323 : vector<8x32xf32>
    %325 = math.tanh %324 : vector<8x32xf32>
    %326 = arith.mulf %319, %325 : vector<8x32xf32>
    %327 = arith.truncf %326 : vector<8x32xf32> to vector<8x32xbf16>
    %cst_90 = arith.constant dense<0.000000e+00> : vector<8x128xf32>
    %328 = tpu.matmul %327, %12, %cst_90 {dimension_numbers = #tpu.dot_dimension_numbers<[1], [0], [0], [1], [0, 0, 1, 1], [], []>} : vector<8x32xbf16>, vector<32x128xbf16>, vector<8x128xf32> -> vector<8x128xf32>
    %329 = vector.broadcast %13 : vector<1x128xf32> to vector<8x128xf32>
    %330 = arith.addf %328, %329 : vector<8x128xf32>
    %331 = arith.index_cast %c10_i32 : i32 to index
    %c0_91 = arith.constant 0 : index
    %c0_92 = arith.constant 0 : index
    %332 = vector.load %arg13[%331, %c0_91, %c0_92] : memref<16x8x128xf32, #tpu.memory_space<vmem>>, vector<1x8x128xf32>
    %333 = vector.shape_cast %332 : vector<1x8x128xf32> to vector<8x128xf32>
    %334 = vector.shape_cast %330 : vector<8x128xf32> to vector<1x8x128xf32>
    tpu.vector_store %arg13[%331, %c0_91, %c0_92], %334 {strides = array<i32>} : memref<16x8x128xf32, #tpu.memory_space<vmem>>, vector<1x8x128xf32>,
    %c11_i32 = arith.constant 11 : i32
    %335 = arith.index_cast %c11_i32 : i32 to index
    %c0_93 = arith.constant 0 : index
    %c0_94 = arith.constant 0 : index
    %336 = vector.load %arg13[%335, %c0_93, %c0_94] : memref<16x8x128xf32, #tpu.memory_space<vmem>>, vector<1x8x128xf32>
    %337 = vector.shape_cast %336 : vector<1x8x128xf32> to vector<8x128xf32>
    %cst_95 = arith.constant dense<0.000000e+00> : vector<8x128xf32>
    %338 = tpu.matmul %327, %11, %cst_95 {dimension_numbers = #tpu.dot_dimension_numbers<[1], [0], [0], [1], [0, 0, 1, 1], [], []>} : vector<8x32xbf16>, vector<32x128xbf16>, vector<8x128xf32> -> vector<8x128xf32>
    %339 = arith.addf %337, %338 : vector<8x128xf32>
    %340 = vector.extract_strided_slice %339 {offsets = [0, 0], sizes = [8, 96], strides = [1, 1]} : vector<8x128xf32> to vector<8x96xf32>
    %341 = arith.negf %340 : vector<8x96xf32>
    %342 = math.exp %341 : vector<8x96xf32>
    %cst_96 = arith.constant 1.000000e+00 : f32
    %343 = vector.broadcast %cst_96 : f32 to vector<8x96xf32>
    %344 = arith.addf %343, %342 : vector<8x96xf32>
    %345 = arith.divf %343, %344 : vector<8x96xf32>
    %346 = vector.extract_strided_slice %345 {offsets = [0, 0], sizes = [8, 32], strides = [1, 1]} : vector<8x96xf32> to vector<8x32xf32>
    %347 = vector.extract_strided_slice %345 {offsets = [0, 32], sizes = [8, 32], strides = [1, 1]} : vector<8x96xf32> to vector<8x32xf32>
    %348 = vector.extract_strided_slice %345 {offsets = [0, 64], sizes = [8, 32], strides = [1, 1]} : vector<8x96xf32> to vector<8x32xf32>
    %349 = vector.extract_strided_slice %339 {offsets = [0, 96], sizes = [8, 32], strides = [1, 1]} : vector<8x128xf32> to vector<8x32xf32>
    %350 = math.tanh %349 : vector<8x32xf32>
    %351 = arith.mulf %347, %324 : vector<8x32xf32>
    %352 = arith.mulf %346, %350 : vector<8x32xf32>
    %353 = arith.addf %351, %352 : vector<8x32xf32>
    %354 = math.tanh %353 : vector<8x32xf32>
    %355 = arith.mulf %348, %354 : vector<8x32xf32>
    %356 = arith.truncf %355 : vector<8x32xf32> to vector<8x32xbf16>
    %cst_97 = arith.constant dense<0.000000e+00> : vector<8x128xf32>
    %357 = tpu.matmul %356, %12, %cst_97 {dimension_numbers = #tpu.dot_dimension_numbers<[1], [0], [0], [1], [0, 0, 1, 1], [], []>} : vector<8x32xbf16>, vector<32x128xbf16>, vector<8x128xf32> -> vector<8x128xf32>
    %358 = vector.broadcast %13 : vector<1x128xf32> to vector<8x128xf32>
    %359 = arith.addf %357, %358 : vector<8x128xf32>
    %360 = arith.index_cast %c11_i32 : i32 to index
    %c0_98 = arith.constant 0 : index
    %c0_99 = arith.constant 0 : index
    %361 = vector.load %arg13[%360, %c0_98, %c0_99] : memref<16x8x128xf32, #tpu.memory_space<vmem>>, vector<1x8x128xf32>
    %362 = vector.shape_cast %361 : vector<1x8x128xf32> to vector<8x128xf32>
    %363 = vector.shape_cast %359 : vector<8x128xf32> to vector<1x8x128xf32>
    tpu.vector_store %arg13[%360, %c0_98, %c0_99], %363 {strides = array<i32>} : memref<16x8x128xf32, #tpu.memory_space<vmem>>, vector<1x8x128xf32>,
    %c12_i32 = arith.constant 12 : i32
    %364 = arith.index_cast %c12_i32 : i32 to index
    %c0_100 = arith.constant 0 : index
    %c0_101 = arith.constant 0 : index
    %365 = vector.load %arg13[%364, %c0_100, %c0_101] : memref<16x8x128xf32, #tpu.memory_space<vmem>>, vector<1x8x128xf32>
    %366 = vector.shape_cast %365 : vector<1x8x128xf32> to vector<8x128xf32>
    %cst_102 = arith.constant dense<0.000000e+00> : vector<8x128xf32>
    %367 = tpu.matmul %356, %11, %cst_102 {dimension_numbers = #tpu.dot_dimension_numbers<[1], [0], [0], [1], [0, 0, 1, 1], [], []>} : vector<8x32xbf16>, vector<32x128xbf16>, vector<8x128xf32> -> vector<8x128xf32>
    %368 = arith.addf %366, %367 : vector<8x128xf32>
    %369 = vector.extract_strided_slice %368 {offsets = [0, 0], sizes = [8, 96], strides = [1, 1]} : vector<8x128xf32> to vector<8x96xf32>
    %370 = arith.negf %369 : vector<8x96xf32>
    %371 = math.exp %370 : vector<8x96xf32>
    %cst_103 = arith.constant 1.000000e+00 : f32
    %372 = vector.broadcast %cst_103 : f32 to vector<8x96xf32>
    %373 = arith.addf %372, %371 : vector<8x96xf32>
    %374 = arith.divf %372, %373 : vector<8x96xf32>
    %375 = vector.extract_strided_slice %374 {offsets = [0, 0], sizes = [8, 32], strides = [1, 1]} : vector<8x96xf32> to vector<8x32xf32>
    %376 = vector.extract_strided_slice %374 {offsets = [0, 32], sizes = [8, 32], strides = [1, 1]} : vector<8x96xf32> to vector<8x32xf32>
    %377 = vector.extract_strided_slice %374 {offsets = [0, 64], sizes = [8, 32], strides = [1, 1]} : vector<8x96xf32> to vector<8x32xf32>
    %378 = vector.extract_strided_slice %368 {offsets = [0, 96], sizes = [8, 32], strides = [1, 1]} : vector<8x128xf32> to vector<8x32xf32>
    %379 = math.tanh %378 : vector<8x32xf32>
    %380 = arith.mulf %376, %353 : vector<8x32xf32>
    %381 = arith.mulf %375, %379 : vector<8x32xf32>
    %382 = arith.addf %380, %381 : vector<8x32xf32>
    %383 = math.tanh %382 : vector<8x32xf32>
    %384 = arith.mulf %377, %383 : vector<8x32xf32>
    %385 = arith.truncf %384 : vector<8x32xf32> to vector<8x32xbf16>
    %cst_104 = arith.constant dense<0.000000e+00> : vector<8x128xf32>
    %386 = tpu.matmul %385, %12, %cst_104 {dimension_numbers = #tpu.dot_dimension_numbers<[1], [0], [0], [1], [0, 0, 1, 1], [], []>} : vector<8x32xbf16>, vector<32x128xbf16>, vector<8x128xf32> -> vector<8x128xf32>
    %387 = vector.broadcast %13 : vector<1x128xf32> to vector<8x128xf32>
    %388 = arith.addf %386, %387 : vector<8x128xf32>
    %389 = arith.index_cast %c12_i32 : i32 to index
    %c0_105 = arith.constant 0 : index
    %c0_106 = arith.constant 0 : index
    %390 = vector.load %arg13[%389, %c0_105, %c0_106] : memref<16x8x128xf32, #tpu.memory_space<vmem>>, vector<1x8x128xf32>
    %391 = vector.shape_cast %390 : vector<1x8x128xf32> to vector<8x128xf32>
    %392 = vector.shape_cast %388 : vector<8x128xf32> to vector<1x8x128xf32>
    tpu.vector_store %arg13[%389, %c0_105, %c0_106], %392 {strides = array<i32>} : memref<16x8x128xf32, #tpu.memory_space<vmem>>, vector<1x8x128xf32>,
    %c13_i32 = arith.constant 13 : i32
    %393 = arith.index_cast %c13_i32 : i32 to index
    %c0_107 = arith.constant 0 : index
    %c0_108 = arith.constant 0 : index
    %394 = vector.load %arg13[%393, %c0_107, %c0_108] : memref<16x8x128xf32, #tpu.memory_space<vmem>>, vector<1x8x128xf32>
    %395 = vector.shape_cast %394 : vector<1x8x128xf32> to vector<8x128xf32>
    %cst_109 = arith.constant dense<0.000000e+00> : vector<8x128xf32>
    %396 = tpu.matmul %385, %11, %cst_109 {dimension_numbers = #tpu.dot_dimension_numbers<[1], [0], [0], [1], [0, 0, 1, 1], [], []>} : vector<8x32xbf16>, vector<32x128xbf16>, vector<8x128xf32> -> vector<8x128xf32>
    %397 = arith.addf %395, %396 : vector<8x128xf32>
    %398 = vector.extract_strided_slice %397 {offsets = [0, 0], sizes = [8, 96], strides = [1, 1]} : vector<8x128xf32> to vector<8x96xf32>
    %399 = arith.negf %398 : vector<8x96xf32>
    %400 = math.exp %399 : vector<8x96xf32>
    %cst_110 = arith.constant 1.000000e+00 : f32
    %401 = vector.broadcast %cst_110 : f32 to vector<8x96xf32>
    %402 = arith.addf %401, %400 : vector<8x96xf32>
    %403 = arith.divf %401, %402 : vector<8x96xf32>
    %404 = vector.extract_strided_slice %403 {offsets = [0, 0], sizes = [8, 32], strides = [1, 1]} : vector<8x96xf32> to vector<8x32xf32>
    %405 = vector.extract_strided_slice %403 {offsets = [0, 32], sizes = [8, 32], strides = [1, 1]} : vector<8x96xf32> to vector<8x32xf32>
    %406 = vector.extract_strided_slice %403 {offsets = [0, 64], sizes = [8, 32], strides = [1, 1]} : vector<8x96xf32> to vector<8x32xf32>
    %407 = vector.extract_strided_slice %397 {offsets = [0, 96], sizes = [8, 32], strides = [1, 1]} : vector<8x128xf32> to vector<8x32xf32>
    %408 = math.tanh %407 : vector<8x32xf32>
    %409 = arith.mulf %405, %382 : vector<8x32xf32>
    %410 = arith.mulf %404, %408 : vector<8x32xf32>
    %411 = arith.addf %409, %410 : vector<8x32xf32>
    %412 = math.tanh %411 : vector<8x32xf32>
    %413 = arith.mulf %406, %412 : vector<8x32xf32>
    %414 = arith.truncf %413 : vector<8x32xf32> to vector<8x32xbf16>
    %cst_111 = arith.constant dense<0.000000e+00> : vector<8x128xf32>
    %415 = tpu.matmul %414, %12, %cst_111 {dimension_numbers = #tpu.dot_dimension_numbers<[1], [0], [0], [1], [0, 0, 1, 1], [], []>} : vector<8x32xbf16>, vector<32x128xbf16>, vector<8x128xf32> -> vector<8x128xf32>
    %416 = vector.broadcast %13 : vector<1x128xf32> to vector<8x128xf32>
    %417 = arith.addf %415, %416 : vector<8x128xf32>
    %418 = arith.index_cast %c13_i32 : i32 to index
    %c0_112 = arith.constant 0 : index
    %c0_113 = arith.constant 0 : index
    %419 = vector.load %arg13[%418, %c0_112, %c0_113] : memref<16x8x128xf32, #tpu.memory_space<vmem>>, vector<1x8x128xf32>
    %420 = vector.shape_cast %419 : vector<1x8x128xf32> to vector<8x128xf32>
    %421 = vector.shape_cast %417 : vector<8x128xf32> to vector<1x8x128xf32>
    tpu.vector_store %arg13[%418, %c0_112, %c0_113], %421 {strides = array<i32>} : memref<16x8x128xf32, #tpu.memory_space<vmem>>, vector<1x8x128xf32>,
    %c14_i32 = arith.constant 14 : i32
    %422 = arith.index_cast %c14_i32 : i32 to index
    %c0_114 = arith.constant 0 : index
    %c0_115 = arith.constant 0 : index
    %423 = vector.load %arg13[%422, %c0_114, %c0_115] : memref<16x8x128xf32, #tpu.memory_space<vmem>>, vector<1x8x128xf32>
    %424 = vector.shape_cast %423 : vector<1x8x128xf32> to vector<8x128xf32>
    %cst_116 = arith.constant dense<0.000000e+00> : vector<8x128xf32>
    %425 = tpu.matmul %414, %11, %cst_116 {dimension_numbers = #tpu.dot_dimension_numbers<[1], [0], [0], [1], [0, 0, 1, 1], [], []>} : vector<8x32xbf16>, vector<32x128xbf16>, vector<8x128xf32> -> vector<8x128xf32>
    %426 = arith.addf %424, %425 : vector<8x128xf32>
    %427 = vector.extract_strided_slice %426 {offsets = [0, 0], sizes = [8, 96], strides = [1, 1]} : vector<8x128xf32> to vector<8x96xf32>
    %428 = arith.negf %427 : vector<8x96xf32>
    %429 = math.exp %428 : vector<8x96xf32>
    %cst_117 = arith.constant 1.000000e+00 : f32
    %430 = vector.broadcast %cst_117 : f32 to vector<8x96xf32>
    %431 = arith.addf %430, %429 : vector<8x96xf32>
    %432 = arith.divf %430, %431 : vector<8x96xf32>
    %433 = vector.extract_strided_slice %432 {offsets = [0, 0], sizes = [8, 32], strides = [1, 1]} : vector<8x96xf32> to vector<8x32xf32>
    %434 = vector.extract_strided_slice %432 {offsets = [0, 32], sizes = [8, 32], strides = [1, 1]} : vector<8x96xf32> to vector<8x32xf32>
    %435 = vector.extract_strided_slice %432 {offsets = [0, 64], sizes = [8, 32], strides = [1, 1]} : vector<8x96xf32> to vector<8x32xf32>
    %436 = vector.extract_strided_slice %426 {offsets = [0, 96], sizes = [8, 32], strides = [1, 1]} : vector<8x128xf32> to vector<8x32xf32>
    %437 = math.tanh %436 : vector<8x32xf32>
    %438 = arith.mulf %434, %411 : vector<8x32xf32>
    %439 = arith.mulf %433, %437 : vector<8x32xf32>
    %440 = arith.addf %438, %439 : vector<8x32xf32>
    %441 = math.tanh %440 : vector<8x32xf32>
    %442 = arith.mulf %435, %441 : vector<8x32xf32>
    %443 = arith.truncf %442 : vector<8x32xf32> to vector<8x32xbf16>
    %cst_118 = arith.constant dense<0.000000e+00> : vector<8x128xf32>
    %444 = tpu.matmul %443, %12, %cst_118 {dimension_numbers = #tpu.dot_dimension_numbers<[1], [0], [0], [1], [0, 0, 1, 1], [], []>} : vector<8x32xbf16>, vector<32x128xbf16>, vector<8x128xf32> -> vector<8x128xf32>
    %445 = vector.broadcast %13 : vector<1x128xf32> to vector<8x128xf32>
    %446 = arith.addf %444, %445 : vector<8x128xf32>
    %447 = arith.index_cast %c14_i32 : i32 to index
    %c0_119 = arith.constant 0 : index
    %c0_120 = arith.constant 0 : index
    %448 = vector.load %arg13[%447, %c0_119, %c0_120] : memref<16x8x128xf32, #tpu.memory_space<vmem>>, vector<1x8x128xf32>
    %449 = vector.shape_cast %448 : vector<1x8x128xf32> to vector<8x128xf32>
    %450 = vector.shape_cast %446 : vector<8x128xf32> to vector<1x8x128xf32>
    tpu.vector_store %arg13[%447, %c0_119, %c0_120], %450 {strides = array<i32>} : memref<16x8x128xf32, #tpu.memory_space<vmem>>, vector<1x8x128xf32>,
    %c15_i32 = arith.constant 15 : i32
    %451 = arith.index_cast %c15_i32 : i32 to index
    %c0_121 = arith.constant 0 : index
    %c0_122 = arith.constant 0 : index
    %452 = vector.load %arg13[%451, %c0_121, %c0_122] : memref<16x8x128xf32, #tpu.memory_space<vmem>>, vector<1x8x128xf32>
    %453 = vector.shape_cast %452 : vector<1x8x128xf32> to vector<8x128xf32>
    %cst_123 = arith.constant dense<0.000000e+00> : vector<8x128xf32>
    %454 = tpu.matmul %443, %11, %cst_123 {dimension_numbers = #tpu.dot_dimension_numbers<[1], [0], [0], [1], [0, 0, 1, 1], [], []>} : vector<8x32xbf16>, vector<32x128xbf16>, vector<8x128xf32> -> vector<8x128xf32>
    %455 = arith.addf %453, %454 : vector<8x128xf32>
    %456 = vector.extract_strided_slice %455 {offsets = [0, 0], sizes = [8, 96], strides = [1, 1]} : vector<8x128xf32> to vector<8x96xf32>
    %457 = arith.negf %456 : vector<8x96xf32>
    %458 = math.exp %457 : vector<8x96xf32>
    %cst_124 = arith.constant 1.000000e+00 : f32
    %459 = vector.broadcast %cst_124 : f32 to vector<8x96xf32>
    %460 = arith.addf %459, %458 : vector<8x96xf32>
    %461 = arith.divf %459, %460 : vector<8x96xf32>
    %462 = vector.extract_strided_slice %461 {offsets = [0, 0], sizes = [8, 32], strides = [1, 1]} : vector<8x96xf32> to vector<8x32xf32>
    %463 = vector.extract_strided_slice %461 {offsets = [0, 32], sizes = [8, 32], strides = [1, 1]} : vector<8x96xf32> to vector<8x32xf32>
    %464 = vector.extract_strided_slice %461 {offsets = [0, 64], sizes = [8, 32], strides = [1, 1]} : vector<8x96xf32> to vector<8x32xf32>
    %465 = vector.extract_strided_slice %455 {offsets = [0, 96], sizes = [8, 32], strides = [1, 1]} : vector<8x128xf32> to vector<8x32xf32>
    %466 = math.tanh %465 : vector<8x32xf32>
    %467 = arith.mulf %463, %440 : vector<8x32xf32>
    %468 = arith.mulf %462, %466 : vector<8x32xf32>
    %469 = arith.addf %467, %468 : vector<8x32xf32>
    %470 = math.tanh %469 : vector<8x32xf32>
    %471 = arith.mulf %464, %470 : vector<8x32xf32>
    %472 = arith.truncf %471 : vector<8x32xf32> to vector<8x32xbf16>
    %cst_125 = arith.constant dense<0.000000e+00> : vector<8x128xf32>
    %473 = tpu.matmul %472, %12, %cst_125 {dimension_numbers = #tpu.dot_dimension_numbers<[1], [0], [0], [1], [0, 0, 1, 1], [], []>} : vector<8x32xbf16>, vector<32x128xbf16>, vector<8x128xf32> -> vector<8x128xf32>
    %474 = vector.broadcast %13 : vector<1x128xf32> to vector<8x128xf32>
    %475 = arith.addf %473, %474 : vector<8x128xf32>
    %476 = arith.index_cast %c15_i32 : i32 to index
    %c0_126 = arith.constant 0 : index
    %c0_127 = arith.constant 0 : index
    %477 = vector.load %arg13[%476, %c0_126, %c0_127] : memref<16x8x128xf32, #tpu.memory_space<vmem>>, vector<1x8x128xf32>
    %478 = vector.shape_cast %477 : vector<1x8x128xf32> to vector<8x128xf32>
    %479 = vector.shape_cast %475 : vector<8x128xf32> to vector<1x8x128xf32>
    tpu.vector_store %arg13[%476, %c0_126, %c0_127], %479 {strides = array<i32>} : memref<16x8x128xf32, #tpu.memory_space<vmem>>, vector<1x8x128xf32>,
    %c16_i32 = arith.constant 16 : i32
    %c0_128 = arith.constant 0 : index
    %c0_129 = arith.constant 0 : index
    %480 = vector.load %arg6[%c0_128, %c0_129] : memref<32x128xbf16, #tpu.memory_space<vmem>>, vector<32x128xbf16>
    %cst_130 = arith.constant 0.000000e+00 : bf16
    %481 = vector.broadcast %cst_130 : bf16 to vector<8x32xbf16>
    %cst_131 = arith.constant 0.000000e+00 : f32
    %482 = vector.broadcast %cst_131 : f32 to vector<8x32xf32>
    %c0_i32_132 = arith.constant 0 : i32
    %483 = arith.index_cast %c0_i32_132 : i32 to index
    %c0_133 = arith.constant 0 : index
    %c0_134 = arith.constant 0 : index
    %484 = vector.load %arg13[%483, %c0_133, %c0_134] : memref<16x8x128xf32, #tpu.memory_space<vmem>>, vector<1x8x128xf32>
    %485 = vector.shape_cast %484 : vector<1x8x128xf32> to vector<8x128xf32>
    %cst_135 = arith.constant dense<0.000000e+00> : vector<8x128xf32>
    %486 = tpu.matmul %481, %480, %cst_135 {dimension_numbers = #tpu.dot_dimension_numbers<[1], [0], [0], [1], [0, 0, 1, 1], [], []>} : vector<8x32xbf16>, vector<32x128xbf16>, vector<8x128xf32> -> vector<8x128xf32>
    %487 = arith.addf %485, %486 : vector<8x128xf32>
    %488 = vector.extract_strided_slice %487 {offsets = [0, 0], sizes = [8, 96], strides = [1, 1]} : vector<8x128xf32> to vector<8x96xf32>
    %489 = arith.negf %488 : vector<8x96xf32>
    %490 = math.exp %489 : vector<8x96xf32>
    %cst_136 = arith.constant 1.000000e+00 : f32
    %491 = vector.broadcast %cst_136 : f32 to vector<8x96xf32>
    %492 = arith.addf %491, %490 : vector<8x96xf32>
    %493 = arith.divf %491, %492 : vector<8x96xf32>
    %494 = vector.extract_strided_slice %493 {offsets = [0, 0], sizes = [8, 32], strides = [1, 1]} : vector<8x96xf32> to vector<8x32xf32>
    %495 = vector.extract_strided_slice %493 {offsets = [0, 32], sizes = [8, 32], strides = [1, 1]} : vector<8x96xf32> to vector<8x32xf32>
    %496 = vector.extract_strided_slice %493 {offsets = [0, 64], sizes = [8, 32], strides = [1, 1]} : vector<8x96xf32> to vector<8x32xf32>
    %497 = vector.extract_strided_slice %487 {offsets = [0, 96], sizes = [8, 32], strides = [1, 1]} : vector<8x128xf32> to vector<8x32xf32>
    %498 = math.tanh %497 : vector<8x32xf32>
    %499 = arith.mulf %495, %482 : vector<8x32xf32>
    %500 = arith.mulf %494, %498 : vector<8x32xf32>
    %501 = arith.addf %499, %500 : vector<8x32xf32>
    %502 = math.tanh %501 : vector<8x32xf32>
    %503 = arith.mulf %496, %502 : vector<8x32xf32>
    %504 = arith.truncf %503 : vector<8x32xf32> to vector<8x32xbf16>
    %c1_i32_137 = arith.constant 1 : i32
    %505 = arith.index_cast %c1_i32_137 : i32 to index
    %c0_138 = arith.constant 0 : index
    %c0_139 = arith.constant 0 : index
    %506 = vector.load %arg13[%505, %c0_138, %c0_139] : memref<16x8x128xf32, #tpu.memory_space<vmem>>, vector<1x8x128xf32>
    %507 = vector.shape_cast %506 : vector<1x8x128xf32> to vector<8x128xf32>
    %cst_140 = arith.constant dense<0.000000e+00> : vector<8x128xf32>
    %508 = tpu.matmul %504, %480, %cst_140 {dimension_numbers = #tpu.dot_dimension_numbers<[1], [0], [0], [1], [0, 0, 1, 1], [], []>} : vector<8x32xbf16>, vector<32x128xbf16>, vector<8x128xf32> -> vector<8x128xf32>
    %509 = arith.addf %507, %508 : vector<8x128xf32>
    %510 = vector.extract_strided_slice %509 {offsets = [0, 0], sizes = [8, 96], strides = [1, 1]} : vector<8x128xf32> to vector<8x96xf32>
    %511 = arith.negf %510 : vector<8x96xf32>
    %512 = math.exp %511 : vector<8x96xf32>
    %cst_141 = arith.constant 1.000000e+00 : f32
    %513 = vector.broadcast %cst_141 : f32 to vector<8x96xf32>
    %514 = arith.addf %513, %512 : vector<8x96xf32>
    %515 = arith.divf %513, %514 : vector<8x96xf32>
    %516 = vector.extract_strided_slice %515 {offsets = [0, 0], sizes = [8, 32], strides = [1, 1]} : vector<8x96xf32> to vector<8x32xf32>
    %517 = vector.extract_strided_slice %515 {offsets = [0, 32], sizes = [8, 32], strides = [1, 1]} : vector<8x96xf32> to vector<8x32xf32>
    %518 = vector.extract_strided_slice %515 {offsets = [0, 64], sizes = [8, 32], strides = [1, 1]} : vector<8x96xf32> to vector<8x32xf32>
    %519 = vector.extract_strided_slice %509 {offsets = [0, 96], sizes = [8, 32], strides = [1, 1]} : vector<8x128xf32> to vector<8x32xf32>
    %520 = math.tanh %519 : vector<8x32xf32>
    %521 = arith.mulf %517, %501 : vector<8x32xf32>
    %522 = arith.mulf %516, %520 : vector<8x32xf32>
    %523 = arith.addf %521, %522 : vector<8x32xf32>
    %524 = math.tanh %523 : vector<8x32xf32>
    %525 = arith.mulf %518, %524 : vector<8x32xf32>
    %526 = arith.truncf %525 : vector<8x32xf32> to vector<8x32xbf16>
    %c2_i32_142 = arith.constant 2 : i32
    %527 = arith.index_cast %c2_i32_142 : i32 to index
    %c0_143 = arith.constant 0 : index
    %c0_144 = arith.constant 0 : index
    %528 = vector.load %arg13[%527, %c0_143, %c0_144] : memref<16x8x128xf32, #tpu.memory_space<vmem>>, vector<1x8x128xf32>
    %529 = vector.shape_cast %528 : vector<1x8x128xf32> to vector<8x128xf32>
    %cst_145 = arith.constant dense<0.000000e+00> : vector<8x128xf32>
    %530 = tpu.matmul %526, %480, %cst_145 {dimension_numbers = #tpu.dot_dimension_numbers<[1], [0], [0], [1], [0, 0, 1, 1], [], []>} : vector<8x32xbf16>, vector<32x128xbf16>, vector<8x128xf32> -> vector<8x128xf32>
    %531 = arith.addf %529, %530 : vector<8x128xf32>
    %532 = vector.extract_strided_slice %531 {offsets = [0, 0], sizes = [8, 96], strides = [1, 1]} : vector<8x128xf32> to vector<8x96xf32>
    %533 = arith.negf %532 : vector<8x96xf32>
    %534 = math.exp %533 : vector<8x96xf32>
    %cst_146 = arith.constant 1.000000e+00 : f32
    %535 = vector.broadcast %cst_146 : f32 to vector<8x96xf32>
    %536 = arith.addf %535, %534 : vector<8x96xf32>
    %537 = arith.divf %535, %536 : vector<8x96xf32>
    %538 = vector.extract_strided_slice %537 {offsets = [0, 0], sizes = [8, 32], strides = [1, 1]} : vector<8x96xf32> to vector<8x32xf32>
    %539 = vector.extract_strided_slice %537 {offsets = [0, 32], sizes = [8, 32], strides = [1, 1]} : vector<8x96xf32> to vector<8x32xf32>
    %540 = vector.extract_strided_slice %537 {offsets = [0, 64], sizes = [8, 32], strides = [1, 1]} : vector<8x96xf32> to vector<8x32xf32>
    %541 = vector.extract_strided_slice %531 {offsets = [0, 96], sizes = [8, 32], strides = [1, 1]} : vector<8x128xf32> to vector<8x32xf32>
    %542 = math.tanh %541 : vector<8x32xf32>
    %543 = arith.mulf %539, %523 : vector<8x32xf32>
    %544 = arith.mulf %538, %542 : vector<8x32xf32>
    %545 = arith.addf %543, %544 : vector<8x32xf32>
    %546 = math.tanh %545 : vector<8x32xf32>
    %547 = arith.mulf %540, %546 : vector<8x32xf32>
    %548 = arith.truncf %547 : vector<8x32xf32> to vector<8x32xbf16>
    %c3_i32_147 = arith.constant 3 : i32
    %549 = arith.index_cast %c3_i32_147 : i32 to index
    %c0_148 = arith.constant 0 : index
    %c0_149 = arith.constant 0 : index
    %550 = vector.load %arg13[%549, %c0_148, %c0_149] : memref<16x8x128xf32, #tpu.memory_space<vmem>>, vector<1x8x128xf32>
    %551 = vector.shape_cast %550 : vector<1x8x128xf32> to vector<8x128xf32>
    %cst_150 = arith.constant dense<0.000000e+00> : vector<8x128xf32>
    %552 = tpu.matmul %548, %480, %cst_150 {dimension_numbers = #tpu.dot_dimension_numbers<[1], [0], [0], [1], [0, 0, 1, 1], [], []>} : vector<8x32xbf16>, vector<32x128xbf16>, vector<8x128xf32> -> vector<8x128xf32>
    %553 = arith.addf %551, %552 : vector<8x128xf32>
    %554 = vector.extract_strided_slice %553 {offsets = [0, 0], sizes = [8, 96], strides = [1, 1]} : vector<8x128xf32> to vector<8x96xf32>
    %555 = arith.negf %554 : vector<8x96xf32>
    %556 = math.exp %555 : vector<8x96xf32>
    %cst_151 = arith.constant 1.000000e+00 : f32
    %557 = vector.broadcast %cst_151 : f32 to vector<8x96xf32>
    %558 = arith.addf %557, %556 : vector<8x96xf32>
    %559 = arith.divf %557, %558 : vector<8x96xf32>
    %560 = vector.extract_strided_slice %559 {offsets = [0, 0], sizes = [8, 32], strides = [1, 1]} : vector<8x96xf32> to vector<8x32xf32>
    %561 = vector.extract_strided_slice %559 {offsets = [0, 32], sizes = [8, 32], strides = [1, 1]} : vector<8x96xf32> to vector<8x32xf32>
    %562 = vector.extract_strided_slice %559 {offsets = [0, 64], sizes = [8, 32], strides = [1, 1]} : vector<8x96xf32> to vector<8x32xf32>
    %563 = vector.extract_strided_slice %553 {offsets = [0, 96], sizes = [8, 32], strides = [1, 1]} : vector<8x128xf32> to vector<8x32xf32>
    %564 = math.tanh %563 : vector<8x32xf32>
    %565 = arith.mulf %561, %545 : vector<8x32xf32>
    %566 = arith.mulf %560, %564 : vector<8x32xf32>
    %567 = arith.addf %565, %566 : vector<8x32xf32>
    %568 = math.tanh %567 : vector<8x32xf32>
    %569 = arith.mulf %562, %568 : vector<8x32xf32>
    %570 = arith.truncf %569 : vector<8x32xf32> to vector<8x32xbf16>
    %c4_i32_152 = arith.constant 4 : i32
    %571 = arith.index_cast %c4_i32_152 : i32 to index
    %c0_153 = arith.constant 0 : index
    %c0_154 = arith.constant 0 : index
    %572 = vector.load %arg13[%571, %c0_153, %c0_154] : memref<16x8x128xf32, #tpu.memory_space<vmem>>, vector<1x8x128xf32>
    %573 = vector.shape_cast %572 : vector<1x8x128xf32> to vector<8x128xf32>
    %cst_155 = arith.constant dense<0.000000e+00> : vector<8x128xf32>
    %574 = tpu.matmul %570, %480, %cst_155 {dimension_numbers = #tpu.dot_dimension_numbers<[1], [0], [0], [1], [0, 0, 1, 1], [], []>} : vector<8x32xbf16>, vector<32x128xbf16>, vector<8x128xf32> -> vector<8x128xf32>
    %575 = arith.addf %573, %574 : vector<8x128xf32>
    %576 = vector.extract_strided_slice %575 {offsets = [0, 0], sizes = [8, 96], strides = [1, 1]} : vector<8x128xf32> to vector<8x96xf32>
    %577 = arith.negf %576 : vector<8x96xf32>
    %578 = math.exp %577 : vector<8x96xf32>
    %cst_156 = arith.constant 1.000000e+00 : f32
    %579 = vector.broadcast %cst_156 : f32 to vector<8x96xf32>
    %580 = arith.addf %579, %578 : vector<8x96xf32>
    %581 = arith.divf %579, %580 : vector<8x96xf32>
    %582 = vector.extract_strided_slice %581 {offsets = [0, 0], sizes = [8, 32], strides = [1, 1]} : vector<8x96xf32> to vector<8x32xf32>
    %583 = vector.extract_strided_slice %581 {offsets = [0, 32], sizes = [8, 32], strides = [1, 1]} : vector<8x96xf32> to vector<8x32xf32>
    %584 = vector.extract_strided_slice %581 {offsets = [0, 64], sizes = [8, 32], strides = [1, 1]} : vector<8x96xf32> to vector<8x32xf32>
    %585 = vector.extract_strided_slice %575 {offsets = [0, 96], sizes = [8, 32], strides = [1, 1]} : vector<8x128xf32> to vector<8x32xf32>
    %586 = math.tanh %585 : vector<8x32xf32>
    %587 = arith.mulf %583, %567 : vector<8x32xf32>
    %588 = arith.mulf %582, %586 : vector<8x32xf32>
    %589 = arith.addf %587, %588 : vector<8x32xf32>
    %590 = math.tanh %589 : vector<8x32xf32>
    %591 = arith.mulf %584, %590 : vector<8x32xf32>
    %592 = arith.truncf %591 : vector<8x32xf32> to vector<8x32xbf16>
    %c5_i32_157 = arith.constant 5 : i32
    %593 = arith.index_cast %c5_i32_157 : i32 to index
    %c0_158 = arith.constant 0 : index
    %c0_159 = arith.constant 0 : index
    %594 = vector.load %arg13[%593, %c0_158, %c0_159] : memref<16x8x128xf32, #tpu.memory_space<vmem>>, vector<1x8x128xf32>
    %595 = vector.shape_cast %594 : vector<1x8x128xf32> to vector<8x128xf32>
    %cst_160 = arith.constant dense<0.000000e+00> : vector<8x128xf32>
    %596 = tpu.matmul %592, %480, %cst_160 {dimension_numbers = #tpu.dot_dimension_numbers<[1], [0], [0], [1], [0, 0, 1, 1], [], []>} : vector<8x32xbf16>, vector<32x128xbf16>, vector<8x128xf32> -> vector<8x128xf32>
    %597 = arith.addf %595, %596 : vector<8x128xf32>
    %598 = vector.extract_strided_slice %597 {offsets = [0, 0], sizes = [8, 96], strides = [1, 1]} : vector<8x128xf32> to vector<8x96xf32>
    %599 = arith.negf %598 : vector<8x96xf32>
    %600 = math.exp %599 : vector<8x96xf32>
    %cst_161 = arith.constant 1.000000e+00 : f32
    %601 = vector.broadcast %cst_161 : f32 to vector<8x96xf32>
    %602 = arith.addf %601, %600 : vector<8x96xf32>
    %603 = arith.divf %601, %602 : vector<8x96xf32>
    %604 = vector.extract_strided_slice %603 {offsets = [0, 0], sizes = [8, 32], strides = [1, 1]} : vector<8x96xf32> to vector<8x32xf32>
    %605 = vector.extract_strided_slice %603 {offsets = [0, 32], sizes = [8, 32], strides = [1, 1]} : vector<8x96xf32> to vector<8x32xf32>
    %606 = vector.extract_strided_slice %603 {offsets = [0, 64], sizes = [8, 32], strides = [1, 1]} : vector<8x96xf32> to vector<8x32xf32>
    %607 = vector.extract_strided_slice %597 {offsets = [0, 96], sizes = [8, 32], strides = [1, 1]} : vector<8x128xf32> to vector<8x32xf32>
    %608 = math.tanh %607 : vector<8x32xf32>
    %609 = arith.mulf %605, %589 : vector<8x32xf32>
    %610 = arith.mulf %604, %608 : vector<8x32xf32>
    %611 = arith.addf %609, %610 : vector<8x32xf32>
    %612 = math.tanh %611 : vector<8x32xf32>
    %613 = arith.mulf %606, %612 : vector<8x32xf32>
    %614 = arith.truncf %613 : vector<8x32xf32> to vector<8x32xbf16>
    %c6_i32_162 = arith.constant 6 : i32
    %615 = arith.index_cast %c6_i32_162 : i32 to index
    %c0_163 = arith.constant 0 : index
    %c0_164 = arith.constant 0 : index
    %616 = vector.load %arg13[%615, %c0_163, %c0_164] : memref<16x8x128xf32, #tpu.memory_space<vmem>>, vector<1x8x128xf32>
    %617 = vector.shape_cast %616 : vector<1x8x128xf32> to vector<8x128xf32>
    %cst_165 = arith.constant dense<0.000000e+00> : vector<8x128xf32>
    %618 = tpu.matmul %614, %480, %cst_165 {dimension_numbers = #tpu.dot_dimension_numbers<[1], [0], [0], [1], [0, 0, 1, 1], [], []>} : vector<8x32xbf16>, vector<32x128xbf16>, vector<8x128xf32> -> vector<8x128xf32>
    %619 = arith.addf %617, %618 : vector<8x128xf32>
    %620 = vector.extract_strided_slice %619 {offsets = [0, 0], sizes = [8, 96], strides = [1, 1]} : vector<8x128xf32> to vector<8x96xf32>
    %621 = arith.negf %620 : vector<8x96xf32>
    %622 = math.exp %621 : vector<8x96xf32>
    %cst_166 = arith.constant 1.000000e+00 : f32
    %623 = vector.broadcast %cst_166 : f32 to vector<8x96xf32>
    %624 = arith.addf %623, %622 : vector<8x96xf32>
    %625 = arith.divf %623, %624 : vector<8x96xf32>
    %626 = vector.extract_strided_slice %625 {offsets = [0, 0], sizes = [8, 32], strides = [1, 1]} : vector<8x96xf32> to vector<8x32xf32>
    %627 = vector.extract_strided_slice %625 {offsets = [0, 32], sizes = [8, 32], strides = [1, 1]} : vector<8x96xf32> to vector<8x32xf32>
    %628 = vector.extract_strided_slice %625 {offsets = [0, 64], sizes = [8, 32], strides = [1, 1]} : vector<8x96xf32> to vector<8x32xf32>
    %629 = vector.extract_strided_slice %619 {offsets = [0, 96], sizes = [8, 32], strides = [1, 1]} : vector<8x128xf32> to vector<8x32xf32>
    %630 = math.tanh %629 : vector<8x32xf32>
    %631 = arith.mulf %627, %611 : vector<8x32xf32>
    %632 = arith.mulf %626, %630 : vector<8x32xf32>
    %633 = arith.addf %631, %632 : vector<8x32xf32>
    %634 = math.tanh %633 : vector<8x32xf32>
    %635 = arith.mulf %628, %634 : vector<8x32xf32>
    %636 = arith.truncf %635 : vector<8x32xf32> to vector<8x32xbf16>
    %c7_i32_167 = arith.constant 7 : i32
    %637 = arith.index_cast %c7_i32_167 : i32 to index
    %c0_168 = arith.constant 0 : index
    %c0_169 = arith.constant 0 : index
    %638 = vector.load %arg13[%637, %c0_168, %c0_169] : memref<16x8x128xf32, #tpu.memory_space<vmem>>, vector<1x8x128xf32>
    %639 = vector.shape_cast %638 : vector<1x8x128xf32> to vector<8x128xf32>
    %cst_170 = arith.constant dense<0.000000e+00> : vector<8x128xf32>
    %640 = tpu.matmul %636, %480, %cst_170 {dimension_numbers = #tpu.dot_dimension_numbers<[1], [0], [0], [1], [0, 0, 1, 1], [], []>} : vector<8x32xbf16>, vector<32x128xbf16>, vector<8x128xf32> -> vector<8x128xf32>
    %641 = arith.addf %639, %640 : vector<8x128xf32>
    %642 = vector.extract_strided_slice %641 {offsets = [0, 0], sizes = [8, 96], strides = [1, 1]} : vector<8x128xf32> to vector<8x96xf32>
    %643 = arith.negf %642 : vector<8x96xf32>
    %644 = math.exp %643 : vector<8x96xf32>
    %cst_171 = arith.constant 1.000000e+00 : f32
    %645 = vector.broadcast %cst_171 : f32 to vector<8x96xf32>
    %646 = arith.addf %645, %644 : vector<8x96xf32>
    %647 = arith.divf %645, %646 : vector<8x96xf32>
    %648 = vector.extract_strided_slice %647 {offsets = [0, 0], sizes = [8, 32], strides = [1, 1]} : vector<8x96xf32> to vector<8x32xf32>
    %649 = vector.extract_strided_slice %647 {offsets = [0, 32], sizes = [8, 32], strides = [1, 1]} : vector<8x96xf32> to vector<8x32xf32>
    %650 = vector.extract_strided_slice %647 {offsets = [0, 64], sizes = [8, 32], strides = [1, 1]} : vector<8x96xf32> to vector<8x32xf32>
    %651 = vector.extract_strided_slice %641 {offsets = [0, 96], sizes = [8, 32], strides = [1, 1]} : vector<8x128xf32> to vector<8x32xf32>
    %652 = math.tanh %651 : vector<8x32xf32>
    %653 = arith.mulf %649, %633 : vector<8x32xf32>
    %654 = arith.mulf %648, %652 : vector<8x32xf32>
    %655 = arith.addf %653, %654 : vector<8x32xf32>
    %656 = math.tanh %655 : vector<8x32xf32>
    %657 = arith.mulf %650, %656 : vector<8x32xf32>
    %658 = arith.truncf %657 : vector<8x32xf32> to vector<8x32xbf16>
    %c8_i32_172 = arith.constant 8 : i32
    %659 = arith.index_cast %c8_i32_172 : i32 to index
    %c0_173 = arith.constant 0 : index
    %c0_174 = arith.constant 0 : index
    %660 = vector.load %arg13[%659, %c0_173, %c0_174] : memref<16x8x128xf32, #tpu.memory_space<vmem>>, vector<1x8x128xf32>
    %661 = vector.shape_cast %660 : vector<1x8x128xf32> to vector<8x128xf32>
    %cst_175 = arith.constant dense<0.000000e+00> : vector<8x128xf32>
    %662 = tpu.matmul %658, %480, %cst_175 {dimension_numbers = #tpu.dot_dimension_numbers<[1], [0], [0], [1], [0, 0, 1, 1], [], []>} : vector<8x32xbf16>, vector<32x128xbf16>, vector<8x128xf32> -> vector<8x128xf32>
    %663 = arith.addf %661, %662 : vector<8x128xf32>
    %664 = vector.extract_strided_slice %663 {offsets = [0, 0], sizes = [8, 96], strides = [1, 1]} : vector<8x128xf32> to vector<8x96xf32>
    %665 = arith.negf %664 : vector<8x96xf32>
    %666 = math.exp %665 : vector<8x96xf32>
    %cst_176 = arith.constant 1.000000e+00 : f32
    %667 = vector.broadcast %cst_176 : f32 to vector<8x96xf32>
    %668 = arith.addf %667, %666 : vector<8x96xf32>
    %669 = arith.divf %667, %668 : vector<8x96xf32>
    %670 = vector.extract_strided_slice %669 {offsets = [0, 0], sizes = [8, 32], strides = [1, 1]} : vector<8x96xf32> to vector<8x32xf32>
    %671 = vector.extract_strided_slice %669 {offsets = [0, 32], sizes = [8, 32], strides = [1, 1]} : vector<8x96xf32> to vector<8x32xf32>
    %672 = vector.extract_strided_slice %669 {offsets = [0, 64], sizes = [8, 32], strides = [1, 1]} : vector<8x96xf32> to vector<8x32xf32>
    %673 = vector.extract_strided_slice %663 {offsets = [0, 96], sizes = [8, 32], strides = [1, 1]} : vector<8x128xf32> to vector<8x32xf32>
    %674 = math.tanh %673 : vector<8x32xf32>
    %675 = arith.mulf %671, %655 : vector<8x32xf32>
    %676 = arith.mulf %670, %674 : vector<8x32xf32>
    %677 = arith.addf %675, %676 : vector<8x32xf32>
    %678 = math.tanh %677 : vector<8x32xf32>
    %679 = arith.mulf %672, %678 : vector<8x32xf32>
    %680 = arith.truncf %679 : vector<8x32xf32> to vector<8x32xbf16>
    %c9_i32_177 = arith.constant 9 : i32
    %681 = arith.index_cast %c9_i32_177 : i32 to index
    %c0_178 = arith.constant 0 : index
    %c0_179 = arith.constant 0 : index
    %682 = vector.load %arg13[%681, %c0_178, %c0_179] : memref<16x8x128xf32, #tpu.memory_space<vmem>>, vector<1x8x128xf32>
    %683 = vector.shape_cast %682 : vector<1x8x128xf32> to vector<8x128xf32>
    %cst_180 = arith.constant dense<0.000000e+00> : vector<8x128xf32>
    %684 = tpu.matmul %680, %480, %cst_180 {dimension_numbers = #tpu.dot_dimension_numbers<[1], [0], [0], [1], [0, 0, 1, 1], [], []>} : vector<8x32xbf16>, vector<32x128xbf16>, vector<8x128xf32> -> vector<8x128xf32>
    %685 = arith.addf %683, %684 : vector<8x128xf32>
    %686 = vector.extract_strided_slice %685 {offsets = [0, 0], sizes = [8, 96], strides = [1, 1]} : vector<8x128xf32> to vector<8x96xf32>
    %687 = arith.negf %686 : vector<8x96xf32>
    %688 = math.exp %687 : vector<8x96xf32>
    %cst_181 = arith.constant 1.000000e+00 : f32
    %689 = vector.broadcast %cst_181 : f32 to vector<8x96xf32>
    %690 = arith.addf %689, %688 : vector<8x96xf32>
    %691 = arith.divf %689, %690 : vector<8x96xf32>
    %692 = vector.extract_strided_slice %691 {offsets = [0, 0], sizes = [8, 32], strides = [1, 1]} : vector<8x96xf32> to vector<8x32xf32>
    %693 = vector.extract_strided_slice %691 {offsets = [0, 32], sizes = [8, 32], strides = [1, 1]} : vector<8x96xf32> to vector<8x32xf32>
    %694 = vector.extract_strided_slice %691 {offsets = [0, 64], sizes = [8, 32], strides = [1, 1]} : vector<8x96xf32> to vector<8x32xf32>
    %695 = vector.extract_strided_slice %685 {offsets = [0, 96], sizes = [8, 32], strides = [1, 1]} : vector<8x128xf32> to vector<8x32xf32>
    %696 = math.tanh %695 : vector<8x32xf32>
    %697 = arith.mulf %693, %677 : vector<8x32xf32>
    %698 = arith.mulf %692, %696 : vector<8x32xf32>
    %699 = arith.addf %697, %698 : vector<8x32xf32>
    %700 = math.tanh %699 : vector<8x32xf32>
    %701 = arith.mulf %694, %700 : vector<8x32xf32>
    %702 = arith.truncf %701 : vector<8x32xf32> to vector<8x32xbf16>
    %c10_i32_182 = arith.constant 10 : i32
    %703 = arith.index_cast %c10_i32_182 : i32 to index
    %c0_183 = arith.constant 0 : index
    %c0_184 = arith.constant 0 : index
    %704 = vector.load %arg13[%703, %c0_183, %c0_184] : memref<16x8x128xf32, #tpu.memory_space<vmem>>, vector<1x8x128xf32>
    %705 = vector.shape_cast %704 : vector<1x8x128xf32> to vector<8x128xf32>
    %cst_185 = arith.constant dense<0.000000e+00> : vector<8x128xf32>
    %706 = tpu.matmul %702, %480, %cst_185 {dimension_numbers = #tpu.dot_dimension_numbers<[1], [0], [0], [1], [0, 0, 1, 1], [], []>} : vector<8x32xbf16>, vector<32x128xbf16>, vector<8x128xf32> -> vector<8x128xf32>
    %707 = arith.addf %705, %706 : vector<8x128xf32>
    %708 = vector.extract_strided_slice %707 {offsets = [0, 0], sizes = [8, 96], strides = [1, 1]} : vector<8x128xf32> to vector<8x96xf32>
    %709 = arith.negf %708 : vector<8x96xf32>
    %710 = math.exp %709 : vector<8x96xf32>
    %cst_186 = arith.constant 1.000000e+00 : f32
    %711 = vector.broadcast %cst_186 : f32 to vector<8x96xf32>
    %712 = arith.addf %711, %710 : vector<8x96xf32>
    %713 = arith.divf %711, %712 : vector<8x96xf32>
    %714 = vector.extract_strided_slice %713 {offsets = [0, 0], sizes = [8, 32], strides = [1, 1]} : vector<8x96xf32> to vector<8x32xf32>
    %715 = vector.extract_strided_slice %713 {offsets = [0, 32], sizes = [8, 32], strides = [1, 1]} : vector<8x96xf32> to vector<8x32xf32>
    %716 = vector.extract_strided_slice %713 {offsets = [0, 64], sizes = [8, 32], strides = [1, 1]} : vector<8x96xf32> to vector<8x32xf32>
    %717 = vector.extract_strided_slice %707 {offsets = [0, 96], sizes = [8, 32], strides = [1, 1]} : vector<8x128xf32> to vector<8x32xf32>
    %718 = math.tanh %717 : vector<8x32xf32>
    %719 = arith.mulf %715, %699 : vector<8x32xf32>
    %720 = arith.mulf %714, %718 : vector<8x32xf32>
    %721 = arith.addf %719, %720 : vector<8x32xf32>
    %722 = math.tanh %721 : vector<8x32xf32>
    %723 = arith.mulf %716, %722 : vector<8x32xf32>
    %724 = arith.truncf %723 : vector<8x32xf32> to vector<8x32xbf16>
    %c11_i32_187 = arith.constant 11 : i32
    %725 = arith.index_cast %c11_i32_187 : i32 to index
    %c0_188 = arith.constant 0 : index
    %c0_189 = arith.constant 0 : index
    %726 = vector.load %arg13[%725, %c0_188, %c0_189] : memref<16x8x128xf32, #tpu.memory_space<vmem>>, vector<1x8x128xf32>
    %727 = vector.shape_cast %726 : vector<1x8x128xf32> to vector<8x128xf32>
    %cst_190 = arith.constant dense<0.000000e+00> : vector<8x128xf32>
    %728 = tpu.matmul %724, %480, %cst_190 {dimension_numbers = #tpu.dot_dimension_numbers<[1], [0], [0], [1], [0, 0, 1, 1], [], []>} : vector<8x32xbf16>, vector<32x128xbf16>, vector<8x128xf32> -> vector<8x128xf32>
    %729 = arith.addf %727, %728 : vector<8x128xf32>
    %730 = vector.extract_strided_slice %729 {offsets = [0, 0], sizes = [8, 96], strides = [1, 1]} : vector<8x128xf32> to vector<8x96xf32>
    %731 = arith.negf %730 : vector<8x96xf32>
    %732 = math.exp %731 : vector<8x96xf32>
    %cst_191 = arith.constant 1.000000e+00 : f32
    %733 = vector.broadcast %cst_191 : f32 to vector<8x96xf32>
    %734 = arith.addf %733, %732 : vector<8x96xf32>
    %735 = arith.divf %733, %734 : vector<8x96xf32>
    %736 = vector.extract_strided_slice %735 {offsets = [0, 0], sizes = [8, 32], strides = [1, 1]} : vector<8x96xf32> to vector<8x32xf32>
    %737 = vector.extract_strided_slice %735 {offsets = [0, 32], sizes = [8, 32], strides = [1, 1]} : vector<8x96xf32> to vector<8x32xf32>
    %738 = vector.extract_strided_slice %735 {offsets = [0, 64], sizes = [8, 32], strides = [1, 1]} : vector<8x96xf32> to vector<8x32xf32>
    %739 = vector.extract_strided_slice %729 {offsets = [0, 96], sizes = [8, 32], strides = [1, 1]} : vector<8x128xf32> to vector<8x32xf32>
    %740 = math.tanh %739 : vector<8x32xf32>
    %741 = arith.mulf %737, %721 : vector<8x32xf32>
    %742 = arith.mulf %736, %740 : vector<8x32xf32>
    %743 = arith.addf %741, %742 : vector<8x32xf32>
    %744 = math.tanh %743 : vector<8x32xf32>
    %745 = arith.mulf %738, %744 : vector<8x32xf32>
    %746 = arith.truncf %745 : vector<8x32xf32> to vector<8x32xbf16>
    %c12_i32_192 = arith.constant 12 : i32
    %747 = arith.index_cast %c12_i32_192 : i32 to index
    %c0_193 = arith.constant 0 : index
    %c0_194 = arith.constant 0 : index
    %748 = vector.load %arg13[%747, %c0_193, %c0_194] : memref<16x8x128xf32, #tpu.memory_space<vmem>>, vector<1x8x128xf32>
    %749 = vector.shape_cast %748 : vector<1x8x128xf32> to vector<8x128xf32>
    %cst_195 = arith.constant dense<0.000000e+00> : vector<8x128xf32>
    %750 = tpu.matmul %746, %480, %cst_195 {dimension_numbers = #tpu.dot_dimension_numbers<[1], [0], [0], [1], [0, 0, 1, 1], [], []>} : vector<8x32xbf16>, vector<32x128xbf16>, vector<8x128xf32> -> vector<8x128xf32>
    %751 = arith.addf %749, %750 : vector<8x128xf32>
    %752 = vector.extract_strided_slice %751 {offsets = [0, 0], sizes = [8, 96], strides = [1, 1]} : vector<8x128xf32> to vector<8x96xf32>
    %753 = arith.negf %752 : vector<8x96xf32>
    %754 = math.exp %753 : vector<8x96xf32>
    %cst_196 = arith.constant 1.000000e+00 : f32
    %755 = vector.broadcast %cst_196 : f32 to vector<8x96xf32>
    %756 = arith.addf %755, %754 : vector<8x96xf32>
    %757 = arith.divf %755, %756 : vector<8x96xf32>
    %758 = vector.extract_strided_slice %757 {offsets = [0, 0], sizes = [8, 32], strides = [1, 1]} : vector<8x96xf32> to vector<8x32xf32>
    %759 = vector.extract_strided_slice %757 {offsets = [0, 32], sizes = [8, 32], strides = [1, 1]} : vector<8x96xf32> to vector<8x32xf32>
    %760 = vector.extract_strided_slice %757 {offsets = [0, 64], sizes = [8, 32], strides = [1, 1]} : vector<8x96xf32> to vector<8x32xf32>
    %761 = vector.extract_strided_slice %751 {offsets = [0, 96], sizes = [8, 32], strides = [1, 1]} : vector<8x128xf32> to vector<8x32xf32>
    %762 = math.tanh %761 : vector<8x32xf32>
    %763 = arith.mulf %759, %743 : vector<8x32xf32>
    %764 = arith.mulf %758, %762 : vector<8x32xf32>
    %765 = arith.addf %763, %764 : vector<8x32xf32>
    %766 = math.tanh %765 : vector<8x32xf32>
    %767 = arith.mulf %760, %766 : vector<8x32xf32>
    %768 = arith.truncf %767 : vector<8x32xf32> to vector<8x32xbf16>
    %c13_i32_197 = arith.constant 13 : i32
    %769 = arith.index_cast %c13_i32_197 : i32 to index
    %c0_198 = arith.constant 0 : index
    %c0_199 = arith.constant 0 : index
    %770 = vector.load %arg13[%769, %c0_198, %c0_199] : memref<16x8x128xf32, #tpu.memory_space<vmem>>, vector<1x8x128xf32>
    %771 = vector.shape_cast %770 : vector<1x8x128xf32> to vector<8x128xf32>
    %cst_200 = arith.constant dense<0.000000e+00> : vector<8x128xf32>
    %772 = tpu.matmul %768, %480, %cst_200 {dimension_numbers = #tpu.dot_dimension_numbers<[1], [0], [0], [1], [0, 0, 1, 1], [], []>} : vector<8x32xbf16>, vector<32x128xbf16>, vector<8x128xf32> -> vector<8x128xf32>
    %773 = arith.addf %771, %772 : vector<8x128xf32>
    %774 = vector.extract_strided_slice %773 {offsets = [0, 0], sizes = [8, 96], strides = [1, 1]} : vector<8x128xf32> to vector<8x96xf32>
    %775 = arith.negf %774 : vector<8x96xf32>
    %776 = math.exp %775 : vector<8x96xf32>
    %cst_201 = arith.constant 1.000000e+00 : f32
    %777 = vector.broadcast %cst_201 : f32 to vector<8x96xf32>
    %778 = arith.addf %777, %776 : vector<8x96xf32>
    %779 = arith.divf %777, %778 : vector<8x96xf32>
    %780 = vector.extract_strided_slice %779 {offsets = [0, 0], sizes = [8, 32], strides = [1, 1]} : vector<8x96xf32> to vector<8x32xf32>
    %781 = vector.extract_strided_slice %779 {offsets = [0, 32], sizes = [8, 32], strides = [1, 1]} : vector<8x96xf32> to vector<8x32xf32>
    %782 = vector.extract_strided_slice %779 {offsets = [0, 64], sizes = [8, 32], strides = [1, 1]} : vector<8x96xf32> to vector<8x32xf32>
    %783 = vector.extract_strided_slice %773 {offsets = [0, 96], sizes = [8, 32], strides = [1, 1]} : vector<8x128xf32> to vector<8x32xf32>
    %784 = math.tanh %783 : vector<8x32xf32>
    %785 = arith.mulf %781, %765 : vector<8x32xf32>
    %786 = arith.mulf %780, %784 : vector<8x32xf32>
    %787 = arith.addf %785, %786 : vector<8x32xf32>
    %788 = math.tanh %787 : vector<8x32xf32>
    %789 = arith.mulf %782, %788 : vector<8x32xf32>
    %790 = arith.truncf %789 : vector<8x32xf32> to vector<8x32xbf16>
    %c14_i32_202 = arith.constant 14 : i32
    %791 = arith.index_cast %c14_i32_202 : i32 to index
    %c0_203 = arith.constant 0 : index
    %c0_204 = arith.constant 0 : index
    %792 = vector.load %arg13[%791, %c0_203, %c0_204] : memref<16x8x128xf32, #tpu.memory_space<vmem>>, vector<1x8x128xf32>
    %793 = vector.shape_cast %792 : vector<1x8x128xf32> to vector<8x128xf32>
    %cst_205 = arith.constant dense<0.000000e+00> : vector<8x128xf32>
    %794 = tpu.matmul %790, %480, %cst_205 {dimension_numbers = #tpu.dot_dimension_numbers<[1], [0], [0], [1], [0, 0, 1, 1], [], []>} : vector<8x32xbf16>, vector<32x128xbf16>, vector<8x128xf32> -> vector<8x128xf32>
    %795 = arith.addf %793, %794 : vector<8x128xf32>
    %796 = vector.extract_strided_slice %795 {offsets = [0, 0], sizes = [8, 96], strides = [1, 1]} : vector<8x128xf32> to vector<8x96xf32>
    %797 = arith.negf %796 : vector<8x96xf32>
    %798 = math.exp %797 : vector<8x96xf32>
    %cst_206 = arith.constant 1.000000e+00 : f32
    %799 = vector.broadcast %cst_206 : f32 to vector<8x96xf32>
    %800 = arith.addf %799, %798 : vector<8x96xf32>
    %801 = arith.divf %799, %800 : vector<8x96xf32>
    %802 = vector.extract_strided_slice %801 {offsets = [0, 0], sizes = [8, 32], strides = [1, 1]} : vector<8x96xf32> to vector<8x32xf32>
    %803 = vector.extract_strided_slice %801 {offsets = [0, 32], sizes = [8, 32], strides = [1, 1]} : vector<8x96xf32> to vector<8x32xf32>
    %804 = vector.extract_strided_slice %801 {offsets = [0, 64], sizes = [8, 32], strides = [1, 1]} : vector<8x96xf32> to vector<8x32xf32>
    %805 = vector.extract_strided_slice %795 {offsets = [0, 96], sizes = [8, 32], strides = [1, 1]} : vector<8x128xf32> to vector<8x32xf32>
    %806 = math.tanh %805 : vector<8x32xf32>
    %807 = arith.mulf %803, %787 : vector<8x32xf32>
    %808 = arith.mulf %802, %806 : vector<8x32xf32>
    %809 = arith.addf %807, %808 : vector<8x32xf32>
    %810 = math.tanh %809 : vector<8x32xf32>
    %811 = arith.mulf %804, %810 : vector<8x32xf32>
    %812 = arith.truncf %811 : vector<8x32xf32> to vector<8x32xbf16>
    %c15_i32_207 = arith.constant 15 : i32
    %813 = arith.index_cast %c15_i32_207 : i32 to index
    %c0_208 = arith.constant 0 : index
    %c0_209 = arith.constant 0 : index
    %814 = vector.load %arg13[%813, %c0_208, %c0_209] : memref<16x8x128xf32, #tpu.memory_space<vmem>>, vector<1x8x128xf32>
    %815 = vector.shape_cast %814 : vector<1x8x128xf32> to vector<8x128xf32>
    %cst_210 = arith.constant dense<0.000000e+00> : vector<8x128xf32>
    %816 = tpu.matmul %812, %480, %cst_210 {dimension_numbers = #tpu.dot_dimension_numbers<[1], [0], [0], [1], [0, 0, 1, 1], [], []>} : vector<8x32xbf16>, vector<32x128xbf16>, vector<8x128xf32> -> vector<8x128xf32>
    %817 = arith.addf %815, %816 : vector<8x128xf32>
    %818 = vector.extract_strided_slice %817 {offsets = [0, 0], sizes = [8, 96], strides = [1, 1]} : vector<8x128xf32> to vector<8x96xf32>
    %819 = arith.negf %818 : vector<8x96xf32>
    %820 = math.exp %819 : vector<8x96xf32>
    %cst_211 = arith.constant 1.000000e+00 : f32
    %821 = vector.broadcast %cst_211 : f32 to vector<8x96xf32>
    %822 = arith.addf %821, %820 : vector<8x96xf32>
    %823 = arith.divf %821, %822 : vector<8x96xf32>
    %824 = vector.extract_strided_slice %823 {offsets = [0, 0], sizes = [8, 32], strides = [1, 1]} : vector<8x96xf32> to vector<8x32xf32>
    %825 = vector.extract_strided_slice %823 {offsets = [0, 32], sizes = [8, 32], strides = [1, 1]} : vector<8x96xf32> to vector<8x32xf32>
    %826 = vector.extract_strided_slice %823 {offsets = [0, 64], sizes = [8, 32], strides = [1, 1]} : vector<8x96xf32> to vector<8x32xf32>
    %827 = vector.extract_strided_slice %817 {offsets = [0, 96], sizes = [8, 32], strides = [1, 1]} : vector<8x128xf32> to vector<8x32xf32>
    %828 = math.tanh %827 : vector<8x32xf32>
    %829 = arith.mulf %825, %809 : vector<8x32xf32>
    %830 = arith.mulf %824, %828 : vector<8x32xf32>
    %831 = arith.addf %829, %830 : vector<8x32xf32>
    %832 = math.tanh %831 : vector<8x32xf32>
    %833 = arith.mulf %826, %832 : vector<8x32xf32>
    %834 = arith.truncf %833 : vector<8x32xf32> to vector<8x32xbf16>
    %c16_i32_212 = arith.constant 16 : i32
    %835 = arith.extf %834 : vector<8x32xbf16> to vector<8x32xf32>
    %c0_213 = arith.constant 0 : index
    %c0_214 = arith.constant 0 : index
    %836 = vector.load %arg8[%c0_213, %c0_214] : memref<32x32xf32, #tpu.memory_space<vmem>>, vector<32x32xf32>
    %cst_215 = arith.constant dense<0.000000e+00> : vector<8x32xf32>
    %837 = tpu.matmul %835, %836, %cst_215 {dimension_numbers = #tpu.dot_dimension_numbers<[1], [0], [0], [1], [0, 0, 1, 1], [], []>} : vector<8x32xf32>, vector<32x32xf32>, vector<8x32xf32> -> vector<8x32xf32>
    %c0_216 = arith.constant 0 : index
    %c0_217 = arith.constant 0 : index
    %838 = vector.load %arg9[%c0_216, %c0_217] : memref<1x32xf32, #tpu.memory_space<vmem>>, vector<1x32xf32>
    %839 = vector.broadcast %838 : vector<1x32xf32> to vector<8x32xf32>
    %840 = arith.addf %837, %839 : vector<8x32xf32>
    %cst_218 = arith.constant 0.000000e+00 : f32
    %841 = vector.broadcast %cst_218 : f32 to vector<8x32xf32>
    %842 = arith.maximumf %840, %841 : vector<8x32xf32>
    %c0_219 = arith.constant 0 : index
    %c0_220 = arith.constant 0 : index
    %843 = vector.load %arg10[%c0_219, %c0_220] : memref<32x6xf32, #tpu.memory_space<vmem>>, vector<32x6xf32>
    %cst_221 = arith.constant dense<0.000000e+00> : vector<8x6xf32>
    %844 = tpu.matmul %842, %843, %cst_221 {dimension_numbers = #tpu.dot_dimension_numbers<[1], [0], [0], [1], [0, 0, 1, 1], [], []>} : vector<8x32xf32>, vector<32x6xf32>, vector<8x6xf32> -> vector<8x6xf32>
    %c0_222 = arith.constant 0 : index
    %c0_223 = arith.constant 0 : index
    %845 = vector.load %arg11[%c0_222, %c0_223] : memref<1x6xf32, #tpu.memory_space<vmem>>, vector<1x6xf32>
    %846 = vector.broadcast %845 : vector<1x6xf32> to vector<8x6xf32>
    %847 = arith.addf %844, %846 : vector<8x6xf32>
    %cst_224 = arith.constant 0.000000e+00 : f32
    %848 = vector.broadcast %cst_224 : f32 to vector<8x6xf32>
    %849 = arith.maximumf %847, %848 : vector<8x6xf32>
    %cst_225 = arith.constant dense<0xFF800000> : vector<8xf32>
    %850 = vector.multi_reduction <maximumf>, %849, %cst_225 [1] : vector<8x6xf32> to vector<8xf32>
    %851 = vector.shape_cast %850 : vector<8xf32> to vector<8x1xf32>
    %852 = vector.broadcast %851 : vector<8x1xf32> to vector<8x6xf32>
    %853 = arith.subf %849, %852 : vector<8x6xf32>
    %854 = math.exp %853 : vector<8x6xf32>
    %cst_226 = arith.constant dense<0.000000e+00> : vector<8xf32>
    %855 = vector.multi_reduction <add>, %854, %cst_226 [1] : vector<8x6xf32> to vector<8xf32>
    %856 = vector.shape_cast %855 : vector<8xf32> to vector<8x1xf32>
    %857 = math.log %856 : vector<8x1xf32>
    %858 = arith.addf %857, %851 : vector<8x1xf32>
    %859 = vector.broadcast %858 : vector<8x1xf32> to vector<8x6xf32>
    %860 = arith.subf %849, %859 : vector<8x6xf32>
    %c0_227 = arith.constant 0 : index
    %c0_228 = arith.constant 0 : index
    %861 = vector.load %arg12[%c0_227, %c0_228] : memref<8x6xf32, #tpu.memory_space<vmem>>, vector<8x6xf32>
    tpu.vector_store %arg12[%c0_227, %c0_228], %860 {strides = array<i32>} : memref<8x6xf32, #tpu.memory_space<vmem>>, vector<8x6xf32>,
    return
  }
  func.func @transform_0(%arg0: i32) -> (i32, i32, i32) {
    %c0_i32 = arith.constant 0 : i32
    %c0_i32_0 = arith.constant 0 : i32
    %c0_i32_1 = arith.constant 0 : i32
    return %c0_i32, %arg0, %c0_i32_0 : i32, i32, i32
  }
  func.func @transform_1(%arg0: i32) -> (i32, i32) {
    %c0_i32 = arith.constant 0 : i32
    %c0_i32_0 = arith.constant 0 : i32
    %c0_i32_1 = arith.constant 0 : i32
    return %c0_i32, %c0_i32_0 : i32, i32
  }
  func.func @transform_2(%arg0: i32) -> (i32, i32) {
    %c0_i32 = arith.constant 0 : i32
    %c0_i32_0 = arith.constant 0 : i32
    %c0_i32_1 = arith.constant 0 : i32
    return %c0_i32, %c0_i32_0 : i32, i32
  }
  func.func @transform_3(%arg0: i32) -> (i32, i32) {
    %c0_i32 = arith.constant 0 : i32
    %c0_i32_0 = arith.constant 0 : i32
    %c0_i32_1 = arith.constant 0 : i32
    return %c0_i32, %c0_i32_0 : i32, i32
  }
  func.func @transform_4(%arg0: i32) -> (i32, i32) {
    %c0_i32 = arith.constant 0 : i32
    %c0_i32_0 = arith.constant 0 : i32
    %c0_i32_1 = arith.constant 0 : i32
    return %c0_i32, %c0_i32_0 : i32, i32
  }
  func.func @transform_5(%arg0: i32) -> (i32, i32) {
    %c0_i32 = arith.constant 0 : i32
    %c0_i32_0 = arith.constant 0 : i32
    %c0_i32_1 = arith.constant 0 : i32
    return %c0_i32, %c0_i32_0 : i32, i32
  }
  func.func @transform_6(%arg0: i32) -> (i32, i32) {
    %c0_i32 = arith.constant 0 : i32
    %c0_i32_0 = arith.constant 0 : i32
    %c0_i32_1 = arith.constant 0 : i32
    return %c0_i32, %c0_i32_0 : i32, i32
  }
  func.func @transform_7(%arg0: i32) -> (i32, i32) {
    %c0_i32 = arith.constant 0 : i32
    %c0_i32_0 = arith.constant 0 : i32
    %c0_i32_1 = arith.constant 0 : i32
    return %c0_i32, %c0_i32_0 : i32, i32
  }
  func.func @transform_8(%arg0: i32) -> (i32, i32) {
    %c0_i32 = arith.constant 0 : i32
    %c0_i32_0 = arith.constant 0 : i32
    %c0_i32_1 = arith.constant 0 : i32
    return %c0_i32, %c0_i32_0 : i32, i32
  }
  func.func @transform_9(%arg0: i32) -> (i32, i32) {
    %c0_i32 = arith.constant 0 : i32
    %c0_i32_0 = arith.constant 0 : i32
    %c0_i32_1 = arith.constant 0 : i32
    return %c0_i32, %c0_i32_0 : i32, i32
  }
  func.func @transform_10(%arg0: i32) -> (i32, i32) {
    %c0_i32 = arith.constant 0 : i32
    %c0_i32_0 = arith.constant 0 : i32
    %c0_i32_1 = arith.constant 0 : i32
    return %c0_i32, %c0_i32_0 : i32, i32
  }
  func.func @transform_11(%arg0: i32) -> (i32, i32) {
    %c0_i32 = arith.constant 0 : i32
    %c0_i32_0 = arith.constant 0 : i32
    return %arg0, %c0_i32 : i32, i32
  }
}

</mosaic_0001>

<bundles_post_ra>
// kernel: tpu_custom_call.1
= control target key start
LH: loop header
LB: loop body
LE: loop exit
PB: predicated region body
PF: predicated region fallthrough
CT: control target
= control target key end

     0   :  { %v4416_v1 = vmov 0.0   ;;  %vm4417_vm0 = vmmov 0   ;;  %v4418_v4 = vmov 0   ;;  %s5226_s0 = inlined_call_operand.vmem [shape: f32[16,8,1], index: 0, kind: input, shape index: {}]   ;;  %s5227_s1 = inlined_call_operand.vmem [shape: f32[1,128], index: 1, kind: input, shape index: {}]   ;;  %s5228_s2 = inlined_call_operand.vmem [shape: bf16[32,128], index: 2, kind: input, shape index: {}]   ;;  %s5229_s3 = inlined_call_operand.vmem [shape: f32[1,128], index: 3, kind: input, shape index: {}]   ;;  %s5230_s4 = inlined_call_operand.vmem [shape: bf16[32,128], index: 4, kind: input, shape index: {}]   ;;  %s5231_s5 = inlined_call_operand.vmem [shape: bf16[32,128], index: 5, kind: input, shape index: {}]   ;;  %s5232_s6 = inlined_call_operand.vmem [shape: f32[1,128], index: 6, kind: input, shape index: {}]   ;;  %s5233_s7 = inlined_call_operand.vmem [shape: f32[32,32], index: 7, kind: input, shape index: {}]   ;;  %s5234_s8 = inlined_call_operand.vmem [shape: f32[1,32], index: 8, kind: input, shape index: {}]   ;;  %s5235_s9 = inlined_call_operand.vmem [shape: f32[32,6], index: 9, kind: input, shape index: {}]   ;;  %s5236_s10 = inlined_call_operand.vmem [shape: f32[1,6], index: 10, kind: input, shape index: {}]   ;;  %s5237_s11 = inlined_call_operand.hbm [shape: f32[8,6], index: 11, kind: output, shape index: {}]  }
   0x1   :  { %v4485_v0 = vld [vmem:[%s5228_s2 + $0x8] sm:$0xff]   ;;  %3705 = vmatprep.subr.bf16.mxu0 %v4416_v1  ;;  %3713 = vmatprep.subr.bf16.mxu1 %v4416_v1  ;;  %v4493_v2 = vld [vmem:[%s5228_s2] sm:$0xff]  }
   0x2   :  { %3706 = vmatpush3.bf16.msra.mxu0 %v4485_v0  ;;  %3709 = vmatprep.mubr.msk.bf16.mxu0 %vm4417_vm0, %v4416_v1  ;;  %v42_v3 = vld [vmem:[%s5226_s0] sm:$0xff] }
   0x3   :  { %3707 = vmatprep.subr.bf16.mxu0 %v4416_v1  ;;  %4117 = vset.pattern.permute.xlu0 %v4418_v4 }
   0x4   :  { %60 = vperm.xlu0 %4117, %v42_v3   ;;  %3717 = vmatprep.mubr.msk.bf16.mxu1 %vm4417_vm0, %v4416_v1 }
   0x5   :  { %4118 = vset.pattern.permute.xlu1 %v4418_v4 }
   0x6   :  { %16 = vsyncpa [#allocation4], 0  ;;  %3708 = vmatpush3.bf16.msra.mxu0 %v4493_v2  ;;  %v4517_v6 = vld [vmem:[%s5227_s1] ss:$0 sm:$0xff]  ;;  %s4419_s27 = smov 32   ;;  %v4531_v25 = vld [vmem:[%s5230_s4 + $0x8] sm:$0xff]  }
   0x7   :  { %3721 = vmatprep.subr.bf16.mxu0 %v4416_v1  ;;  %v4523_v8 = vld [vmem:[%s5229_s3] ss:$0 sm:$0xff]  ;;  %3714 = vmatpush3.bf16.msra.mxu1 %v4531_v25  ;;  %v43_v28 = vld [vmem:[%s5226_s0 + $0x8] sm:$0xff]  ;;  %s4420_s15 = smov 64   ;;  %vm220_vm1 = vcmask 261120   ;;  %v44_v56 = vld [vmem:[%s5226_s0 + $0x10] sm:$0xff] }
   0x8   :  { %v4537_v26 = vld [vmem:[%s5230_s4] sm:$0xff]   ;;  %3715 = vmatprep.subr.bf16.mxu1 %v4416_v1  ;;  %vm3431_vm2 = vcmask 48128  }
   0x9   :  { %3710 = vmatmul.mubr.bf16.vlgmr.msra.gmra.mxu0 %v4418_v4 }
   0xa   :  { %3722 = vmatpush3.bf16.msra.mxu0 %v4485_v0  ;;  %3725 = vmatprep.mubr.msk.bf16.mxu0 %vm4417_vm0, %v4416_v1 }
   0xb   :  { %3723 = vmatprep.subr.bf16.mxu0 %v4416_v1  ;;  %3716 = vmatpush3.bf16.msra.mxu1 %v4537_v26 }
   0xc   :  { %3729 = vmatprep.subr.bf16.mxu1 %v4416_v1 }
   0xe   :  { %3724 = vmatpush3.bf16.msra.mxu0 %v4493_v2 }
   0xf   :  { %3737 = vmatprep.subr.bf16.mxu0 %v4416_v1 }
  0x7f   :  { %v61_v5 = vpop.permute.xlu0 %60 }
  0x80   :  { %v144_v7 = vmul.f32 %v4517_v6, %v61_v5 }
  0x82   :  { %v166_v9 = vadd.f32 %v4523_v8, %v144_v7 }
  0xc9   :  { %v258_v10 = vpop.f32.mrf.mxu0 }
  0xca   :  { %v264_v11 = vadd.f32 %v258_v10, %v166_v9 }
  0xcb   :  { %v3711_v12 = vpop.f32.mrf.mxu0 }
  0xcc   :  { %4125 = vtanh.f32 %v264_v11  ;;  %v3464_v16 = vmul.f32 -1.442695, %v264_v11 }
  0xcd   :  { %v261_v13 = vpop.f32.mrf.mxu0 }
  0xce   :  { %4127 = vpow2.f32 %v3464_v16 }
  0xcf   :  { %v3712_v14 = vpop.f32.mrf.mxu0 }
  0xd9   :  { %v4126_v15 = vpop.eup %4125 }
  0xda   :  { %274 = vrot.lane.b32.xlu0 %v4126_v15, %s4419_s27 }
  0xdb   :  { %v4128_v17 = vpop.eup %4127 }
  0xdc   :  { %v268_v18 = vadd.f32 1.0, %v4128_v17 }
  0xde   :  { %4129 = vrcp.f32 %v268_v18 }
  0xeb   :  { %v4130_v19 = vpop.eup %4129 }
  0xec   :  { %v272_v22 = vmul.f32 0.0, %v4130_v19 }
 0x14c   :  { %v275_v20 = vpop.permute.xlu0 %274 }
 0x14d   :  { %v277_v21 = vmul.f32 %v4130_v19, %v275_v20 }
 0x14f   :  { %279 = vrot.lane.b32.xlu1 %v277_v21, %s4419_s27 }
 0x1c1   :  { %v280_v23 = vpop.permute.xlu1 %279 }
 0x1c2   :  { %v282_v24 = vadd.f32 %v280_v23, %v272_v22 }
 0x1c4   :  { %4131 = vtanh.f32 %v282_v24 }
 0x1d1   :  { %v4132_v27 = vpop.eup %4131 }
 0x1d2   :  { %285 = vrot.lane.b32.xlu1 %v4132_v27, %s4419_s27 }
 0x1d6   :  { %65 = vperm.xlu1 %4118, %v43_v28   ;;  %v45_v28 = vld [vmem:[%s5226_s0 + $0x18] sm:$0xff] }
 0x244   :  { %v286_v29 = vpop.permute.xlu1 %285 }
 0x245   :  { %v288_v30 = vmul.f32 %v4130_v19, %v286_v29 }
 0x247   :  { %v289_v31 = vpack.c.bf16 %v288_v30, %v288_v30 }
 0x249   :  { %297 = vrot.lane.b32.xlu0 %v289_v31, %s4420_s15 }
 0x251   :  { %v66_v33 = vpop.permute.xlu1 %65 }
 0x252   :  { %v145_v34 = vmul.f32 %v4517_v6, %v66_v33 }
 0x254   :  { %v167_v35 = vadd.f32 %v4523_v8, %v145_v34 }
 0x2bb   :  { %v298_v32 = vpop.permute.xlu0 %297 }
 0x2bc   :  { %3718 = vmatmul.mubr.msk.bf16.vlgmr.msra.gmra.mxu1 %vm220_vm1, %v298_v32  ;;  %3726 = vmatmul.mubr.msk.bf16.vlgmr.msra.gmra.mxu0 %vm220_vm1, %v298_v32 }
 0x2bd   :  { %3738 = vmatpush3.bf16.msra.mxu0 %v4485_v0  ;;  %3730 = vmatpush3.bf16.msra.mxu1 %v4531_v25 }
 0x2be   :  { %3739 = vmatprep.subr.bf16.mxu0 %v4416_v1  ;;  %3731 = vmatprep.subr.bf16.mxu1 %v4416_v1 }
 0x2bf   :  { %3733 = vmatprep.mubr.msk.bf16.mxu1 %vm4417_vm0, %v4416_v1  ;;  %3741 = vmatprep.mubr.msk.bf16.mxu0 %vm4417_vm0, %v4416_v1 }
 0x2c1   :  { %3740 = vmatpush3.bf16.msra.mxu0 %v4493_v2  ;;  %3732 = vmatpush3.bf16.msra.mxu1 %v4537_v26 }
 0x2c2   :  { %3753 = vmatprep.subr.bf16.mxu0 %v4416_v1  ;;  %3745 = vmatprep.subr.bf16.mxu1 %v4416_v1 }
 0x37c   :  { %v4563_v36 = vpop.f32.mrf.mxu1  ;;  %v391_v37 = vpop.f32.mrf.mxu0 }
 0x37d   :  { %v397_v38 = vadd.f32 %v391_v37, %v167_v35 }
 0x37e   :  { %v3719_v39 = vpop.f32.mrf.mxu1  ;;  %v3727_v40 = vpop.f32.mrf.mxu0 }
 0x37f   :  { %4133 = vtanh.f32 %v397_v38  ;;  %v3470_v46 = vmul.f32 -1.442695, %v397_v38 }
 0x380   :  { %v351_v41 = vpop.f32.mrf.mxu1  ;;  %v394_v42 = vpop.f32.mrf.mxu0 }
 0x381   :  { %4135 = vpow2.f32 %v3470_v46 }
 0x382   :  { %v3720_v43 = vpop.f32.mrf.mxu1  ;;  %v3728_v44 = vpop.f32.mrf.mxu0 }
 0x38c   :  { %v4134_v45 = vpop.eup %4133 }
 0x38d   :  { %407 = vrot.lane.b32.xlu0 %v4134_v45, %s4419_s27 }
 0x38e   :  { %v4136_v47 = vpop.eup %4135 }
 0x38f   :  { %v401_v48 = vadd.f32 1.0, %v4136_v47 }
 0x391   :  { %4137 = vrcp.f32 %v401_v48 }
 0x39e   :  { %v4138_v49 = vpop.eup %4137 }
 0x39f   :  { %v405_v52 = vmul.f32 %v4138_v49, %v282_v24 }
 0x3ff   :  { %v408_v50 = vpop.permute.xlu0 %407 }
 0x400   :  { %v410_v51 = vmul.f32 %v4138_v49, %v408_v50 }
 0x402   :  { %412 = vrot.lane.b32.xlu1 %v410_v51, %s4419_s27 }
 0x474   :  { %v413_v53 = vpop.permute.xlu1 %412 }
 0x475   :  { %v415_v54 = vadd.f32 %v413_v53, %v405_v52 }
 0x477   :  { %4139 = vtanh.f32 %v415_v54 }
 0x484   :  { %v4140_v55 = vpop.eup %4139 }
 0x485   :  { %418 = vrot.lane.b32.xlu0 %v4140_v55, %s4419_s27 }
 0x489   :  { %70 = vperm.xlu0 %4117, %v44_v56  }
 0x4f7   :  { %v419_v57 = vpop.permute.xlu0 %418 }
 0x4f8   :  { %v421_v58 = vmul.f32 %v4138_v49, %v419_v57  ;;  %v46_v57 = vld [vmem:[%s5226_s0 + $0x20] sm:$0xff] }
 0x4fa   :  { %v422_v59 = vpack.c.bf16 %v421_v58, %v421_v58 }
 0x4fc   :  { %424 = vrot.lane.b32.xlu1 %v422_v59, %s4420_s15 }
 0x504   :  { %v71_v61 = vpop.permute.xlu0 %70 }
 0x505   :  { %v146_v62 = vmul.f32 %v4517_v6, %v71_v61 }
 0x507   :  { %v168_v63 = vadd.f32 %v4523_v8, %v146_v62 }
 0x56e   :  { %v425_v60 = vpop.permute.xlu1 %424 }
 0x56f   :  { %3734 = vmatmul.mubr.msk.bf16.vlgmr.msra.gmra.mxu1 %vm220_vm1, %v425_v60  ;;  %3742 = vmatmul.mubr.msk.bf16.vlgmr.msra.gmra.mxu0 %vm220_vm1, %v425_v60 }
 0x570   :  { %3754 = vmatpush3.bf16.msra.mxu0 %v4485_v0  ;;  %3746 = vmatpush3.bf16.msra.mxu1 %v4531_v25 }
 0x571   :  { %3755 = vmatprep.subr.bf16.mxu0 %v4416_v1  ;;  %3747 = vmatprep.subr.bf16.mxu1 %v4416_v1 }
 0x572   :  { %3749 = vmatprep.mubr.msk.bf16.mxu1 %vm4417_vm0, %v4416_v1  ;;  %3757 = vmatprep.mubr.msk.bf16.mxu0 %vm4417_vm0, %v4416_v1 }
 0x574   :  { %3756 = vmatpush3.bf16.msra.mxu0 %v4493_v2  ;;  %3748 = vmatpush3.bf16.msra.mxu1 %v4537_v26 }
 0x575   :  { %3769 = vmatprep.subr.bf16.mxu0 %v4416_v1  ;;  %3761 = vmatprep.subr.bf16.mxu1 %v4416_v1 }
 0x62f   :  { %v4588_v3 = vpop.f32.mrf.mxu1  ;;  %v506_v5 = vpop.f32.mrf.mxu0 }
 0x630   :  { %v512_v7 = vadd.f32 %v506_v5, %v168_v63 }
 0x631   :  { %v3735_v9 = vpop.f32.mrf.mxu1  ;;  %v3743_v10 = vpop.f32.mrf.mxu0 }
 0x632   :  { %4141 = vtanh.f32 %v512_v7  ;;  %v3473_v16 = vmul.f32 -1.442695, %v512_v7 }
 0x633   :  { %v466_v11 = vpop.f32.mrf.mxu1  ;;  %v509_v12 = vpop.f32.mrf.mxu0 }
 0x634   :  { %4143 = vpow2.f32 %v3473_v16 }
 0x635   :  { %v3736_v13 = vpop.f32.mrf.mxu1  ;;  %v3744_v14 = vpop.f32.mrf.mxu0 }
 0x63f   :  { %v4142_v15 = vpop.eup %4141 }
 0x640   :  { %522 = vrot.lane.b32.xlu1 %v4142_v15, %s4419_s27 }
 0x641   :  { %v4144_v17 = vpop.eup %4143 }
 0x642   :  { %v516_v18 = vadd.f32 1.0, %v4144_v17 }
 0x644   :  { %4145 = vrcp.f32 %v516_v18 }
 0x651   :  { %v4146_v19 = vpop.eup %4145 }
 0x652   :  { %v520_v22 = vmul.f32 %v4146_v19, %v415_v54 }
 0x6b2   :  { %v523_v20 = vpop.permute.xlu1 %522 }
 0x6b3   :  { %v525_v21 = vmul.f32 %v4146_v19, %v523_v20 }
 0x6b5   :  { %527 = vrot.lane.b32.xlu0 %v525_v21, %s4419_s27 }
 0x727   :  { %v528_v23 = vpop.permute.xlu0 %527 }
 0x728   :  { %v530_v24 = vadd.f32 %v528_v23, %v520_v22 }
 0x72a   :  { %4147 = vtanh.f32 %v530_v24 }
 0x737   :  { %v4148_v27 = vpop.eup %4147 }
 0x738   :  { %533 = vrot.lane.b32.xlu1 %v4148_v27, %s4419_s27 }
 0x73c   :  { %75 = vperm.xlu1 %4118, %v45_v28  }
 0x7aa   :  { %v534_v29 = vpop.permute.xlu1 %533 }
 0x7ab   :  { %v536_v30 = vmul.f32 %v4146_v19, %v534_v29 }
 0x7ad   :  { %v537_v31 = vpack.c.bf16 %v536_v30, %v536_v30  ;;  %v47_v30 = vld [vmem:[%s5226_s0 + $0x28] sm:$0xff] }
 0x7af   :  { %539 = vrot.lane.b32.xlu0 %v537_v31, %s4420_s15 }
 0x7b7   :  { %v76_v33 = vpop.permute.xlu1 %75 }
 0x7b8   :  { %v147_v34 = vmul.f32 %v4517_v6, %v76_v33 }
 0x7ba   :  { %v169_v35 = vadd.f32 %v4523_v8, %v147_v34 }
 0x821   :  { %v540_v32 = vpop.permute.xlu0 %539 }
 0x822   :  { %3750 = vmatmul.mubr.msk.bf16.vlgmr.msra.gmra.mxu1 %vm220_vm1, %v540_v32  ;;  %3758 = vmatmul.mubr.msk.bf16.vlgmr.msra.gmra.mxu0 %vm220_vm1, %v540_v32 }
 0x823   :  { %3770 = vmatpush3.bf16.msra.mxu0 %v4485_v0  ;;  %3762 = vmatpush3.bf16.msra.mxu1 %v4531_v25 }
 0x824   :  { %3771 = vmatprep.subr.bf16.mxu0 %v4416_v1  ;;  %3763 = vmatprep.subr.bf16.mxu1 %v4416_v1 }
 0x825   :  { %3765 = vmatprep.mubr.msk.bf16.mxu1 %vm4417_vm0, %v4416_v1  ;;  %3773 = vmatprep.mubr.msk.bf16.mxu0 %vm4417_vm0, %v4416_v1 }
 0x827   :  { %3772 = vmatpush3.bf16.msra.mxu0 %v4493_v2  ;;  %3764 = vmatpush3.bf16.msra.mxu1 %v4537_v26 }
 0x828   :  { %3785 = vmatprep.subr.bf16.mxu0 %v4416_v1  ;;  %3777 = vmatprep.subr.bf16.mxu1 %v4416_v1 }
 0x8e2   :  { %v4613_v37 = vpop.f32.mrf.mxu1  ;;  %v621_v38 = vpop.f32.mrf.mxu0 }
 0x8e3   :  { %v627_v39 = vadd.f32 %v621_v38, %v169_v35 }
 0x8e4   :  { %v3751_v40 = vpop.f32.mrf.mxu1  ;;  %v3759_v41 = vpop.f32.mrf.mxu0 }
 0x8e5   :  { %4149 = vtanh.f32 %v627_v39  ;;  %v3476_v47 = vmul.f32 -1.442695, %v627_v39 }
 0x8e6   :  { %v581_v42 = vpop.f32.mrf.mxu1  ;;  %v624_v43 = vpop.f32.mrf.mxu0 }
 0x8e7   :  { %4151 = vpow2.f32 %v3476_v47 }
 0x8e8   :  { %v3752_v44 = vpop.f32.mrf.mxu1  ;;  %v3760_v45 = vpop.f32.mrf.mxu0 }
 0x8f2   :  { %v4150_v46 = vpop.eup %4149 }
 0x8f3   :  { %637 = vrot.lane.b32.xlu0 %v4150_v46, %s4419_s27 }
 0x8f4   :  { %v4152_v48 = vpop.eup %4151 }
 0x8f5   :  { %v631_v49 = vadd.f32 1.0, %v4152_v48 }
 0x8f7   :  { %4153 = vrcp.f32 %v631_v49 }
 0x904   :  { %v4154_v50 = vpop.eup %4153 }
 0x905   :  { %v635_v53 = vmul.f32 %v4154_v50, %v530_v24 }
 0x965   :  { %v638_v51 = vpop.permute.xlu0 %637 }
 0x966   :  { %v640_v52 = vmul.f32 %v4154_v50, %v638_v51 }
 0x968   :  { %642 = vrot.lane.b32.xlu1 %v640_v52, %s4419_s27 }
 0x9da   :  { %v643_v54 = vpop.permute.xlu1 %642 }
 0x9db   :  { %v645_v55 = vadd.f32 %v643_v54, %v635_v53 }
 0x9dd   :  { %4155 = vtanh.f32 %v645_v55 }
 0x9ea   :  { %v4156_v56 = vpop.eup %4155 }
 0x9eb   :  { %648 = vrot.lane.b32.xlu0 %v4156_v56, %s4419_s27 }
 0x9ef   :  { %80 = vperm.xlu0 %4117, %v46_v57  }
 0xa5d   :  { %v649_v58 = vpop.permute.xlu0 %648 }
 0xa5e   :  { %v651_v59 = vmul.f32 %v4154_v50, %v649_v58 }
 0xa60   :  { %v652_v60 = vpack.c.bf16 %v651_v59, %v651_v59 }
 0xa62   :  { %654 = vrot.lane.b32.xlu1 %v652_v60, %s4420_s15  ;;  %v48_v60 = vld [vmem:[%s5226_s0 + $0x30] sm:$0xff] }
 0xa6a   :  { %v81_v62 = vpop.permute.xlu0 %80 }
 0xa6b   :  { %v148_v63 = vmul.f32 %v4517_v6, %v81_v62 }
 0xa6d   :  { %v170_v5 = vadd.f32 %v4523_v8, %v148_v63 }
 0xad4   :  { %v655_v61 = vpop.permute.xlu1 %654 }
 0xad5   :  { %3766 = vmatmul.mubr.msk.bf16.vlgmr.msra.gmra.mxu1 %vm220_vm1, %v655_v61  ;;  %3774 = vmatmul.mubr.msk.bf16.vlgmr.msra.gmra.mxu0 %vm220_vm1, %v655_v61 }
 0xad6   :  { %3786 = vmatpush3.bf16.msra.mxu0 %v4485_v0  ;;  %3778 = vmatpush3.bf16.msra.mxu1 %v4531_v25 }
 0xad7   :  { %3787 = vmatprep.subr.bf16.mxu0 %v4416_v1  ;;  %3779 = vmatprep.subr.bf16.mxu1 %v4416_v1 }
 0xad8   :  { %3781 = vmatprep.mubr.msk.bf16.mxu1 %vm4417_vm0, %v4416_v1  ;;  %3789 = vmatprep.mubr.msk.bf16.mxu0 %vm4417_vm0, %v4416_v1 }
 0xada   :  { %3788 = vmatpush3.bf16.msra.mxu0 %v4493_v2  ;;  %3780 = vmatpush3.bf16.msra.mxu1 %v4537_v26 }
 0xadb   :  { %3801 = vmatprep.subr.bf16.mxu0 %v4416_v1  ;;  %3793 = vmatprep.subr.bf16.mxu1 %v4416_v1 }
 0xb95   :  { %v4638_v7 = vpop.f32.mrf.mxu1  ;;  %v736_v9 = vpop.f32.mrf.mxu0 }
 0xb96   :  { %v742_v10 = vadd.f32 %v736_v9, %v170_v5 }
 0xb97   :  { %v3767_v11 = vpop.f32.mrf.mxu1  ;;  %v3775_v12 = vpop.f32.mrf.mxu0 }
 0xb98   :  { %4157 = vtanh.f32 %v742_v10  ;;  %v3479_v18 = vmul.f32 -1.442695, %v742_v10 }
 0xb99   :  { %v696_v13 = vpop.f32.mrf.mxu1  ;;  %v739_v14 = vpop.f32.mrf.mxu0 }
 0xb9a   :  { %4159 = vpow2.f32 %v3479_v18 }
 0xb9b   :  { %v3768_v15 = vpop.f32.mrf.mxu1  ;;  %v3776_v16 = vpop.f32.mrf.mxu0 }
 0xba5   :  { %v4158_v17 = vpop.eup %4157 }
 0xba6   :  { %752 = vrot.lane.b32.xlu1 %v4158_v17, %s4419_s27 }
 0xba7   :  { %v4160_v19 = vpop.eup %4159 }
 0xba8   :  { %v746_v20 = vadd.f32 1.0, %v4160_v19 }
 0xbaa   :  { %4161 = vrcp.f32 %v746_v20 }
 0xbb7   :  { %v4162_v21 = vpop.eup %4161 }
 0xbb8   :  { %v750_v24 = vmul.f32 %v4162_v21, %v645_v55 }
 0xc18   :  { %v753_v22 = vpop.permute.xlu1 %752 }
 0xc19   :  { %v755_v23 = vmul.f32 %v4162_v21, %v753_v22 }
 0xc1b   :  { %757 = vrot.lane.b32.xlu0 %v755_v23, %s4419_s27 }
 0xc8d   :  { %v758_v27 = vpop.permute.xlu0 %757 }
 0xc8e   :  { %v760_v28 = vadd.f32 %v758_v27, %v750_v24 }
 0xc90   :  { %4163 = vtanh.f32 %v760_v28 }
 0xc9d   :  { %v4164_v29 = vpop.eup %4163 }
 0xc9e   :  { %763 = vrot.lane.b32.xlu1 %v4164_v29, %s4419_s27 }
 0xca2   :  { %85 = vperm.xlu1 %4118, %v47_v30  }
 0xd10   :  { %v764_v31 = vpop.permute.xlu1 %763 }
 0xd11   :  { %v766_v32 = vmul.f32 %v4162_v21, %v764_v31 }
 0xd13   :  { %v767_v33 = vpack.c.bf16 %v766_v32, %v766_v32 }
 0xd15   :  { %769 = vrot.lane.b32.xlu0 %v767_v33, %s4420_s15 }
 0xd1d   :  { %v86_v35 = vpop.permute.xlu1 %85 }
 0xd1e   :  { %v149_v38 = vmul.f32 %v4517_v6, %v86_v35 }
 0xd20   :  { %v171_v39 = vadd.f32 %v4523_v8, %v149_v38 }
 0xd87   :  { %v770_v34 = vpop.permute.xlu0 %769 }
 0xd88   :  { %3782 = vmatmul.mubr.msk.bf16.vlgmr.msra.gmra.mxu1 %vm220_vm1, %v770_v34  ;;  %3790 = vmatmul.mubr.msk.bf16.vlgmr.msra.gmra.mxu0 %vm220_vm1, %v770_v34  ;;  %v49_v34 = vld [vmem:[%s5226_s0 + $0x38] sm:$0xff] }
 0xd89   :  { %3802 = vmatpush3.bf16.msra.mxu0 %v4485_v0  ;;  %3794 = vmatpush3.bf16.msra.mxu1 %v4531_v25 }
 0xd8a   :  { %3803 = vmatprep.subr.bf16.mxu0 %v4416_v1  ;;  %3795 = vmatprep.subr.bf16.mxu1 %v4416_v1 }
 0xd8b   :  { %3797 = vmatprep.mubr.msk.bf16.mxu1 %vm4417_vm0, %v4416_v1  ;;  %3805 = vmatprep.mubr.msk.bf16.mxu0 %vm4417_vm0, %v4416_v1 }
 0xd8d   :  { %3804 = vmatpush3.bf16.msra.mxu0 %v4493_v2  ;;  %3796 = vmatpush3.bf16.msra.mxu1 %v4537_v26 }
 0xd8e   :  { %3817 = vmatprep.subr.bf16.mxu0 %v4416_v1  ;;  %3809 = vmatprep.subr.bf16.mxu1 %v4416_v1 }
 0xe48   :  { %v4663_v40 = vpop.f32.mrf.mxu1  ;;  %v851_v41 = vpop.f32.mrf.mxu0 }
 0xe49   :  { %v857_v42 = vadd.f32 %v851_v41, %v171_v39 }
 0xe4a   :  { %v3783_v43 = vpop.f32.mrf.mxu1  ;;  %v3791_v44 = vpop.f32.mrf.mxu0 }
 0xe4b   :  { %4165 = vtanh.f32 %v857_v42  ;;  %v3482_v50 = vmul.f32 -1.442695, %v857_v42 }
 0xe4c   :  { %v811_v45 = vpop.f32.mrf.mxu1  ;;  %v854_v46 = vpop.f32.mrf.mxu0 }
 0xe4d   :  { %4167 = vpow2.f32 %v3482_v50 }
 0xe4e   :  { %v3784_v47 = vpop.f32.mrf.mxu1  ;;  %v3792_v48 = vpop.f32.mrf.mxu0 }
 0xe58   :  { %v4166_v49 = vpop.eup %4165 }
 0xe59   :  { %867 = vrot.lane.b32.xlu0 %v4166_v49, %s4419_s27 }
 0xe5a   :  { %v4168_v51 = vpop.eup %4167 }
 0xe5b   :  { %v861_v52 = vadd.f32 1.0, %v4168_v51 }
 0xe5d   :  { %4169 = vrcp.f32 %v861_v52 }
 0xe6a   :  { %v4170_v53 = vpop.eup %4169 }
 0xe6b   :  { %v865_v56 = vmul.f32 %v4170_v53, %v760_v28 }
 0xecb   :  { %v868_v54 = vpop.permute.xlu0 %867 }
 0xecc   :  { %v870_v55 = vmul.f32 %v4170_v53, %v868_v54 }
 0xece   :  { %872 = vrot.lane.b32.xlu1 %v870_v55, %s4419_s27 }
 0xf40   :  { %v873_v57 = vpop.permute.xlu1 %872 }
 0xf41   :  { %v875_v58 = vadd.f32 %v873_v57, %v865_v56 }
 0xf43   :  { %4171 = vtanh.f32 %v875_v58 }
 0xf50   :  { %v4172_v59 = vpop.eup %4171 }
 0xf51   :  { %878 = vrot.lane.b32.xlu0 %v4172_v59, %s4419_s27 }
 0xf55   :  { %90 = vperm.xlu0 %4117, %v48_v60  }
 0xfc3   :  { %v879_v61 = vpop.permute.xlu0 %878 }
 0xfc4   :  { %v881_v62 = vmul.f32 %v4170_v53, %v879_v61 }
 0xfc6   :  { %v882_v63 = vpack.c.bf16 %v881_v62, %v881_v62 }
 0xfc8   :  { %884 = vrot.lane.b32.xlu1 %v882_v63, %s4420_s15 }
 0xfd0   :  { %v91_v9 = vpop.permute.xlu0 %90 }
 0xfd1   :  { %v150_v10 = vmul.f32 %v4517_v6, %v91_v9  ;;  %v50_v9 = vld [vmem:[%s5226_s0 + $0x40] sm:$0xff] }
 0xfd3   :  { %v172_v11 = vadd.f32 %v4523_v8, %v150_v10 }
0x103a   :  { %v885_v5 = vpop.permute.xlu1 %884 }
0x103b   :  { %3798 = vmatmul.mubr.msk.bf16.vlgmr.msra.gmra.mxu1 %vm220_vm1, %v885_v5  ;;  %3806 = vmatmul.mubr.msk.bf16.vlgmr.msra.gmra.mxu0 %vm220_vm1, %v885_v5 }
0x103c   :  { %3818 = vmatpush3.bf16.msra.mxu0 %v4485_v0  ;;  %3810 = vmatpush3.bf16.msra.mxu1 %v4531_v25 }
0x103d   :  { %3819 = vmatprep.subr.bf16.mxu0 %v4416_v1  ;;  %3811 = vmatprep.subr.bf16.mxu1 %v4416_v1 }
0x103e   :  { %3813 = vmatprep.mubr.msk.bf16.mxu1 %vm4417_vm0, %v4416_v1  ;;  %3821 = vmatprep.mubr.msk.bf16.mxu0 %vm4417_vm0, %v4416_v1 }
0x1040   :  { %3820 = vmatpush3.bf16.msra.mxu0 %v4493_v2  ;;  %3812 = vmatpush3.bf16.msra.mxu1 %v4537_v26 }
0x1041   :  { %3833 = vmatprep.subr.bf16.mxu0 %v4416_v1  ;;  %3825 = vmatprep.subr.bf16.mxu1 %v4416_v1 }
0x10fb   :  { %v4688_v12 = vpop.f32.mrf.mxu1  ;;  %v966_v13 = vpop.f32.mrf.mxu0 }
0x10fc   :  { %v972_v14 = vadd.f32 %v966_v13, %v172_v11 }
0x10fd   :  { %v3799_v15 = vpop.f32.mrf.mxu1  ;;  %v3807_v16 = vpop.f32.mrf.mxu0 }
0x10fe   :  { %4173 = vtanh.f32 %v972_v14  ;;  %v3485_v22 = vmul.f32 -1.442695, %v972_v14 }
0x10ff   :  { %v926_v17 = vpop.f32.mrf.mxu1  ;;  %v969_v18 = vpop.f32.mrf.mxu0 }
0x1100   :  { %4175 = vpow2.f32 %v3485_v22 }
0x1101   :  { %v3800_v19 = vpop.f32.mrf.mxu1  ;;  %v3808_v20 = vpop.f32.mrf.mxu0 }
0x110b   :  { %v4174_v21 = vpop.eup %4173 }
0x110c   :  { %982 = vrot.lane.b32.xlu1 %v4174_v21, %s4419_s27 }
0x110d   :  { %v4176_v23 = vpop.eup %4175 }
0x110e   :  { %v976_v24 = vadd.f32 1.0, %v4176_v23 }
0x1110   :  { %4177 = vrcp.f32 %v976_v24 }
0x111d   :  { %v4178_v27 = vpop.eup %4177 }
0x111e   :  { %v980_v30 = vmul.f32 %v4178_v27, %v875_v58 }
0x117e   :  { %v983_v28 = vpop.permute.xlu1 %982 }
0x117f   :  { %v985_v29 = vmul.f32 %v4178_v27, %v983_v28 }
0x1181   :  { %987 = vrot.lane.b32.xlu0 %v985_v29, %s4419_s27 }
0x11f3   :  { %v988_v31 = vpop.permute.xlu0 %987 }
0x11f4   :  { %v990_v32 = vadd.f32 %v988_v31, %v980_v30 }
0x11f6   :  { %4179 = vtanh.f32 %v990_v32 }
0x1203   :  { %v4180_v33 = vpop.eup %4179 }
0x1204   :  { %993 = vrot.lane.b32.xlu1 %v4180_v33, %s4419_s27 }
0x1208   :  { %95 = vperm.xlu1 %4118, %v49_v34  }
0x1276   :  { %v994_v35 = vpop.permute.xlu1 %993 }
0x1277   :  { %v996_v38 = vmul.f32 %v4178_v27, %v994_v35 }
0x1279   :  { %v997_v39 = vpack.c.bf16 %v996_v38, %v996_v38 }
0x127b   :  { %999 = vrot.lane.b32.xlu0 %v997_v39, %s4420_s15 }
0x1283   :  { %v96_v42 = vpop.permute.xlu1 %95 }
0x1284   :  { %v151_v43 = vmul.f32 %v4517_v6, %v96_v42 }
0x1286   :  { %v173_v44 = vadd.f32 %v4523_v8, %v151_v43  ;;  %v51_v43 = vld [vmem:[%s5226_s0 + $0x48] sm:$0xff] }
0x12ed   :  { %v1000_v41 = vpop.permute.xlu0 %999 }
0x12ee   :  { %3814 = vmatmul.mubr.msk.bf16.vlgmr.msra.gmra.mxu1 %vm220_vm1, %v1000_v41  ;;  %3822 = vmatmul.mubr.msk.bf16.vlgmr.msra.gmra.mxu0 %vm220_vm1, %v1000_v41 }
0x12ef   :  { %3834 = vmatpush3.bf16.msra.mxu0 %v4485_v0  ;;  %3826 = vmatpush3.bf16.msra.mxu1 %v4531_v25 }
0x12f0   :  { %3835 = vmatprep.subr.bf16.mxu0 %v4416_v1  ;;  %3827 = vmatprep.subr.bf16.mxu1 %v4416_v1 }
0x12f1   :  { %3829 = vmatprep.mubr.msk.bf16.mxu1 %vm4417_vm0, %v4416_v1  ;;  %3837 = vmatprep.mubr.msk.bf16.mxu0 %vm4417_vm0, %v4416_v1 }
0x12f3   :  { %3836 = vmatpush3.bf16.msra.mxu0 %v4493_v2  ;;  %3828 = vmatpush3.bf16.msra.mxu1 %v4537_v26 }
0x12f4   :  { %3849 = vmatprep.subr.bf16.mxu0 %v4416_v1  ;;  %3841 = vmatprep.subr.bf16.mxu1 %v4416_v1 }
0x13ae   :  { %v4713_v45 = vpop.f32.mrf.mxu1  ;;  %v1081_v46 = vpop.f32.mrf.mxu0 }
0x13af   :  { %v1087_v47 = vadd.f32 %v1081_v46, %v173_v44 }
0x13b0   :  { %v3815_v48 = vpop.f32.mrf.mxu1  ;;  %v3823_v49 = vpop.f32.mrf.mxu0 }
0x13b1   :  { %4181 = vtanh.f32 %v1087_v47  ;;  %v3488_v55 = vmul.f32 -1.442695, %v1087_v47 }
0x13b2   :  { %v1041_v50 = vpop.f32.mrf.mxu1  ;;  %v1084_v51 = vpop.f32.mrf.mxu0 }
0x13b3   :  { %4183 = vpow2.f32 %v3488_v55 }
0x13b4   :  { %v3816_v52 = vpop.f32.mrf.mxu1  ;;  %v3824_v53 = vpop.f32.mrf.mxu0 }
0x13be   :  { %v4182_v54 = vpop.eup %4181 }
0x13bf   :  { %1097 = vrot.lane.b32.xlu0 %v4182_v54, %s4419_s27 }
0x13c0   :  { %v4184_v56 = vpop.eup %4183 }
0x13c1   :  { %v1091_v57 = vadd.f32 1.0, %v4184_v56 }
0x13c3   :  { %4185 = vrcp.f32 %v1091_v57 }
0x13d0   :  { %v4186_v58 = vpop.eup %4185 }
0x13d1   :  { %v1095_v61 = vmul.f32 %v4186_v58, %v990_v32 }
0x1431   :  { %v1098_v59 = vpop.permute.xlu0 %1097 }
0x1432   :  { %v1100_v60 = vmul.f32 %v4186_v58, %v1098_v59 }
0x1434   :  { %1102 = vrot.lane.b32.xlu1 %v1100_v60, %s4419_s27 }
0x14a6   :  { %v1103_v62 = vpop.permute.xlu1 %1102 }
0x14a7   :  { %v1105_v63 = vadd.f32 %v1103_v62, %v1095_v61 }
0x14a9   :  { %4187 = vtanh.f32 %v1105_v63 }
0x14b6   :  { %v4188_v5 = vpop.eup %4187 }
0x14b7   :  { %1108 = vrot.lane.b32.xlu0 %v4188_v5, %s4419_s27 }
0x14bb   :  { %100 = vperm.xlu0 %4117, %v50_v9  }
0x1529   :  { %v1109_v10 = vpop.permute.xlu0 %1108 }
0x152a   :  { %v1111_v11 = vmul.f32 %v4186_v58, %v1109_v10 }
0x152c   :  { %v1112_v13 = vpack.c.bf16 %v1111_v11, %v1111_v11 }
0x152e   :  { %1114 = vrot.lane.b32.xlu1 %v1112_v13, %s4420_s15 }
0x1536   :  { %v101_v15 = vpop.permute.xlu0 %100 }
0x1537   :  { %v152_v16 = vmul.f32 %v4517_v6, %v101_v15  ;;  %v52_v15 = vld [vmem:[%s5226_s0 + $0x50] sm:$0xff] }
0x1539   :  { %v174_v17 = vadd.f32 %v4523_v8, %v152_v16 }
0x15a0   :  { %v1115_v14 = vpop.permute.xlu1 %1114 }
0x15a1   :  { %3830 = vmatmul.mubr.msk.bf16.vlgmr.msra.gmra.mxu1 %vm220_vm1, %v1115_v14  ;;  %3838 = vmatmul.mubr.msk.bf16.vlgmr.msra.gmra.mxu0 %vm220_vm1, %v1115_v14 }
0x15a2   :  { %3850 = vmatpush3.bf16.msra.mxu0 %v4485_v0  ;;  %3842 = vmatpush3.bf16.msra.mxu1 %v4531_v25 }
0x15a3   :  { %3851 = vmatprep.subr.bf16.mxu0 %v4416_v1  ;;  %3843 = vmatprep.subr.bf16.mxu1 %v4416_v1 }
0x15a4   :  { %3845 = vmatprep.mubr.msk.bf16.mxu1 %vm4417_vm0, %v4416_v1  ;;  %3853 = vmatprep.mubr.msk.bf16.mxu0 %vm4417_vm0, %v4416_v1 }
0x15a6   :  { %3852 = vmatpush3.bf16.msra.mxu0 %v4493_v2  ;;  %3844 = vmatpush3.bf16.msra.mxu1 %v4537_v26 }
0x15a7   :  { %3865 = vmatprep.subr.bf16.mxu0 %v4416_v1  ;;  %3857 = vmatprep.subr.bf16.mxu1 %v4416_v1 }
0x1661   :  { %v4738_v18 = vpop.f32.mrf.mxu1  ;;  %v1196_v19 = vpop.f32.mrf.mxu0 }
0x1662   :  { %v1202_v20 = vadd.f32 %v1196_v19, %v174_v17 }
0x1663   :  { %v3831_v21 = vpop.f32.mrf.mxu1  ;;  %v3839_v22 = vpop.f32.mrf.mxu0 }
0x1664   :  { %4189 = vtanh.f32 %v1202_v20  ;;  %v3491_v30 = vmul.f32 -1.442695, %v1202_v20  ;;  %v4777_v21 = vld [vmem:[%s5228_s2 + $0x8] sm:$0xff]   ;;  %v4790_v22 = vld [vmem:[%s5228_s2] sm:$0xff]  }
0x1665   :  { %v1156_v23 = vpop.f32.mrf.mxu1  ;;  %v1199_v24 = vpop.f32.mrf.mxu0 }
0x1666   :  { %4191 = vpow2.f32 %v3491_v30 }
0x1667   :  { %v3832_v27 = vpop.f32.mrf.mxu1  ;;  %v3840_v28 = vpop.f32.mrf.mxu0 }
0x1671   :  { %v4190_v29 = vpop.eup %4189 }
0x1672   :  { %1212 = vrot.lane.b32.xlu1 %v4190_v29, %s4419_s27 }
0x1673   :  { %v4192_v31 = vpop.eup %4191 }
0x1674   :  { %v1206_v32 = vadd.f32 1.0, %v4192_v31 }
0x1676   :  { %4193 = vrcp.f32 %v1206_v32 }
0x1683   :  { %v4194_v33 = vpop.eup %4193 }
0x1684   :  { %v1210_v38 = vmul.f32 %v4194_v33, %v1105_v63 }
0x16e4   :  { %v1213_v34 = vpop.permute.xlu1 %1212 }
0x16e5   :  { %v1215_v35 = vmul.f32 %v4194_v33, %v1213_v34 }
0x16e7   :  { %1217 = vrot.lane.b32.xlu0 %v1215_v35, %s4419_s27 }
0x1759   :  { %v1218_v39 = vpop.permute.xlu0 %1217 }
0x175a   :  { %v1220_v41 = vadd.f32 %v1218_v39, %v1210_v38 }
0x175c   :  { %4195 = vtanh.f32 %v1220_v41 }
0x1769   :  { %v4196_v42 = vpop.eup %4195 }
0x176a   :  { %1223 = vrot.lane.b32.xlu1 %v4196_v42, %s4419_s27 }
0x176e   :  { %105 = vperm.xlu1 %4118, %v51_v43  }
0x17dc   :  { %v1224_v44 = vpop.permute.xlu1 %1223 }
0x17dd   :  { %v1226_v46 = vmul.f32 %v4194_v33, %v1224_v44 }
0x17df   :  { %v1227_v47 = vpack.c.bf16 %v1226_v46, %v1226_v46 }
0x17e1   :  { %1229 = vrot.lane.b32.xlu0 %v1227_v47, %s4420_s15 }
0x1853   :  { %v1230_v48 = vpop.permute.xlu0 %1229 }
0x1854   :  { %3846 = vmatmul.mubr.msk.bf16.vlgmr.msra.gmra.mxu1 %vm220_vm1, %v1230_v48  ;;  %3854 = vmatmul.mubr.msk.bf16.vlgmr.msra.gmra.mxu0 %vm220_vm1, %v1230_v48 }
0x1855   :  { %3866 = vmatpush3.bf16.msra.mxu0 %v4485_v0  ;;  %3858 = vmatpush3.bf16.msra.mxu1 %v4531_v25  ;;  %v106_v0 = vpop.permute.xlu1 %105 }
0x1856   :  { %3867 = vmatprep.subr.bf16.mxu0 %v4416_v1  ;;  %3859 = vmatprep.subr.bf16.mxu1 %v4416_v1  ;;  %v153_v49 = vmul.f32 %v4517_v6, %v106_v0  ;;  %v53_v0 = vld [vmem:[%s5226_s0 + $0x58] sm:$0xff] }
0x1857   :  { %3861 = vmatprep.mubr.msk.bf16.mxu1 %vm4417_vm0, %v4416_v1  ;;  %3869 = vmatprep.mubr.msk.bf16.mxu0 %vm4417_vm0, %v4416_v1 }
0x1858   :  { %v175_v50 = vadd.f32 %v4523_v8, %v153_v49 }
0x1859   :  { %3868 = vmatpush3.bf16.msra.mxu0 %v4493_v2  ;;  %3860 = vmatpush3.bf16.msra.mxu1 %v4537_v26 }
0x185a   :  { %3881 = vmatprep.subr.bf16.mxu0 %v4416_v1  ;;  %3873 = vmatprep.subr.bf16.mxu1 %v4416_v1 }
0x1914   :  { %v4763_v51 = vpop.f32.mrf.mxu1  ;;  %v1311_v52 = vpop.f32.mrf.mxu0 }
0x1915   :  { %v1317_v53 = vadd.f32 %v1311_v52, %v175_v50 }
0x1916   :  { %v3847_v54 = vpop.f32.mrf.mxu1  ;;  %v3855_v55 = vpop.f32.mrf.mxu0 }
0x1917   :  { %4197 = vtanh.f32 %v1317_v53  ;;  %v3494_v60 = vmul.f32 -1.442695, %v1317_v53  ;;  %v4821_v54 = vld [vmem:[%s5230_s4] sm:$0xff]  }
0x1918   :  { %v1271_v56 = vpop.f32.mrf.mxu1  ;;  %v1314_v2 = vpop.f32.mrf.mxu0  ;;  %v4829_v55 = vld [vmem:[%s5227_s1] ss:$0 sm:$0xff] }
0x1919   :  { %4199 = vpow2.f32 %v3494_v60  ;;  %v4835_v2 = vld [vmem:[%s5229_s3] ss:$0 sm:$0xff] }
0x191a   :  { %v3848_v57 = vpop.f32.mrf.mxu1  ;;  %v3856_v58 = vpop.f32.mrf.mxu0 }
0x1924   :  { %v4198_v59 = vpop.eup %4197 }
0x1925   :  { %1327 = vrot.lane.b32.xlu0 %v4198_v59, %s4419_s27 }
0x1926   :  { %v4200_v61 = vpop.eup %4199 }
0x1927   :  { %v1321_v62 = vadd.f32 1.0, %v4200_v61 }
0x1929   :  { %4201 = vrcp.f32 %v1321_v62 }
0x1936   :  { %v4202_v63 = vpop.eup %4201 }
0x1937   :  { %v1325_v10 = vmul.f32 %v4202_v63, %v1220_v41 }
0x1997   :  { %v1328_v5 = vpop.permute.xlu0 %1327 }
0x1998   :  { %v1330_v9 = vmul.f32 %v4202_v63, %v1328_v5 }
0x199a   :  { %1332 = vrot.lane.b32.xlu1 %v1330_v9, %s4419_s27 }
0x1a0c   :  { %v1333_v11 = vpop.permute.xlu1 %1332 }
0x1a0d   :  { %v1335_v13 = vadd.f32 %v1333_v11, %v1325_v10 }
0x1a0f   :  { %4203 = vtanh.f32 %v1335_v13 }
0x1a1c   :  { %v4204_v14 = vpop.eup %4203 }
0x1a1d   :  { %1338 = vrot.lane.b32.xlu0 %v4204_v14, %s4419_s27 }
0x1a21   :  { %110 = vperm.xlu0 %4117, %v52_v15  }
0x1a8f   :  { %v1339_v16 = vpop.permute.xlu0 %1338 }
0x1a90   :  { %v1341_v17 = vmul.f32 %v4202_v63, %v1339_v16 }
0x1a92   :  { %v1342_v19 = vpack.c.bf16 %v1341_v17, %v1341_v17 }
0x1a94   :  { %1344 = vrot.lane.b32.xlu1 %v1342_v19, %s4420_s15 }
0x1a9c   :  { %v111_v23 = vpop.permute.xlu0 %110 }
0x1a9d   :  { %v154_v24 = vmul.f32 %v4517_v6, %v111_v23 }
0x1a9f   :  { %v176_v27 = vadd.f32 %v4523_v8, %v154_v24 }
0x1b06   :  { %v1345_v20 = vpop.permute.xlu1 %1344 }
0x1b07   :  { %3862 = vmatmul.mubr.msk.bf16.vlgmr.msra.gmra.mxu1 %vm220_vm1, %v1345_v20  ;;  %3870 = vmatmul.mubr.msk.bf16.vlgmr.msra.gmra.mxu0 %vm220_vm1, %v1345_v20 }
0x1b08   :  { %3882 = vmatpush3.bf16.msra.mxu0 %v4777_v21  ;;  %3874 = vmatpush3.bf16.msra.mxu1 %v4531_v25 }
0x1b09   :  { %3883 = vmatprep.subr.bf16.mxu0 %v4416_v1  ;;  %3875 = vmatprep.subr.bf16.mxu1 %v4416_v1 }
0x1b0a   :  { %3877 = vmatprep.mubr.msk.bf16.mxu1 %vm4417_vm0, %v4416_v1  ;;  %3885 = vmatprep.mubr.msk.bf16.mxu0 %vm4417_vm0, %v4416_v1 }
0x1b0c   :  { %3884 = vmatpush3.bf16.msra.mxu0 %v4790_v22  ;;  %3876 = vmatpush3.bf16.msra.mxu1 %v4537_v26 }
0x1b0d   :  { %3897 = vmatprep.subr.bf16.mxu0 %v4416_v1  ;;  %3889 = vmatprep.subr.bf16.mxu1 %v4416_v1 }
0x1bc7   :  { %v4798_v28 = vpop.f32.mrf.mxu1  ;;  %v1426_v29 = vpop.f32.mrf.mxu0 }
0x1bc8   :  { %v1432_v30 = vadd.f32 %v1426_v29, %v176_v27  ;;  %v54_v29 = vld [vmem:[%s5226_s0 + $0x60] sm:$0xff] }
0x1bc9   :  { %v3863_v31 = vpop.f32.mrf.mxu1  ;;  %v3871_v32 = vpop.f32.mrf.mxu0 }
0x1bca   :  { %4205 = vtanh.f32 %v1432_v30  ;;  %v3497_v39 = vmul.f32 -1.442695, %v1432_v30 }
0x1bcb   :  { %v1386_v33 = vpop.f32.mrf.mxu1  ;;  %v1429_v34 = vpop.f32.mrf.mxu0 }
0x1bcc   :  { %4207 = vpow2.f32 %v3497_v39  ;;  %v4853_v34 = vld [vmem:[%s5230_s4 + $0x8] sm:$0xff]  }
0x1bcd   :  { %v3864_v35 = vpop.f32.mrf.mxu1  ;;  %v3872_v26 = vpop.f32.mrf.mxu0 }
0x1bd7   :  { %v4206_v38 = vpop.eup %4205 }
0x1bd8   :  { %1442 = vrot.lane.b32.xlu1 %v4206_v38, %s4419_s27 }
0x1bd9   :  { %v4208_v41 = vpop.eup %4207 }
0x1bda   :  { %v1436_v6 = vadd.f32 1.0, %v4208_v41 }
0x1bdc   :  { %4209 = vrcp.f32 %v1436_v6 }
0x1be9   :  { %v4210_v8 = vpop.eup %4209 }
0x1bea   :  { %v1440_v44 = vmul.f32 %v4210_v8, %v1335_v13 }
0x1c4a   :  { %v1443_v42 = vpop.permute.xlu1 %1442 }
0x1c4b   :  { %v1445_v43 = vmul.f32 %v4210_v8, %v1443_v42 }
0x1c4d   :  { %1447 = vrot.lane.b32.xlu0 %v1445_v43, %s4419_s27 }
0x1cbf   :  { %v1448_v46 = vpop.permute.xlu0 %1447 }
0x1cc0   :  { %v1450_v47 = vadd.f32 %v1448_v46, %v1440_v44 }
0x1cc2   :  { %4211 = vtanh.f32 %v1450_v47 }
0x1ccf   :  { %v4212_v48 = vpop.eup %4211 }
0x1cd0   :  { %1453 = vrot.lane.b32.xlu1 %v4212_v48, %s4419_s27 }
0x1cd4   :  { %115 = vperm.xlu1 %4118, %v53_v0  }
0x1d42   :  { %v1454_v49 = vpop.permute.xlu1 %1453 }
0x1d43   :  { %v1456_v50 = vmul.f32 %v4210_v8, %v1454_v49 }
0x1d45   :  { %v1457_v52 = vpack.c.bf16 %v1456_v50, %v1456_v50 }
0x1d47   :  { %1459 = vrot.lane.b32.xlu0 %v1457_v52, %s4420_s15 }
0x1db9   :  { %v1460_v53 = vpop.permute.xlu0 %1459 }
0x1dba   :  { %3878 = vmatmul.mubr.msk.bf16.vlgmr.msra.gmra.mxu1 %vm220_vm1, %v1460_v53  ;;  %3886 = vmatmul.mubr.msk.bf16.vlgmr.msra.gmra.mxu0 %vm220_vm1, %v1460_v53 }
0x1dbb   :  { %3898 = vmatpush3.bf16.msra.mxu0 %v4777_v21  ;;  %3890 = vmatpush3.bf16.msra.mxu1 %v4531_v25  ;;  %v116_v25 = vpop.permute.xlu1 %115 }
0x1dbc   :  { %3899 = vmatprep.subr.bf16.mxu0 %v4416_v1  ;;  %3891 = vmatprep.subr.bf16.mxu1 %v4416_v1  ;;  %v155_v56 = vmul.f32 %v4829_v55, %v116_v25 }
0x1dbd   :  { %3893 = vmatprep.mubr.msk.bf16.mxu1 %vm4417_vm0, %v4416_v1  ;;  %3901 = vmatprep.mubr.msk.bf16.mxu0 %vm4417_vm0, %v4416_v1 }
0x1dbe   :  { %v177_v57 = vadd.f32 %v4835_v2, %v155_v56 }
0x1dbf   :  { %3900 = vmatpush3.bf16.msra.mxu0 %v4790_v22  ;;  %3892 = vmatpush3.bf16.msra.mxu1 %v4821_v54 }
0x1dc0   :  { %3913 = vmatprep.subr.bf16.mxu0 %v4416_v1  ;;  %3905 = vmatprep.subr.bf16.mxu1 %v4416_v1 }
0x1e7a   :  { %v4838_v58 = vpop.f32.mrf.mxu1  ;;  %v1541_v59 = vpop.f32.mrf.mxu0 }
0x1e7b   :  { %v1547_v60 = vadd.f32 %v1541_v59, %v177_v57 }
0x1e7c   :  { %v3879_v61 = vpop.f32.mrf.mxu1  ;;  %v3887_v62 = vpop.f32.mrf.mxu0 }
0x1e7d   :  { %4213 = vtanh.f32 %v1547_v60  ;;  %v3500_v13 = vmul.f32 -1.442695, %v1547_v60  ;;  %v55_v61 = vld [vmem:[%s5226_s0 + $0x68] sm:$0xff] }
0x1e7e   :  { %v1501_v63 = vpop.f32.mrf.mxu1  ;;  %v1544_v5 = vpop.f32.mrf.mxu0 }
0x1e7f   :  { %4215 = vpow2.f32 %v3500_v13 }
0x1e80   :  { %v3880_v9 = vpop.f32.mrf.mxu1  ;;  %v3888_v10 = vpop.f32.mrf.mxu0 }
0x1e8a   :  { %v4214_v11 = vpop.eup %4213 }
0x1e8b   :  { %1557 = vrot.lane.b32.xlu0 %v4214_v11, %s4419_s27 }
0x1e8c   :  { %v4216_v14 = vpop.eup %4215 }
0x1e8d   :  { %v1551_v15 = vadd.f32 1.0, %v4216_v14 }
0x1e8f   :  { %4217 = vrcp.f32 %v1551_v15 }
0x1e9c   :  { %v4218_v16 = vpop.eup %4217 }
0x1e9d   :  { %v1555_v20 = vmul.f32 %v4218_v16, %v1450_v47 }
0x1efd   :  { %v1558_v17 = vpop.permute.xlu0 %1557 }
0x1efe   :  { %v1560_v19 = vmul.f32 %v4218_v16, %v1558_v17 }
0x1f00   :  { %1562 = vrot.lane.b32.xlu1 %v1560_v19, %s4419_s27 }
0x1f72   :  { %v1563_v23 = vpop.permute.xlu1 %1562 }
0x1f73   :  { %v1565_v24 = vadd.f32 %v1563_v23, %v1555_v20 }
0x1f75   :  { %4219 = vtanh.f32 %v1565_v24 }
0x1f82   :  { %v4220_v27 = vpop.eup %4219 }
0x1f83   :  { %1568 = vrot.lane.b32.xlu0 %v4220_v27, %s4419_s27 }
0x1f87   :  { %120 = vperm.xlu0 %4117, %v54_v29  }
0x1ff5   :  { %v1569_v30 = vpop.permute.xlu0 %1568 }
0x1ff6   :  { %v1571_v31 = vmul.f32 %v4218_v16, %v1569_v30 }
0x1ff8   :  { %v1572_v32 = vpack.c.bf16 %v1571_v31, %v1571_v31 }
0x1ffa   :  { %1574 = vrot.lane.b32.xlu1 %v1572_v32, %s4420_s15 }
0x2002   :  { %v121_v35 = vpop.permute.xlu0 %120 }
0x2003   :  { %v156_v26 = vmul.f32 %v4829_v55, %v121_v35 }
0x2005   :  { %v178_v38 = vadd.f32 %v4835_v2, %v156_v26 }
0x206c   :  { %v1575_v33 = vpop.permute.xlu1 %1574 }
0x206d   :  { %3894 = vmatmul.mubr.msk.bf16.vlgmr.msra.gmra.mxu1 %vm220_vm1, %v1575_v33  ;;  %3902 = vmatmul.mubr.msk.bf16.vlgmr.msra.gmra.mxu0 %vm220_vm1, %v1575_v33 }
0x206e   :  { %3914 = vmatpush3.bf16.msra.mxu0 %v4777_v21  ;;  %3906 = vmatpush3.bf16.msra.mxu1 %v4853_v34 }
0x206f   :  { %3915 = vmatprep.subr.bf16.mxu0 %v4416_v1  ;;  %3907 = vmatprep.subr.bf16.mxu1 %v4416_v1 }
0x2070   :  { %3909 = vmatprep.mubr.msk.bf16.mxu1 %vm4417_vm0, %v4416_v1  ;;  %3917 = vmatprep.mubr.msk.bf16.mxu0 %vm4417_vm0, %v4416_v1 }
0x2072   :  { %3916 = vmatpush3.bf16.msra.mxu0 %v4790_v22  ;;  %3908 = vmatpush3.bf16.msra.mxu1 %v4821_v54 }
0x2073   :  { %3929 = vmatprep.subr.bf16.mxu0 %v4416_v1  ;;  %3921 = vmatprep.subr.bf16.mxu1 %v4416_v1 }
0x212d   :  { %v4868_v39 = vpop.f32.mrf.mxu1  ;;  %v1656_v41 = vpop.f32.mrf.mxu0 }
0x212e   :  { %v1662_v6 = vadd.f32 %v1656_v41, %v178_v38 }
0x212f   :  { %v3895_v8 = vpop.f32.mrf.mxu1  ;;  %v3903_v42 = vpop.f32.mrf.mxu0 }
0x2130   :  { %4221 = vtanh.f32 %v1662_v6  ;;  %v3503_v0 = vmul.f32 -1.442695, %v1662_v6  ;;  %v56_v42 = vld [vmem:[%s5226_s0 + $0x70] sm:$0xff] }
0x2131   :  { %v1616_v43 = vpop.f32.mrf.mxu1  ;;  %v1659_v44 = vpop.f32.mrf.mxu0 }
0x2132   :  { %4223 = vpow2.f32 %v3503_v0 }
0x2133   :  { %v3896_v46 = vpop.f32.mrf.mxu1  ;;  %v3904_v47 = vpop.f32.mrf.mxu0 }
0x213d   :  { %v4222_v48 = vpop.eup %4221 }
0x213e   :  { %1672 = vrot.lane.b32.xlu1 %v4222_v48, %s4419_s27 }
0x213f   :  { %v4224_v49 = vpop.eup %4223 }
0x2140   :  { %v1666_v50 = vadd.f32 1.0, %v4224_v49 }
0x2142   :  { %4225 = vrcp.f32 %v1666_v50 }
0x214f   :  { %v4226_v52 = vpop.eup %4225 }
0x2150   :  { %v1670_v56 = vmul.f32 %v4226_v52, %v1565_v24 }
0x21b0   :  { %v1673_v53 = vpop.permute.xlu1 %1672 }
0x21b1   :  { %v1675_v25 = vmul.f32 %v4226_v52, %v1673_v53 }
0x21b3   :  { %1677 = vrot.lane.b32.xlu0 %v1675_v25, %s4419_s27 }
0x2225   :  { %v1678_v57 = vpop.permute.xlu0 %1677 }
0x2226   :  { %v1680_v59 = vadd.f32 %v1678_v57, %v1670_v56 }
0x2228   :  { %4227 = vtanh.f32 %v1680_v59 }
0x2235   :  { %v4228_v60 = vpop.eup %4227 }
0x2236   :  { %1683 = vrot.lane.b32.xlu1 %v4228_v60, %s4419_s27 }
0x223a   :  { %125 = vperm.xlu1 %4118, %v55_v61  }
0x22a8   :  { %v1684_v62 = vpop.permute.xlu1 %1683 }
0x22a9   :  { %v1686_v63 = vmul.f32 %v4226_v52, %v1684_v62 }
0x22ab   :  { %v1687_v5 = vpack.c.bf16 %v1686_v63, %v1686_v63 }
0x22ad   :  { %1689 = vrot.lane.b32.xlu0 %v1687_v5, %s4420_s15 }
0x22b5   :  { %v126_v10 = vpop.permute.xlu1 %125 }
0x22b6   :  { %v157_v11 = vmul.f32 %v4829_v55, %v126_v10 }
0x22b8   :  { %v179_v13 = vadd.f32 %v4835_v2, %v157_v11 }
0x231f   :  { %v1690_v9 = vpop.permute.xlu0 %1689 }
0x2320   :  { %3910 = vmatmul.mubr.msk.bf16.vlgmr.msra.gmra.mxu1 %vm220_vm1, %v1690_v9  ;;  %3918 = vmatmul.mubr.msk.bf16.vlgmr.msra.gmra.mxu0 %vm220_vm1, %v1690_v9 }
0x2321   :  { %3930 = vmatpush3.bf16.msra.mxu0 %v4777_v21  ;;  %3922 = vmatpush3.bf16.msra.mxu1 %v4853_v34 }
0x2322   :  { %3931 = vmatprep.subr.bf16.mxu0 %v4416_v1  ;;  %3923 = vmatprep.subr.bf16.mxu1 %v4416_v1 }
0x2323   :  { %3925 = vmatprep.mubr.msk.bf16.mxu1 %vm4417_vm0, %v4416_v1  ;;  %3933 = vmatprep.mubr.msk.bf16.mxu0 %vm4417_vm0, %v4416_v1 }
0x2325   :  { %3932 = vmatpush3.bf16.msra.mxu0 %v4790_v22  ;;  %3924 = vmatpush3.bf16.msra.mxu1 %v4821_v54 }
0x2326   :  { %3945 = vmatprep.subr.bf16.mxu0 %v4416_v1  ;;  %3937 = vmatprep.subr.bf16.mxu1 %v4416_v1 }
0x23e0   :  { %v4893_v14 = vpop.f32.mrf.mxu1  ;;  %v1771_v15 = vpop.f32.mrf.mxu0 }
0x23e1   :  { %v1777_v16 = vadd.f32 %v1771_v15, %v179_v13 }
0x23e2   :  { %v3911_v17 = vpop.f32.mrf.mxu1  ;;  %v3919_v19 = vpop.f32.mrf.mxu0 }
0x23e3   :  { %4229 = vtanh.f32 %v1777_v16  ;;  %v3506_v30 = vmul.f32 -1.442695, %v1777_v16  ;;  %v57_v17 = vld [vmem:[%s5226_s0 + $0x78] sm:$0xff] }
0x23e4   :  { %v1731_v20 = vpop.f32.mrf.mxu1  ;;  %v1774_v23 = vpop.f32.mrf.mxu0 }
0x23e5   :  { %4231 = vpow2.f32 %v3506_v30 }
0x23e6   :  { %v3912_v24 = vpop.f32.mrf.mxu1  ;;  %v3920_v27 = vpop.f32.mrf.mxu0 }
0x23e7   :  { %v4933_v24 = vld [vmem:[%s5231_s5 + $0x8] sm:$0xff]  }
0x23f0   :  { %v4230_v29 = vpop.eup %4229 }
0x23f1   :  { %1787 = vrot.lane.b32.xlu0 %v4230_v29, %s4419_s27  ;;  %v4941_v29 = vld [vmem:[%s5231_s5] sm:$0xff]  }
0x23f2   :  { %v4232_v31 = vpop.eup %4231 }
0x23f3   :  { %v1781_v32 = vadd.f32 1.0, %v4232_v31 }
0x23f5   :  { %4233 = vrcp.f32 %v1781_v32 }
0x2402   :  { %v4234_v33 = vpop.eup %4233 }
0x2403   :  { %v1785_v38 = vmul.f32 %v4234_v33, %v1680_v59 }
0x2463   :  { %v1788_v35 = vpop.permute.xlu0 %1787 }
0x2464   :  { %v1790_v26 = vmul.f32 %v4234_v33, %v1788_v35 }
0x2466   :  { %1792 = vrot.lane.b32.xlu1 %v1790_v26, %s4419_s27  ;;  %v4968_v26 = vld [vmem:[%s5232_s6] ss:$0 sm:$0xff] }
0x24d8   :  { %v1793_v41 = vpop.permute.xlu1 %1792 }
0x24d9   :  { %v1795_v6 = vadd.f32 %v1793_v41, %v1785_v38 }
0x24db   :  { %4235 = vtanh.f32 %v1795_v6 }
0x24e8   :  { %v4236_v8 = vpop.eup %4235 }
0x24e9   :  { %1798 = vrot.lane.b32.xlu0 %v4236_v8, %s4419_s27 }
0x24ed   :  { %130 = vperm.xlu0 %4117, %v56_v42  }
0x255b   :  { %v1799_v43 = vpop.permute.xlu0 %1798 }
0x255c   :  { %v1801_v44 = vmul.f32 %v4234_v33, %v1799_v43 }
0x255e   :  { %v1802_v46 = vpack.c.bf16 %v1801_v44, %v1801_v44 }
0x2560   :  { %1804 = vrot.lane.b32.xlu1 %v1802_v46, %s4420_s15 }
0x25d2   :  { %v1805_v47 = vpop.permute.xlu1 %1804 }
0x25d3   :  { %3926 = vmatmul.mubr.msk.bf16.vlgmr.msra.gmra.mxu1 %vm220_vm1, %v1805_v47  ;;  %3934 = vmatmul.mubr.msk.bf16.vlgmr.msra.gmra.mxu0 %vm220_vm1, %v1805_v47 }
0x25d4   :  { %3946 = vmatpush3.bf16.msra.mxu0 %v4777_v21  ;;  %3938 = vmatpush3.bf16.msra.mxu1 %v4853_v34  ;;  %v131_v21 = vpop.permute.xlu0 %130 }
0x25d5   :  { %3947 = vmatprep.subr.bf16.mxu0 %v4416_v1  ;;  %3939 = vmatprep.subr.bf16.mxu1 %v4416_v1  ;;  %v158_v48 = vmul.f32 %v4829_v55, %v131_v21 }
0x25d6   :  { %3941 = vmatprep.mubr.msk.bf16.mxu1 %vm4417_vm0, %v4416_v1  ;;  %3949 = vmatprep.mubr.msk.bf16.mxu0 %vm4417_vm0, %v4416_v1 }
0x25d7   :  { %v180_v0 = vadd.f32 %v4835_v2, %v158_v48 }
0x25d8   :  { %3948 = vmatpush3.bf16.msra.mxu0 %v4790_v22  ;;  %3940 = vmatpush3.bf16.msra.mxu1 %v4821_v54 }
0x25d9   :  { %3961 = vmatprep.subr.bf16.mxu0 %v4416_v1  ;;  %3953 = vmatprep.subr.bf16.mxu1 %v4416_v1 }
0x2693   :  { %v4918_v49 = vpop.f32.mrf.mxu1  ;;  %v1886_v50 = vpop.f32.mrf.mxu0 }
0x2694   :  { %v1892_v52 = vadd.f32 %v1886_v50, %v180_v0 }
0x2695   :  { %v3927_v53 = vpop.f32.mrf.mxu1  ;;  %v3935_v25 = vpop.f32.mrf.mxu0 }
0x2696   :  { %4237 = vtanh.f32 %v1892_v52  ;;  %v3509_v61 = vmul.f32 -1.442695, %v1892_v52 }
0x2697   :  { %v1846_v56 = vpop.f32.mrf.mxu1  ;;  %v1889_v22 = vpop.f32.mrf.mxu0 }
0x2698   :  { %4239 = vpow2.f32 %v3509_v61 }
0x2699   :  { %v3928_v57 = vpop.f32.mrf.mxu1  ;;  %v3936_v59 = vpop.f32.mrf.mxu0 }
0x26a3   :  { %v4238_v60 = vpop.eup %4237 }
0x26a4   :  { %1902 = vrot.lane.b32.xlu1 %v4238_v60, %s4419_s27 }
0x26a5   :  { %v4240_v62 = vpop.eup %4239 }
0x26a6   :  { %v1896_v63 = vadd.f32 1.0, %v4240_v62 }
0x26a8   :  { %4241 = vrcp.f32 %v1896_v63 }
0x26b5   :  { %v4242_v5 = vpop.eup %4241 }
0x26b6   :  { %v1900_v11 = vmul.f32 %v4242_v5, %v1795_v6 }
0x2716   :  { %v1903_v9 = vpop.permute.xlu1 %1902 }
0x2717   :  { %v1905_v10 = vmul.f32 %v4242_v5, %v1903_v9 }
0x2719   :  { %1907 = vrot.lane.b32.xlu0 %v1905_v10, %s4419_s27 }
0x278b   :  { %v1908_v13 = vpop.permute.xlu0 %1907 }
0x278c   :  { %v4922_v15 = vadd.f32 %v1908_v13, %v1900_v11 }
0x278e   :  { %4243 = vtanh.f32 %v4922_v15 }
0x279b   :  { %v4244_v16 = vpop.eup %4243 }
0x279c   :  { %1913 = vrot.lane.b32.xlu1 %v4244_v16, %s4419_s27 }
0x27a0   :  { %135 = vperm.xlu1 %4118, %v57_v17  }
0x280e   :  { %v1914_v19 = vpop.permute.xlu1 %1913 }
0x280f   :  { %v1916_v20 = vmul.f32 %v4242_v5, %v1914_v19 }
0x2811   :  { %v1917_v23 = vpack.c.bf16 %v1916_v20, %v1916_v20 }
0x2813   :  { %1919 = vrot.lane.b32.xlu0 %v1917_v23, %s4420_s15 }
0x2885   :  { %v1920_v27 = vpop.permute.xlu0 %1919 }
0x2886   :  { %3942 = vmatmul.mubr.msk.bf16.vlgmr.msra.gmra.mxu1 %vm220_vm1, %v1920_v27  ;;  %3950 = vmatmul.mubr.msk.bf16.vlgmr.msra.gmra.mxu0 %vm220_vm1, %v1920_v27 }
0x2887   :  { %3962 = vmatpush3.bf16.msra.mxu0 %v4933_v24  ;;  %3965 = vmatprep.mubr.msk.bf16.mxu0 %vm4417_vm0, %v4416_v1 }
0x2888   :  { %3963 = vmatprep.subr.bf16.mxu0 %v4416_v1  ;;  %3954 = vmatpush3.bf16.msra.mxu1 %v4853_v34  ;;  %v136_v34 = vpop.permute.xlu1 %135 }
0x2889   :  { %3955 = vmatprep.subr.bf16.mxu1 %v4416_v1  ;;  %3957 = vmatprep.mubr.msk.bf16.mxu1 %vm4417_vm0, %v4416_v1 }
0x288b   :  { %3964 = vmatpush3.bf16.msra.mxu0 %v4941_v29 }
0x288c   :  { %3956 = vmatpush3.bf16.msra.mxu1 %v4821_v54  ;;  %3977 = vmatprep.subr.bf16.mxu0 %v4416_v1  ;;  %v159_v54 = vmul.f32 %v4829_v55, %v136_v34  ;;  %v349_v55 = vadd.f32 %v4968_v26, %v4563_v36 }
0x288d   :  { %3969 = vmatprep.subr.bf16.mxu1 %v4416_v1 }
0x288e   :  { %3966 = vmatmul.mubr.bf16.vlgmr.msra.gmra.mxu0 %v4418_v4  ;;  %v181_v30 = vadd.f32 %v4835_v2, %v159_v54 }
0x288f   :  { %3978 = vmatpush3.bf16.msra.mxu0 %v4933_v24  ;;  %3981 = vmatprep.mubr.msk.bf16.mxu0 %vm4417_vm0, %v4416_v1 }
0x2890   :  { %3979 = vmatprep.subr.bf16.mxu0 %v4416_v1 }
0x2893   :  { %3980 = vmatpush3.bf16.msra.mxu0 %v4941_v29 }
0x2894   :  { %3993 = vmatprep.subr.bf16.mxu0 %v4416_v1 }
0x2946   :  { %v4963_v31 = vpop.f32.mrf.mxu1  ;;  %v2001_v32 = vpop.f32.mrf.mxu0 }
0x2947   :  { %v2007_v4 = vadd.f32 %v2001_v32, %v181_v30 }
0x2948   :  { %v3943_v33 = vpop.f32.mrf.mxu1  ;;  %v3951_v35 = vpop.f32.mrf.mxu0 }
0x2949   :  { %4245 = vtanh.f32 %v2007_v4  ;;  %v3512_v48 = vmul.f32 -1.442695, %v2007_v4  ;;  %v464_v33 = vadd.f32 %v4968_v26, %v4588_v3 }
0x294a   :  { %v1961_v38 = vpop.f32.mrf.mxu1  ;;  %v2004_v41 = vpop.f32.mrf.mxu0 }
0x294c   :  { %v3944_v6 = vpop.f32.mrf.mxu1  ;;  %v3952_v8 = vpop.f32.mrf.mxu0 }
0x294e   :  { %v2131_v2 = vpop.f32.mrf.mxu0 }
0x294f   :  { %v2137_v42 = vadd.f32 %v2131_v2, %v349_v55 }
0x2950   :  { %v3967_v43 = vpop.f32.mrf.mxu0 }
0x2951   :  { %4247 = vtanh.f32 %v2137_v42  ;;  %v3516_v0 = vmul.f32 -1.442695, %v2137_v42 }
0x2952   :  { %v2134_v44 = vpop.f32.mrf.mxu0  ;;  %4249 = vpow2.f32 %v3512_v48 }
0x2953   :  { %4251 = vpow2.f32 %v3516_v0 }
0x2954   :  { %v3968_v46 = vpop.f32.mrf.mxu0 }
0x2956   :  { %v4246_v47 = vpop.eup %4245 }
0x2957   :  { %2017 = vrot.lane.b32.xlu0 %v4246_v47, %s4419_s27 }
0x295e   :  { %v4248_v21 = vpop.eup %4247 }
0x295f   :  { %2147 = vrot.lane.b32.xlu1 %v4248_v21, %s4419_s27  ;;  %v4250_v50 = vpop.eup %4249 }
0x2960   :  { %v2011_v52 = vadd.f32 1.0, %v4250_v50  ;;  %v4252_v36 = vpop.eup %4251 }
0x2961   :  { %v2141_v53 = vadd.f32 1.0, %v4252_v36 }
0x2962   :  { %4253 = vrcp.f32 %v2011_v52 }
0x2963   :  { %4255 = vrcp.f32 %v2141_v53 }
0x296f   :  { %v4254_v25 = vpop.eup %4253 }
0x2970   :  { %v4256_v57 = vpop.eup %4255  ;;  %v2015_v61 = vmul.f32 %v4254_v25, %v4922_v15 }
0x2971   :  { %v2145_v5 = vmul.f32 0.0, %v4256_v57 }
0x29c9   :  { %v2018_v56 = vpop.permute.xlu0 %2017 }
0x29ca   :  { %v2020_v22 = vmul.f32 %v4254_v25, %v2018_v56 }
0x29cc   :  { %2022 = vrot.lane.b32.xlu0 %v2020_v22, %s4419_s27 }
0x29d1   :  { %v2148_v59 = vpop.permute.xlu1 %2147 }
0x29d2   :  { %v2150_v60 = vmul.f32 %v4256_v57, %v2148_v59 }
0x29d4   :  { %2152 = vrot.lane.b32.xlu1 %v2150_v60, %s4419_s27 }
0x2a3e   :  { %v2023_v62 = vpop.permute.xlu0 %2022 }
0x2a3f   :  { %v2025_v63 = vadd.f32 %v2023_v62, %v2015_v61 }
0x2a41   :  { %4257 = vtanh.f32 %v2025_v63 }
0x2a46   :  { %v2153_v9 = vpop.permute.xlu1 %2152 }
0x2a47   :  { %v2155_v10 = vadd.f32 %v2153_v9, %v2145_v5 }
0x2a49   :  { %4259 = vtanh.f32 %v2155_v10 }
0x2a4e   :  { %v4258_v11 = vpop.eup %4257 }
0x2a4f   :  { %2028 = vrot.lane.b32.xlu0 %v4258_v11, %s4419_s27 }
0x2a56   :  { %v4260_v13 = vpop.eup %4259 }
0x2a57   :  { %2158 = vrot.lane.b32.xlu1 %v4260_v13, %s4419_s27 }
0x2ac1   :  { %v2029_v16 = vpop.permute.xlu0 %2028 }
0x2ac2   :  { %v2031_v17 = vmul.f32 %v4254_v25, %v2029_v16  ;;  %v579_v25 = vadd.f32 %v4968_v26, %v4613_v37 }
0x2ac4   :  { %v2032_v19 = vpack.c.bf16 %v2031_v17, %v2031_v17 }
0x2ac6   :  { %2034 = vrot.lane.b32.xlu0 %v2032_v19, %s4420_s15 }
0x2ac9   :  { %v2159_v20 = vpop.permute.xlu1 %2158 }
0x2aca   :  { %v2161_v15 = vmul.f32 %v4256_v57, %v2159_v20 }
0x2acc   :  { %v2162_v23 = vpack.c.bf16 %v2161_v15, %v2161_v15 }
0x2ace   :  { %2165 = vrot.lane.b32.xlu1 %v2162_v23, %s4420_s15 }
0x2b38   :  { %v2035_v27 = vpop.permute.xlu0 %2034 }
0x2b39   :  { %3958 = vmatmul.mubr.msk.bf16.vlgmr.msra.gmra.mxu1 %vm220_vm1, %v2035_v27  ;;  %v694_v27 = vadd.f32 %v4968_v26, %v4638_v7 }
0x2b3a   :  { %3970 = vmatpush3.bf16.msra.mxu1 %v4933_v24  ;;  %3973 = vmatprep.mubr.msk.bf16.mxu1 %vm4417_vm0, %v4416_v1 }
0x2b3b   :  { %3971 = vmatprep.subr.bf16.mxu1 %v4416_v1 }
0x2b3e   :  { %3972 = vmatpush3.bf16.msra.mxu1 %v4941_v29 }
0x2b3f   :  { %3985 = vmatprep.subr.bf16.mxu1 %v4416_v1 }
0x2b40   :  { %v2166_v34 = vpop.permute.xlu1 %2165 }
0x2b41   :  { %3974 = vmatmul.mubr.msk.bf16.vlgmr.msra.gmra.mxu1 %vm220_vm1, %v2166_v34 }
0x2b42   :  { %3986 = vmatpush3.bf16.msra.mxu1 %v4933_v24  ;;  %3989 = vmatprep.mubr.msk.bf16.mxu1 %vm4417_vm0, %v4416_v1 }
0x2b43   :  { %3987 = vmatprep.subr.bf16.mxu1 %v4416_v1 }
0x2b46   :  { %3988 = vmatpush3.bf16.msra.mxu1 %v4941_v29 }
0x2b47   :  { %4001 = vmatprep.subr.bf16.mxu1 %v4416_v1 }
0x2bf9   :  { %v4995_v54 = vpop.f32.mrf.mxu1 }
0x2bfb   :  { %v3959_v30 = vpop.f32.mrf.mxu1 }
0x2bfd   :  { %v2076_v32 = vpop.f32.mrf.mxu1 }
0x2bff   :  { %v3960_v4 = vpop.f32.mrf.mxu1 }
0x2c01   :  { %v2204_v35 = vpop.f32.mrf.mxu1 }
0x2c02   :  { %v2210_v38 = vadd.f32 %v2204_v35, %v464_v33 }
0x2c03   :  { %v3975_v41 = vpop.f32.mrf.mxu1 }
0x2c04   :  { %4261 = vtanh.f32 %v2210_v38  ;;  %v3518_v2 = vmul.f32 -1.442695, %v2210_v38 }
0x2c05   :  { %v2207_v6 = vpop.f32.mrf.mxu1 }
0x2c06   :  { %4263 = vpow2.f32 %v3518_v2 }
0x2c07   :  { %v3976_v8 = vpop.f32.mrf.mxu1 }
0x2c11   :  { %v4262_v55 = vpop.eup %4261 }
0x2c12   :  { %2220 = vrot.lane.b32.xlu0 %v4262_v55, %s4419_s27 }
0x2c13   :  { %v4264_v42 = vpop.eup %4263 }
0x2c14   :  { %v2214_v43 = vadd.f32 1.0, %v4264_v42 }
0x2c16   :  { %4265 = vrcp.f32 %v2214_v43 }
0x2c23   :  { %v4266_v44 = vpop.eup %4265 }
0x2c24   :  { %v2218_v3 = vmul.f32 %v4266_v44, %v2155_v10 }
0x2c84   :  { %v2221_v46 = vpop.permute.xlu0 %2220 }
0x2c85   :  { %v2223_v47 = vmul.f32 %v4266_v44, %v2221_v46 }
0x2c87   :  { %2225 = vrot.lane.b32.xlu1 %v2223_v47, %s4419_s27 }
0x2cf9   :  { %v2226_v21 = vpop.permute.xlu1 %2225 }
0x2cfa   :  { %v2228_v48 = vadd.f32 %v2226_v21, %v2218_v3 }
0x2cfc   :  { %4267 = vtanh.f32 %v2228_v48 }
0x2d09   :  { %v4268_v0 = vpop.eup %4267 }
0x2d0a   :  { %2231 = vrot.lane.b32.xlu0 %v4268_v0, %s4419_s27 }
0x2d7c   :  { %v2232_v50 = vpop.permute.xlu0 %2231 }
0x2d7d   :  { %v2234_v52 = vmul.f32 %v4266_v44, %v2232_v50 }
0x2d7f   :  { %v2235_v36 = vpack.c.bf16 %v2234_v52, %v2234_v52 }
0x2d81   :  { %2238 = vrot.lane.b32.xlu1 %v2235_v36, %s4420_s15 }
0x2df3   :  { %v2239_v53 = vpop.permute.xlu1 %2238 }
0x2df4   :  { %3982 = vmatmul.mubr.msk.bf16.vlgmr.msra.gmra.mxu0 %vm220_vm1, %v2239_v53 }
0x2df5   :  { %3994 = vmatpush3.bf16.msra.mxu0 %v4933_v24  ;;  %3997 = vmatprep.mubr.msk.bf16.mxu0 %vm4417_vm0, %v4416_v1 }
0x2df6   :  { %3995 = vmatprep.subr.bf16.mxu0 %v4416_v1 }
0x2df9   :  { %3996 = vmatpush3.bf16.msra.mxu0 %v4941_v29 }
0x2dfa   :  { %4009 = vmatprep.subr.bf16.mxu0 %v4416_v1 }
0x2eb4   :  { %v2277_v56 = vpop.f32.mrf.mxu0 }
0x2eb5   :  { %v2283_v22 = vadd.f32 %v2277_v56, %v579_v25 }
0x2eb6   :  { %v3983_v57 = vpop.f32.mrf.mxu0 }
0x2eb7   :  { %4269 = vtanh.f32 %v2283_v22  ;;  %v3520_v62 = vmul.f32 -1.442695, %v2283_v22 }
0x2eb8   :  { %v2280_v59 = vpop.f32.mrf.mxu0 }
0x2eb9   :  { %4271 = vpow2.f32 %v3520_v62 }
0x2eba   :  { %v3984_v60 = vpop.f32.mrf.mxu0 }
0x2ec4   :  { %v4270_v61 = vpop.eup %4269 }
0x2ec5   :  { %2293 = vrot.lane.b32.xlu0 %v4270_v61, %s4419_s27 }
0x2ec6   :  { %v4272_v63 = vpop.eup %4271 }
0x2ec7   :  { %v2287_v5 = vadd.f32 1.0, %v4272_v63 }
0x2ec9   :  { %4273 = vrcp.f32 %v2287_v5 }
0x2ed6   :  { %v4274_v9 = vpop.eup %4273 }
0x2ed7   :  { %v2291_v37 = vmul.f32 %v4274_v9, %v2228_v48  ;;  %v809_v48 = vadd.f32 %v4968_v26, %v4663_v40 }
0x2f37   :  { %v2294_v10 = vpop.permute.xlu0 %2293 }
0x2f38   :  { %v2296_v11 = vmul.f32 %v4274_v9, %v2294_v10 }
0x2f3a   :  { %2298 = vrot.lane.b32.xlu1 %v2296_v11, %s4419_s27 }
0x2fac   :  { %v2299_v13 = vpop.permute.xlu1 %2298 }
0x2fad   :  { %v2301_v16 = vadd.f32 %v2299_v13, %v2291_v37  ;;  %v924_v13 = vadd.f32 %v4968_v26, %v4688_v12 }
0x2faf   :  { %4275 = vtanh.f32 %v2301_v16 }
0x2fbc   :  { %v4276_v17 = vpop.eup %4275 }
0x2fbd   :  { %2304 = vrot.lane.b32.xlu0 %v4276_v17, %s4419_s27 }
0x302f   :  { %v2305_v19 = vpop.permute.xlu0 %2304 }
0x3030   :  { %v2307_v20 = vmul.f32 %v4274_v9, %v2305_v19 }
0x3032   :  { %v2308_v15 = vpack.c.bf16 %v2307_v20, %v2307_v20 }
0x3034   :  { %2311 = vrot.lane.b32.xlu1 %v2308_v15, %s4420_s15 }
0x30a6   :  { %v2312_v23 = vpop.permute.xlu1 %2311 }
0x30a7   :  { %3990 = vmatmul.mubr.msk.bf16.vlgmr.msra.gmra.mxu1 %vm220_vm1, %v2312_v23 }
0x30a8   :  { %4002 = vmatpush3.bf16.msra.mxu1 %v4933_v24  ;;  %4005 = vmatprep.mubr.msk.bf16.mxu1 %vm4417_vm0, %v4416_v1 }
0x30a9   :  { %4003 = vmatprep.subr.bf16.mxu1 %v4416_v1 }
0x30ac   :  { %4004 = vmatpush3.bf16.msra.mxu1 %v4941_v29 }
0x30ad   :  { %4017 = vmatprep.subr.bf16.mxu1 %v4416_v1 }
0x3167   :  { %v2350_v34 = vpop.f32.mrf.mxu1 }
0x3168   :  { %v2356_v30 = vadd.f32 %v2350_v34, %v694_v27 }
0x3169   :  { %v3991_v32 = vpop.f32.mrf.mxu1 }
0x316a   :  { %4277 = vtanh.f32 %v2356_v30  ;;  %v3522_v38 = vmul.f32 -1.442695, %v2356_v30 }
0x316b   :  { %v2353_v4 = vpop.f32.mrf.mxu1 }
0x316c   :  { %4279 = vpow2.f32 %v3522_v38 }
0x316d   :  { %v3992_v33 = vpop.f32.mrf.mxu1 }
0x3177   :  { %v4278_v35 = vpop.eup %4277 }
0x3178   :  { %2366 = vrot.lane.b32.xlu0 %v4278_v35, %s4419_s27 }
0x3179   :  { %v4280_v41 = vpop.eup %4279 }
0x317a   :  { %v2360_v6 = vadd.f32 1.0, %v4280_v41 }
0x317c   :  { %4281 = vrcp.f32 %v2360_v6 }
0x3189   :  { %v4282_v8 = vpop.eup %4281 }
0x318a   :  { %v2364_v7 = vmul.f32 %v4282_v8, %v2301_v16 }
0x31ea   :  { %v2367_v55 = vpop.permute.xlu0 %2366 }
0x31eb   :  { %v2369_v2 = vmul.f32 %v4282_v8, %v2367_v55 }
0x31ed   :  { %2371 = vrot.lane.b32.xlu1 %v2369_v2, %s4419_s27 }
0x325f   :  { %v2372_v42 = vpop.permute.xlu1 %2371 }
0x3260   :  { %v2374_v43 = vadd.f32 %v2372_v42, %v2364_v7  ;;  %v1039_v7 = vadd.f32 %v4968_v26, %v4713_v45 }
0x3262   :  { %4283 = vtanh.f32 %v2374_v43 }
0x326f   :  { %v4284_v44 = vpop.eup %4283 }
0x3270   :  { %2377 = vrot.lane.b32.xlu0 %v4284_v44, %s4419_s27 }
0x32e2   :  { %v2378_v46 = vpop.permute.xlu0 %2377 }
0x32e3   :  { %v2380_v47 = vmul.f32 %v4282_v8, %v2378_v46 }
0x32e5   :  { %v2381_v3 = vpack.c.bf16 %v2380_v47, %v2380_v47 }
0x32e7   :  { %2384 = vrot.lane.b32.xlu1 %v2381_v3, %s4420_s15 }
0x3359   :  { %v2385_v21 = vpop.permute.xlu1 %2384 }
0x335a   :  { %3998 = vmatmul.mubr.msk.bf16.vlgmr.msra.gmra.mxu0 %vm220_vm1, %v2385_v21 }
0x335b   :  { %4010 = vmatpush3.bf16.msra.mxu0 %v4933_v24  ;;  %4013 = vmatprep.mubr.msk.bf16.mxu0 %vm4417_vm0, %v4416_v1 }
0x335c   :  { %4011 = vmatprep.subr.bf16.mxu0 %v4416_v1 }
0x335f   :  { %4012 = vmatpush3.bf16.msra.mxu0 %v4941_v29 }
0x3360   :  { %4025 = vmatprep.subr.bf16.mxu0 %v4416_v1 }
0x341a   :  { %v2423_v0 = vpop.f32.mrf.mxu0 }
0x341b   :  { %v2429_v50 = vadd.f32 %v2423_v0, %v809_v48 }
0x341c   :  { %v3999_v52 = vpop.f32.mrf.mxu0 }
0x341d   :  { %4285 = vtanh.f32 %v2429_v50  ;;  %v3524_v56 = vmul.f32 -1.442695, %v2429_v50 }
0x341e   :  { %v2426_v36 = vpop.f32.mrf.mxu0 }
0x341f   :  { %4287 = vpow2.f32 %v3524_v56 }
0x3420   :  { %v4000_v53 = vpop.f32.mrf.mxu0 }
0x342a   :  { %v4286_v25 = vpop.eup %4285 }
0x342b   :  { %2439 = vrot.lane.b32.xlu0 %v4286_v25, %s4419_s27 }
0x342c   :  { %v4288_v22 = vpop.eup %4287 }
0x342d   :  { %v2433_v57 = vadd.f32 1.0, %v4288_v22 }
0x342f   :  { %4289 = vrcp.f32 %v2433_v57 }
0x343c   :  { %v4290_v59 = vpop.eup %4289 }
0x343d   :  { %v2437_v40 = vmul.f32 %v4290_v59, %v2374_v43 }
0x349d   :  { %v2440_v60 = vpop.permute.xlu0 %2439 }
0x349e   :  { %v2442_v61 = vmul.f32 %v4290_v59, %v2440_v60 }
0x34a0   :  { %2444 = vrot.lane.b32.xlu1 %v2442_v61, %s4419_s27  ;;  %v1154_v61 = vadd.f32 %v4968_v26, %v4738_v18 }
0x3512   :  { %v2445_v62 = vpop.permute.xlu1 %2444 }
0x3513   :  { %v2447_v63 = vadd.f32 %v2445_v62, %v2437_v40 }
0x3515   :  { %4291 = vtanh.f32 %v2447_v63 }
0x3522   :  { %v4292_v5 = vpop.eup %4291 }
0x3523   :  { %2450 = vrot.lane.b32.xlu0 %v4292_v5, %s4419_s27 }
0x3595   :  { %v2451_v9 = vpop.permute.xlu0 %2450 }
0x3596   :  { %v2453_v10 = vmul.f32 %v4290_v59, %v2451_v9 }
0x3598   :  { %v2454_v11 = vpack.c.bf16 %v2453_v10, %v2453_v10 }
0x359a   :  { %2457 = vrot.lane.b32.xlu1 %v2454_v11, %s4420_s15 }
0x360c   :  { %v2458_v37 = vpop.permute.xlu1 %2457 }
0x360d   :  { %4006 = vmatmul.mubr.msk.bf16.vlgmr.msra.gmra.mxu1 %vm220_vm1, %v2458_v37 }
0x360e   :  { %4018 = vmatpush3.bf16.msra.mxu1 %v4933_v24  ;;  %4021 = vmatprep.mubr.msk.bf16.mxu1 %vm4417_vm0, %v4416_v1 }
0x360f   :  { %4019 = vmatprep.subr.bf16.mxu1 %v4416_v1 }
0x3612   :  { %4020 = vmatpush3.bf16.msra.mxu1 %v4941_v29 }
0x3613   :  { %4033 = vmatprep.subr.bf16.mxu1 %v4416_v1 }
0x36cd   :  { %v2496_v16 = vpop.f32.mrf.mxu1 }
0x36ce   :  { %v2502_v17 = vadd.f32 %v2496_v16, %v924_v13 }
0x36cf   :  { %v4007_v19 = vpop.f32.mrf.mxu1 }
0x36d0   :  { %4293 = vtanh.f32 %v2502_v17  ;;  %v3526_v27 = vmul.f32 -1.442695, %v2502_v17 }
0x36d1   :  { %v2499_v20 = vpop.f32.mrf.mxu1 }
0x36d2   :  { %4295 = vpow2.f32 %v3526_v27 }
0x36d3   :  { %v4008_v15 = vpop.f32.mrf.mxu1 }
0x36dd   :  { %v4294_v23 = vpop.eup %4293 }
0x36de   :  { %2512 = vrot.lane.b32.xlu0 %v4294_v23, %s4419_s27 }
0x36df   :  { %v4296_v34 = vpop.eup %4295 }
0x36e0   :  { %v2506_v30 = vadd.f32 1.0, %v4296_v34 }
0x36e2   :  { %4297 = vrcp.f32 %v2506_v30 }
0x36ef   :  { %v4298_v32 = vpop.eup %4297 }
0x36f0   :  { %v2510_v12 = vmul.f32 %v4298_v32, %v2447_v63 }
0x3750   :  { %v2513_v4 = vpop.permute.xlu0 %2512 }
0x3751   :  { %v2515_v33 = vmul.f32 %v4298_v32, %v2513_v4  ;;  %v1269_v4 = vadd.f32 %v4968_v26, %v4763_v51 }
0x3753   :  { %2517 = vrot.lane.b32.xlu1 %v2515_v33, %s4419_s27 }
0x37c5   :  { %v2518_v35 = vpop.permute.xlu1 %2517 }
0x37c6   :  { %v2520_v38 = vadd.f32 %v2518_v35, %v2510_v12 }
0x37c8   :  { %4299 = vtanh.f32 %v2520_v38 }
0x37d5   :  { %v4300_v41 = vpop.eup %4299 }
0x37d6   :  { %2523 = vrot.lane.b32.xlu0 %v4300_v41, %s4419_s27 }
0x3848   :  { %v2524_v6 = vpop.permute.xlu0 %2523 }
0x3849   :  { %v2526_v8 = vmul.f32 %v4298_v32, %v2524_v6 }
0x384b   :  { %v2527_v55 = vpack.c.bf16 %v2526_v8, %v2526_v8 }
0x384d   :  { %2530 = vrot.lane.b32.xlu1 %v2527_v55, %s4420_s15 }
0x38bf   :  { %v2531_v2 = vpop.permute.xlu1 %2530 }
0x38c0   :  { %4014 = vmatmul.mubr.msk.bf16.vlgmr.msra.gmra.mxu0 %vm220_vm1, %v2531_v2 }
0x38c1   :  { %4026 = vmatpush3.bf16.msra.mxu0 %v4933_v24  ;;  %4029 = vmatprep.mubr.msk.bf16.mxu0 %vm4417_vm0, %v4416_v1 }
0x38c2   :  { %4027 = vmatprep.subr.bf16.mxu0 %v4416_v1 }
0x38c5   :  { %4028 = vmatpush3.bf16.msra.mxu0 %v4941_v29 }
0x38c6   :  { %4041 = vmatprep.subr.bf16.mxu0 %v4416_v1 }
0x3980   :  { %v2569_v42 = vpop.f32.mrf.mxu0 }
0x3981   :  { %v2575_v43 = vadd.f32 %v2569_v42, %v1039_v7 }
0x3982   :  { %v4015_v44 = vpop.f32.mrf.mxu0 }
0x3983   :  { %4301 = vtanh.f32 %v2575_v43  ;;  %v3528_v21 = vmul.f32 -1.442695, %v2575_v43 }
0x3984   :  { %v2572_v46 = vpop.f32.mrf.mxu0 }
0x3985   :  { %4303 = vpow2.f32 %v3528_v21 }
0x3986   :  { %v4016_v47 = vpop.f32.mrf.mxu0 }
0x3990   :  { %v4302_v3 = vpop.eup %4301 }
0x3991   :  { %2585 = vrot.lane.b32.xlu0 %v4302_v3, %s4419_s27 }
0x3992   :  { %v4304_v48 = vpop.eup %4303 }
0x3993   :  { %v2579_v0 = vadd.f32 1.0, %v4304_v48 }
0x3995   :  { %4305 = vrcp.f32 %v2579_v0 }
0x39a2   :  { %v4306_v50 = vpop.eup %4305 }
0x39a3   :  { %v2583_v45 = vmul.f32 %v4306_v50, %v2520_v38 }
0x3a03   :  { %v2586_v52 = vpop.permute.xlu0 %2585 }
0x3a04   :  { %v2588_v36 = vmul.f32 %v4306_v50, %v2586_v52 }
0x3a06   :  { %2590 = vrot.lane.b32.xlu1 %v2588_v36, %s4419_s27 }
0x3a78   :  { %v2591_v53 = vpop.permute.xlu1 %2590 }
0x3a79   :  { %v2593_v25 = vadd.f32 %v2591_v53, %v2583_v45 }
0x3a7b   :  { %4307 = vtanh.f32 %v2593_v25 }
0x3a88   :  { %v4308_v56 = vpop.eup %4307 }
0x3a89   :  { %2596 = vrot.lane.b32.xlu0 %v4308_v56, %s4419_s27 }
0x3afb   :  { %v2597_v22 = vpop.permute.xlu0 %2596 }
0x3afc   :  { %v2599_v57 = vmul.f32 %v4306_v50, %v2597_v22  ;;  %v1384_v50 = vadd.f32 %v4968_v26, %v4798_v28 }
0x3afe   :  { %v2600_v59 = vpack.c.bf16 %v2599_v57, %v2599_v57 }
0x3b00   :  { %2603 = vrot.lane.b32.xlu1 %v2600_v59, %s4420_s15 }
0x3b72   :  { %v2604_v60 = vpop.permute.xlu1 %2603 }
0x3b73   :  { %4022 = vmatmul.mubr.msk.bf16.vlgmr.msra.gmra.mxu1 %vm220_vm1, %v2604_v60 }
0x3b74   :  { %4034 = vmatpush3.bf16.msra.mxu1 %v4933_v24  ;;  %4037 = vmatprep.mubr.msk.bf16.mxu1 %vm4417_vm0, %v4416_v1 }
0x3b75   :  { %4035 = vmatprep.subr.bf16.mxu1 %v4416_v1 }
0x3b78   :  { %4036 = vmatpush3.bf16.msra.mxu1 %v4941_v29 }
0x3b79   :  { %4049 = vmatprep.subr.bf16.mxu1 %v4416_v1 }
0x3c33   :  { %v2642_v40 = vpop.f32.mrf.mxu1 }
0x3c34   :  { %v2648_v62 = vadd.f32 %v2642_v40, %v1154_v61 }
0x3c35   :  { %v4023_v63 = vpop.f32.mrf.mxu1 }
0x3c36   :  { %4309 = vtanh.f32 %v2648_v62  ;;  %v3530_v11 = vmul.f32 -1.442695, %v2648_v62 }
0x3c37   :  { %v2645_v5 = vpop.f32.mrf.mxu1 }
0x3c38   :  { %4311 = vpow2.f32 %v3530_v11 }
0x3c39   :  { %v4024_v9 = vpop.f32.mrf.mxu1 }
0x3c43   :  { %v4310_v10 = vpop.eup %4309 }
0x3c44   :  { %2658 = vrot.lane.b32.xlu0 %v4310_v10, %s4419_s27 }
0x3c45   :  { %v4312_v37 = vpop.eup %4311 }
0x3c46   :  { %v2652_v13 = vadd.f32 1.0, %v4312_v37 }
0x3c48   :  { %4313 = vrcp.f32 %v2652_v13  ;;  %v1499_v13 = vadd.f32 %v4968_v26, %v4838_v58 }
0x3c55   :  { %v4314_v16 = vpop.eup %4313 }
0x3c56   :  { %v2656_v18 = vmul.f32 %v4314_v16, %v2593_v25 }
0x3cb6   :  { %v2659_v17 = vpop.permute.xlu0 %2658 }
0x3cb7   :  { %v2661_v19 = vmul.f32 %v4314_v16, %v2659_v17 }
0x3cb9   :  { %2663 = vrot.lane.b32.xlu1 %v2661_v19, %s4419_s27 }
0x3d2b   :  { %v2664_v20 = vpop.permute.xlu1 %2663 }
0x3d2c   :  { %v2666_v15 = vadd.f32 %v2664_v20, %v2656_v18 }
0x3d2e   :  { %4315 = vtanh.f32 %v2666_v15 }
0x3d3b   :  { %v4316_v23 = vpop.eup %4315 }
0x3d3c   :  { %2669 = vrot.lane.b32.xlu0 %v4316_v23, %s4419_s27 }
0x3dae   :  { %v2670_v27 = vpop.permute.xlu0 %2669 }
0x3daf   :  { %v2672_v34 = vmul.f32 %v4314_v16, %v2670_v27 }
0x3db1   :  { %v2673_v30 = vpack.c.bf16 %v2672_v34, %v2672_v34 }
0x3db3   :  { %2676 = vrot.lane.b32.xlu1 %v2673_v30, %s4420_s15 }
0x3e25   :  { %v2677_v32 = vpop.permute.xlu1 %2676 }
0x3e26   :  { %4030 = vmatmul.mubr.msk.bf16.vlgmr.msra.gmra.mxu0 %vm220_vm1, %v2677_v32 }
0x3e27   :  { %4042 = vmatpush3.bf16.msra.mxu0 %v4933_v24  ;;  %4045 = vmatprep.mubr.msk.bf16.mxu0 %vm4417_vm0, %v4416_v1 }
0x3e28   :  { %4043 = vmatprep.subr.bf16.mxu0 %v4416_v1 }
0x3e2b   :  { %4044 = vmatpush3.bf16.msra.mxu0 %v4941_v29 }
0x3e2c   :  { %4057 = vmatprep.subr.bf16.mxu0 %v4416_v1 }
0x3ee6   :  { %v2715_v33 = vpop.f32.mrf.mxu0 }
0x3ee7   :  { %v2721_v12 = vadd.f32 %v2715_v33, %v1269_v4 }
0x3ee8   :  { %v4031_v35 = vpop.f32.mrf.mxu0 }
0x3ee9   :  { %4317 = vtanh.f32 %v2721_v12  ;;  %v3532_v8 = vmul.f32 -1.442695, %v2721_v12 }
0x3eea   :  { %v2718_v38 = vpop.f32.mrf.mxu0 }
0x3eeb   :  { %4319 = vpow2.f32 %v3532_v8 }
0x3eec   :  { %v4032_v41 = vpop.f32.mrf.mxu0 }
0x3ef6   :  { %v4318_v6 = vpop.eup %4317 }
0x3ef7   :  { %2731 = vrot.lane.b32.xlu0 %v4318_v6, %s4419_s27 }
0x3ef8   :  { %v4320_v55 = vpop.eup %4319 }
0x3ef9   :  { %v2725_v2 = vadd.f32 1.0, %v4320_v55  ;;  %v1614_v55 = vadd.f32 %v4968_v26, %v4868_v39 }
0x3efb   :  { %4321 = vrcp.f32 %v2725_v2 }
0x3f08   :  { %v4322_v7 = vpop.eup %4321 }
0x3f09   :  { %v2729_v51 = vmul.f32 %v4322_v7, %v2666_v15 }
0x3f69   :  { %v2732_v42 = vpop.permute.xlu0 %2731 }
0x3f6a   :  { %v2734_v43 = vmul.f32 %v4322_v7, %v2732_v42 }
0x3f6c   :  { %2736 = vrot.lane.b32.xlu1 %v2734_v43, %s4419_s27 }
0x3fde   :  { %v2737_v44 = vpop.permute.xlu1 %2736 }
0x3fdf   :  { %v2739_v46 = vadd.f32 %v2737_v44, %v2729_v51 }
0x3fe1   :  { %4323 = vtanh.f32 %v2739_v46 }
0x3fee   :  { %v4324_v47 = vpop.eup %4323 }
0x3fef   :  { %2742 = vrot.lane.b32.xlu0 %v4324_v47, %s4419_s27 }
0x4061   :  { %v2743_v3 = vpop.permute.xlu0 %2742 }
0x4062   :  { %v2745_v21 = vmul.f32 %v4322_v7, %v2743_v3 }
0x4064   :  { %v2746_v48 = vpack.c.bf16 %v2745_v21, %v2745_v21 }
0x4066   :  { %2749 = vrot.lane.b32.xlu1 %v2746_v48, %s4420_s15 }
0x40d8   :  { %v2750_v0 = vpop.permute.xlu1 %2749 }
0x40d9   :  { %4038 = vmatmul.mubr.msk.bf16.vlgmr.msra.gmra.mxu1 %vm220_vm1, %v2750_v0 }
0x40da   :  { %4050 = vmatpush3.bf16.msra.mxu1 %v4933_v24  ;;  %4053 = vmatprep.mubr.msk.bf16.mxu1 %vm4417_vm0, %v4416_v1 }
0x40db   :  { %4051 = vmatprep.subr.bf16.mxu1 %v4416_v1 }
0x40de   :  { %4052 = vmatpush3.bf16.msra.mxu1 %v4941_v29 }
0x40df   :  { %4065 = vmatprep.subr.bf16.mxu1 %v4416_v1 }
0x4199   :  { %v2788_v52 = vpop.f32.mrf.mxu1 }
0x419a   :  { %v2794_v36 = vadd.f32 %v2788_v52, %v1384_v50 }
0x419b   :  { %v4039_v45 = vpop.f32.mrf.mxu1 }
0x419c   :  { %4325 = vtanh.f32 %v2794_v36  ;;  %v3534_v22 = vmul.f32 -1.442695, %v2794_v36 }
0x419d   :  { %v2791_v53 = vpop.f32.mrf.mxu1 }
0x419e   :  { %4327 = vpow2.f32 %v3534_v22  ;;  %v1729_v22 = vadd.f32 %v4968_v26, %v4893_v14 }
0x419f   :  { %v4040_v25 = vpop.f32.mrf.mxu1 }
0x41a9   :  { %v4326_v56 = vpop.eup %4325 }
0x41aa   :  { %2804 = vrot.lane.b32.xlu0 %v4326_v56, %s4419_s27 }
0x41ab   :  { %v4328_v57 = vpop.eup %4327 }
0x41ac   :  { %v2798_v59 = vadd.f32 1.0, %v4328_v57 }
0x41ae   :  { %4329 = vrcp.f32 %v2798_v59 }
0x41bb   :  { %v4330_v60 = vpop.eup %4329 }
0x41bc   :  { %v2802_v28 = vmul.f32 %v4330_v60, %v2739_v46 }
0x421c   :  { %v2805_v61 = vpop.permute.xlu0 %2804 }
0x421d   :  { %v2807_v40 = vmul.f32 %v4330_v60, %v2805_v61 }
0x421f   :  { %2809 = vrot.lane.b32.xlu1 %v2807_v40, %s4419_s27 }
0x4291   :  { %v2810_v62 = vpop.permute.xlu1 %2809 }
0x4292   :  { %v2812_v63 = vadd.f32 %v2810_v62, %v2802_v28 }
0x4294   :  { %4331 = vtanh.f32 %v2812_v63 }
0x42a1   :  { %v4332_v5 = vpop.eup %4331 }
0x42a2   :  { %2815 = vrot.lane.b32.xlu0 %v4332_v5, %s4419_s27 }
0x4314   :  { %v2816_v9 = vpop.permute.xlu0 %2815 }
0x4315   :  { %v2818_v10 = vmul.f32 %v4330_v60, %v2816_v9 }
0x4317   :  { %v2819_v11 = vpack.c.bf16 %v2818_v10, %v2818_v10 }
0x4319   :  { %2822 = vrot.lane.b32.xlu1 %v2819_v11, %s4420_s15 }
0x438b   :  { %v2823_v37 = vpop.permute.xlu1 %2822 }
0x438c   :  { %4046 = vmatmul.mubr.msk.bf16.vlgmr.msra.gmra.mxu0 %vm220_vm1, %v2823_v37 }
0x438d   :  { %4058 = vmatpush3.bf16.msra.mxu0 %v4933_v24  ;;  %4061 = vmatprep.mubr.msk.bf16.mxu0 %vm4417_vm0, %v4416_v1 }
0x438e   :  { %4059 = vmatprep.subr.bf16.mxu0 %v4416_v1 }
0x4391   :  { %4060 = vmatpush3.bf16.msra.mxu0 %v4941_v29 }
0x4392   :  { %4073 = vmatprep.subr.bf16.mxu0 %v4416_v1 }
0x444c   :  { %v2861_v16 = vpop.f32.mrf.mxu0 }
0x444d   :  { %v2867_v17 = vadd.f32 %v2861_v16, %v1499_v13 }
0x444e   :  { %v4047_v19 = vpop.f32.mrf.mxu0 }
0x444f   :  { %4333 = vtanh.f32 %v2867_v17  ;;  %v3536_v23 = vmul.f32 -1.442695, %v2867_v17 }
0x4450   :  { %v2864_v18 = vpop.f32.mrf.mxu0 }
0x4451   :  { %4335 = vpow2.f32 %v3536_v23  ;;  %v4391_v18 = vld [vmem:[%s5231_s5 + $0x8] sm:$0xff]  }
0x4452   :  { %v4048_v20 = vpop.f32.mrf.mxu0 }
0x4453   :  { %v4392_v20 = vld [vmem:[%s5231_s5] sm:$0xff]  }
0x445c   :  { %v4334_v15 = vpop.eup %4333 }
0x445d   :  { %2877 = vrot.lane.b32.xlu0 %v4334_v15, %s4419_s27  ;;  %v1844_v15 = vadd.f32 %v4968_v26, %v4918_v49 }
0x445e   :  { %v4336_v27 = vpop.eup %4335 }
0x445f   :  { %v2871_v34 = vadd.f32 1.0, %v4336_v27 }
0x4461   :  { %4337 = vrcp.f32 %v2871_v34 }
0x446e   :  { %v4338_v30 = vpop.eup %4337 }
0x446f   :  { %v2875_v58 = vmul.f32 %v4338_v30, %v2812_v63 }
0x44cf   :  { %v2878_v32 = vpop.permute.xlu0 %2877 }
0x44d0   :  { %v2880_v4 = vmul.f32 %v4338_v30, %v2878_v32 }
0x44d2   :  { %2882 = vrot.lane.b32.xlu1 %v2880_v4, %s4419_s27 }
0x4544   :  { %v2883_v33 = vpop.permute.xlu1 %2882 }
0x4545   :  { %v2885_v12 = vadd.f32 %v2883_v33, %v2875_v58 }
0x4547   :  { %4339 = vtanh.f32 %v2885_v12 }
0x4554   :  { %v4340_v35 = vpop.eup %4339 }
0x4555   :  { %2888 = vrot.lane.b32.xlu0 %v4340_v35, %s4419_s27 }
0x45c7   :  { %v2889_v38 = vpop.permute.xlu0 %2888 }
0x45c8   :  { %v2891_v41 = vmul.f32 %v4338_v30, %v2889_v38 }
0x45ca   :  { %v2892_v6 = vpack.c.bf16 %v2891_v41, %v2891_v41 }
0x45cc   :  { %2895 = vrot.lane.b32.xlu1 %v2892_v6, %s4420_s15 }
0x463e   :  { %v2896_v8 = vpop.permute.xlu1 %2895 }
0x463f   :  { %4054 = vmatmul.mubr.msk.bf16.vlgmr.msra.gmra.mxu1 %vm220_vm1, %v2896_v8 }
0x4640   :  { %4066 = vmatpush3.bf16.msra.mxu1 %v4933_v24  ;;  %4069 = vmatprep.mubr.msk.bf16.mxu1 %vm4417_vm0, %v4416_v1 }
0x4641   :  { %4067 = vmatprep.subr.bf16.mxu1 %v4416_v1 }
0x4644   :  { %4068 = vmatpush3.bf16.msra.mxu1 %v4941_v29 }
0x4645   :  { %4081 = vmatprep.subr.bf16.mxu1 %v4416_v1 }
0x46ff   :  { %v2934_v2 = vpop.f32.mrf.mxu1 }
0x4700   :  { %v2940_v7 = vadd.f32 %v2934_v2, %v1614_v55 }
0x4701   :  { %v4055_v42 = vpop.f32.mrf.mxu1 }
0x4702   :  { %4341 = vtanh.f32 %v2940_v7  ;;  %v3538_v46 = vmul.f32 -1.442695, %v2940_v7 }
0x4703   :  { %v2937_v43 = vpop.f32.mrf.mxu1 }
0x4704   :  { %4343 = vpow2.f32 %v3538_v46  ;;  %v4393_v43 = vld [vmem:[%s5232_s6] ss:$0 sm:$0xff] }
0x4705   :  { %v4056_v51 = vpop.f32.mrf.mxu1 }
0x4706   :  { %v1959_v51 = vadd.f32 %v4393_v43, %v4963_v31 }
0x470f   :  { %v4342_v44 = vpop.eup %4341 }
0x4710   :  { %2950 = vrot.lane.b32.xlu0 %v4342_v44, %s4419_s27 }
0x4711   :  { %v4344_v47 = vpop.eup %4343 }
0x4712   :  { %v2944_v3 = vadd.f32 1.0, %v4344_v47 }
0x4714   :  { %4345 = vrcp.f32 %v2944_v3 }
0x4721   :  { %v4346_v21 = vpop.eup %4345 }
0x4722   :  { %v2948_v39 = vmul.f32 %v4346_v21, %v2885_v12 }
0x4782   :  { %v2951_v48 = vpop.permute.xlu0 %2950 }
0x4783   :  { %v2953_v0 = vmul.f32 %v4346_v21, %v2951_v48 }
0x4785   :  { %2955 = vrot.lane.b32.xlu1 %v2953_v0, %s4419_s27 }
0x47f7   :  { %v2956_v50 = vpop.permute.xlu1 %2955 }
0x47f8   :  { %v2958_v52 = vadd.f32 %v2956_v50, %v2948_v39 }
0x47fa   :  { %4347 = vtanh.f32 %v2958_v52 }
0x4807   :  { %v4348_v36 = vpop.eup %4347 }
0x4808   :  { %2961 = vrot.lane.b32.xlu0 %v4348_v36, %s4419_s27 }
0x487a   :  { %v2962_v45 = vpop.permute.xlu0 %2961 }
0x487b   :  { %v2964_v53 = vmul.f32 %v4346_v21, %v2962_v45 }
0x487d   :  { %v2965_v25 = vpack.c.bf16 %v2964_v53, %v2964_v53 }
0x487f   :  { %2968 = vrot.lane.b32.xlu1 %v2965_v25, %s4420_s15 }
0x48f1   :  { %v2969_v56 = vpop.permute.xlu1 %2968 }
0x48f2   :  { %4062 = vmatmul.mubr.msk.bf16.vlgmr.msra.gmra.mxu0 %vm220_vm1, %v2969_v56 }
0x48f3   :  { %4074 = vmatpush3.bf16.msra.mxu0 %v4933_v24  ;;  %4077 = vmatprep.mubr.msk.bf16.mxu0 %vm4417_vm0, %v4416_v1 }
0x48f4   :  { %4075 = vmatprep.subr.bf16.mxu0 %v4416_v1 }
0x48f7   :  { %4076 = vmatpush3.bf16.msra.mxu0 %v4941_v29 }
0x48f8   :  { %4089 = vmatprep.subr.mxu0 %v4416_v1 }
0x49b2   :  { %v3007_v57 = vpop.f32.mrf.mxu0 }
0x49b3   :  { %v3013_v59 = vadd.f32 %v3007_v57, %v1729_v22 }
0x49b4   :  { %v4063_v60 = vpop.f32.mrf.mxu0 }
0x49b5   :  { %4349 = vtanh.f32 %v3013_v59  ;;  %v3540_v24 = vmul.f32 -1.442695, %v3013_v59 }
0x49b6   :  { %v3010_v61 = vpop.f32.mrf.mxu0 }
0x49b7   :  { %4351 = vpow2.f32 %v3540_v24  ;;  %v2074_v61 = vadd.f32 %v4393_v43, %v4995_v54 }
0x49b8   :  { %v4064_v40 = vpop.f32.mrf.mxu0 }
0x49c2   :  { %v4350_v28 = vpop.eup %4349 }
0x49c3   :  { %3023 = vrot.lane.b32.xlu0 %v4350_v28, %s4419_s27 }
0x49c4   :  { %v4352_v62 = vpop.eup %4351 }
0x49c5   :  { %v3017_v63 = vadd.f32 1.0, %v4352_v62 }
0x49c7   :  { %4353 = vrcp.f32 %v3017_v63 }
0x49d4   :  { %v4354_v29 = vpop.eup %4353 }
0x49d5   :  { %v3021_v14 = vmul.f32 %v4354_v29, %v2958_v52 }
0x4a35   :  { %v3024_v5 = vpop.permute.xlu0 %3023 }
0x4a36   :  { %v3026_v9 = vmul.f32 %v4354_v29, %v3024_v5 }
0x4a38   :  { %3028 = vrot.lane.b32.xlu1 %v3026_v9, %s4419_s27 }
0x4aaa   :  { %v3029_v10 = vpop.permute.xlu1 %3028 }
0x4aab   :  { %v3031_v11 = vadd.f32 %v3029_v10, %v3021_v14 }
0x4aad   :  { %4355 = vtanh.f32 %v3031_v11 }
0x4aba   :  { %v4356_v37 = vpop.eup %4355 }
0x4abb   :  { %3034 = vrot.lane.b32.xlu0 %v4356_v37, %s4419_s27 }
0x4b2d   :  { %v3035_v13 = vpop.permute.xlu0 %3034 }
0x4b2e   :  { %v3037_v16 = vmul.f32 %v4354_v29, %v3035_v13 }
0x4b30   :  { %v3038_v17 = vpack.c.bf16 %v3037_v16, %v3037_v16 }
0x4b32   :  { %3041 = vrot.lane.b32.xlu1 %v3038_v17, %s4420_s15  ;;  %v3262_v17 = vld [vmem:[%s5233_s7 + $0x18] sm:$0xff] }
0x4ba4   :  { %v3042_v19 = vpop.permute.xlu1 %3041 }
0x4ba5   :  { %4070 = vmatmul.mubr.msk.bf16.vlgmr.msra.gmra.mxu1 %vm220_vm1, %v3042_v19  ;;  %v3261_v19 = vld [vmem:[%s5233_s7 + $0x10] sm:$0xff] }
0x4ba6   :  { %4082 = vmatpush3.bf16.msra.mxu1 %v4391_v18  ;;  %4085 = vmatprep.mubr.msk.bf16.mxu1 %vm4417_vm0, %v4416_v1  ;;  %v3260_v18 = vld [vmem:[%s5233_s7 + $0x8] sm:$0xff] }
0x4ba7   :  { %4083 = vmatprep.subr.bf16.mxu1 %v4416_v1 }
0x4baa   :  { %4084 = vmatpush3.bf16.msra.mxu1 %v4392_v20  ;;  %v3259_v20 = vld [vmem:[%s5233_s7] sm:$0xff] }
0x4bab   :  { %4100 = vmatprep.subr.mxu1 %v4416_v1 }
0x4c65   :  { %v3080_v23 = vpop.f32.mrf.mxu1 }
0x4c66   :  { %v3086_v27 = vadd.f32 %v3080_v23, %v1844_v15  ;;  %v3349_v23 = vld [vmem:[%s5235_s9 + $0x18] sm:$0xff] }
0x4c67   :  { %v4071_v34 = vpop.f32.mrf.mxu1 }
0x4c68   :  { %4357 = vtanh.f32 %v3086_v27  ;;  %v3542_v58 = vmul.f32 -1.442695, %v3086_v27  ;;  %v3348_v27 = vld [vmem:[%s5235_s9 + $0x10] sm:$0xff] }
0x4c69   :  { %v3083_v30 = vpop.f32.mrf.mxu1 }
0x4c6a   :  { %4359 = vpow2.f32 %v3542_v58 }
0x4c6b   :  { %v4072_v32 = vpop.f32.mrf.mxu1 }
0x4c75   :  { %v4358_v4 = vpop.eup %4357 }
0x4c76   :  { %3096 = vrot.lane.b32.xlu0 %v4358_v4, %s4419_s27 }
0x4c77   :  { %v4360_v33 = vpop.eup %4359 }
0x4c78   :  { %v3090_v12 = vadd.f32 1.0, %v4360_v33  ;;  %v3347_v33 = vld [vmem:[%s5235_s9 + $0x8] sm:$0xff] }
0x4c7a   :  { %4361 = vrcp.f32 %v3090_v12  ;;  %v3346_v12 = vld [vmem:[%s5235_s9] sm:$0xff] }
0x4c87   :  { %v4362_v35 = vpop.eup %4361 }
0x4c88   :  { %v3094_v49 = vmul.f32 %v4362_v35, %v3031_v11 }
0x4ce8   :  { %v3097_v38 = vpop.permute.xlu0 %3096 }
0x4ce9   :  { %v3099_v41 = vmul.f32 %v4362_v35, %v3097_v38 }
0x4ceb   :  { %3101 = vrot.lane.b32.xlu1 %v3099_v41, %s4419_s27 }
0x4d5d   :  { %v3102_v26 = vpop.permute.xlu1 %3101 }
0x4d5e   :  { %v3104_v6 = vadd.f32 %v3102_v26, %v3094_v49 }
0x4d60   :  { %4363 = vtanh.f32 %v3104_v6 }
0x4d6d   :  { %v4364_v8 = vpop.eup %4363 }
0x4d6e   :  { %3107 = vrot.lane.b32.xlu0 %v4364_v8, %s4419_s27 }
0x4de0   :  { %v3108_v55 = vpop.permute.xlu0 %3107 }
0x4de1   :  { %v3110_v2 = vmul.f32 %v4362_v35, %v3108_v55  ;;  %v3547_v35 = vld [vmem:[%s5234_s8] ss:$0 sm:$0xff]  ;;  %s4421_s8 = smov [#allocation3]  }
0x4de2   :  { %s3452_s9 = sshll.u32 %s4421_s8, 4  ;;  %s3453_s9 = int_to_ptr.vmem [resolvable:$true] %s3452_s9 }
0x4de3   :  { %v3111_v7 = vpack.c.bf16 %v3110_v2, %v3110_v2  ;;  %p4399_p1 = scmp.lt.s32.totalorder %s3453_s9, %s3453_s9 }
0x4de5   :  { %3114 = vrot.lane.b32.xlu1 %v3111_v7, %s4420_s15 }
0x4e57   :  { %v3115_v42 = vpop.permute.xlu1 %3114 }
0x4e58   :  { %4078 = vmatmul.mubr.msk.bf16.vlgmr.msra.gmra.mxu0 %vm220_vm1, %v3115_v42 }
0x4e59   :  { %4097 = vmatprep.mubr.msk.f32.mxu0 %vm4417_vm0, %v4416_v1  ;;  %4090 = vmatpush3.msra.mxu0 %v3262_v17 }
0x4e5a   :  { %4091 = vmatprep.subr.mxu0 %v4416_v1 }
0x4e5b   :  { %4092 = vmatpush3.msra.mxu0 %v3261_v19 }
0x4e5c   :  { %4093 = vmatprep.subr.mxu0 %v4416_v1 }
0x4e5d   :  { %4094 = vmatpush3.msra.mxu0 %v3260_v18 }
0x4e5e   :  { %4095 = vmatprep.subr.mxu0 %v4416_v1 }
0x4e5f   :  { %4096 = vmatpush3.msra.mxu0 %v3259_v20 }
0x4f18   :  { %v3153_v44 = vpop.f32.mrf.mxu0 }
0x4f19   :  { %v3159_v46 = vadd.f32 %v3153_v44, %v1959_v51 }
0x4f1a   :  { %v4079_v47 = vpop.f32.mrf.mxu0 }
0x4f1b   :  { %4365 = vtanh.f32 %v3159_v46  ;;  %v3544_v0 = vmul.f32 -1.442695, %v3159_v46 }
0x4f1c   :  { %v3156_v3 = vpop.f32.mrf.mxu0 }
0x4f1d   :  { %4367 = vpow2.f32 %v3544_v0 }
0x4f1e   :  { %v4080_v21 = vpop.f32.mrf.mxu0 }
0x4f28   :  { %v4366_v48 = vpop.eup %4365 }
0x4f29   :  { %3169 = vrot.lane.b32.xlu0 %v4366_v48, %s4419_s27 }
0x4f2a   :  { %v4368_v39 = vpop.eup %4367 }
0x4f2b   :  { %v3163_v50 = vadd.f32 1.0, %v4368_v39 }
0x4f2d   :  { %4369 = vrcp.f32 %v3163_v50 }
0x4f3a   :  { %v4370_v52 = vpop.eup %4369 }
0x4f3b   :  { %v3167_v31 = vmul.f32 %v4370_v52, %v3104_v6  ;;  %v3549_v6 = vld [vmem:[%s5236_s10] ss:$0 sm:$0xff]  ;;  %s4394_s10 = scalar_lea.vmem %s3453_s9, 128 }
0x4f3c   :  { %p4395_p0 = scmp.ne.s32.totalorder %s3453_s9, %s4394_s10  ;;  %p4400_p2 = scmp.lt.s32.totalorder %s4394_s10, %s4394_s10 }
0x4f3e   :  { %p4401_p3 = por %p4400_p2, %p4399_p1 }
0x4f40   :  { %p4402_p4 = pnand %p4401_p3, %p4395_p0 }
0x4f9b   :  { %v3170_v36 = vpop.permute.xlu0 %3169 }
0x4f9c   :  { %v3172_v45 = vmul.f32 %v4370_v52, %v3170_v36 }
0x4f9e   :  { %3174 = vrot.lane.b32.xlu1 %v3172_v45, %s4419_s27 }
0x5010   :  { %v3175_v53 = vpop.permute.xlu1 %3174 }
0x5011   :  { %v3177_v25 = vadd.f32 %v3175_v53, %v3167_v31 }
0x5013   :  { %4371 = vtanh.f32 %v3177_v25 }
0x5020   :  { %v4372_v56 = vpop.eup %4371 }
0x5021   :  { %3180 = vrot.lane.b32.xlu0 %v4372_v56, %s4419_s27 }
0x5093   :  { %v3181_v22 = vpop.permute.xlu0 %3180 }
0x5094   :  { %v3183_v57 = vmul.f32 %v4370_v52, %v3181_v22 }
0x5096   :  { %v3184_v59 = vpack.c.bf16 %v3183_v57, %v3183_v57 }
0x5098   :  { %3187 = vrot.lane.b32.xlu1 %v3184_v59, %s4420_s15 }
0x510a   :  { %v3188_v60 = vpop.permute.xlu1 %3187 }
0x510b   :  { %4086 = vmatmul.mubr.msk.bf16.vlgmr.msra.gmra.mxu1 %vm220_vm1, %v3188_v60 }
0x510c   :  { %4108 = vmatprep.mubr.msk.f32.mxu1 %vm4417_vm0, %v4416_v1  ;;  %4101 = vmatpush3.msra.mxu1 %v3349_v23 }
0x510d   :  { %4102 = vmatprep.subr.mxu1 %v4416_v1 }
0x510e   :  { %4103 = vmatpush3.msra.mxu1 %v3348_v27 }
0x510f   :  { %4104 = vmatprep.subr.mxu1 %v4416_v1 }
0x5110   :  { %4105 = vmatpush3.msra.mxu1 %v3347_v33 }
0x5111   :  { %4106 = vmatprep.subr.mxu1 %v4416_v1 }
0x5112   :  { %4107 = vmatpush3.msra.mxu1 %v3346_v12 }
0x51cb   :  { %v3226_v40 = vpop.f32.mrf.mxu1 }
0x51cc   :  { %v3232_v28 = vadd.f32 %v3226_v40, %v2074_v61 }
0x51cd   :  { %v4087_v24 = vpop.f32.mrf.mxu1 }
0x51ce   :  { %4373 = vtanh.f32 %v3232_v28  ;;  %v3546_v5 = vmul.f32 -1.442695, %v3232_v28 }
0x51cf   :  { %v3229_v62 = vpop.f32.mrf.mxu1 }
0x51d0   :  { %4375 = vpow2.f32 %v3546_v5 }
0x51d1   :  { %v4088_v63 = vpop.f32.mrf.mxu1 }
0x51db   :  { %v4374_v29 = vpop.eup %4373 }
0x51dc   :  { %3242 = vrot.lane.b32.xlu0 %v4374_v29, %s4419_s27 }
0x51dd   :  { %v4376_v9 = vpop.eup %4375 }
0x51de   :  { %v3236_v14 = vadd.f32 1.0, %v4376_v9 }
0x51e0   :  { %4377 = vrcp.f32 %v3236_v14 }
0x51ed   :  { %v4378_v10 = vpop.eup %4377 }
0x51ee   :  { %v3240_v54 = vmul.f32 %v4378_v10, %v3177_v25 }
0x524e   :  { %v3243_v11 = vpop.permute.xlu0 %3242 }
0x524f   :  { %v3245_v37 = vmul.f32 %v4378_v10, %v3243_v11 }
0x5251   :  { %3247 = vrot.lane.b32.xlu1 %v3245_v37, %s4419_s27 }
0x52c3   :  { %v3248_v13 = vpop.permute.xlu1 %3247 }
0x52c4   :  { %v3250_v16 = vadd.f32 %v3248_v13, %v3240_v54 }
0x52c6   :  { %4379 = vtanh.f32 %v3250_v16 }
0x52d3   :  { %v4380_v15 = vpop.eup %4379 }
0x52d4   :  { %3253 = vrot.lane.b32.xlu0 %v4380_v15, %s4419_s27 }
0x5346   :  { %v3254_v34 = vpop.permute.xlu0 %3253 }
0x5347   :  { %v3256_v30 = vmul.f32 %v4378_v10, %v3254_v34 }
0x5349   :  { %v3257_v32 = vpack.c.bf16 %v3256_v30, %v3256_v30 }
0x534b   :  { %v3258_v4 = vunpack.c.l.bf16 %v3257_v32 }
0x534d   :  { %3271 = vrot.lane.b32.xlu1 %v3258_v4, %s4420_s15 }
0x53bf   :  { %v3272_v58 = vpop.permute.xlu1 %3271 }
0x53c0   :  { %4098 = vmatmul.mubr.msk.f32.vlgmr.msra.gmra.mxu0 %vm220_vm1, %v3272_v58 }
0x5480   :  { %v3341_v38 = vpop.f32.mrf.mxu0 }
0x5481   :  { %v3342_v41 = vadd.f32 %v3547_v35, %v3341_v38 }
0x5482   :  { %v4099_v49 = vpop.f32.mrf.mxu0 }
0x5483   :  { %v3345_v26 = vmax.f32 %v3342_v41, 0.0 }
0x5485   :  { %4109 = vmatmul.mubr.msk.f32.vlgmr.msra.gmra.mxu1 %vm220_vm1, %v3345_v26 }
0x5545   :  { %v3426_v1 = vpop.f32.mrf.mxu1 }
0x5546   :  { %v3427_v8 = vadd.f32 %v3549_v6, %v3426_v1 }
0x5547   :  { %v4110_v55 = vpop.f32.mrf.mxu1 }
0x5548   :  { %v3430_v2 = vmax.f32 %v3427_v8, 0.0 }
0x554a   :  { %v3432_v7 = vsel %vm3431_vm2, %v3430_v2, -inf }
0x554b   :  { %3433 = vmax.xlane.f32.xlu0 %v3432_v7 }
0x55d4   :  { %v3434_v42 = vpop.xlane.xlu0 %3433 }
0x55d5   :  { %v3435_v43 = vsub.f32 %v3430_v2, %v3434_v42 }
0x55d7   :  { %v3436_v51 = vmul.f32 1.442695, %v3435_v43 }
0x55d9   :  { %4381 = vpow2.f32 %v3436_v51 }
0x55e6   :  { %v4382_v44 = vpop.eup %4381 }
0x55e7   :  { %v3438_v46 = vsel %vm3431_vm2, %v4382_v44, 0.0 }
0x55e8   :  { %3439 = vadd.xlane.f32.xlu1 %v3438_v46 }
0x5671   :  { %v3440_v47 = vpop.xlane.xlu1 %3439 }
0x5672   :  { %4383 = vlog2.f32 %v3440_v47 }
0x567f   :  { %v4384_v3 = vpop.eup %4383 }
0x5680   :  { %v3442_v21 = vmul.f32 0.6931472, %v4384_v3 }
0x5682   :  { %v3443_v48 = vadd.f32 %v3442_v21, %v3434_v42 }
0x5684   :  { %v3444_v0 = vsub.f32 %v3430_v2, %v3443_v48 }
0x5686   :  { %3445 = vst.msk [vmem:[#allocation3] sm:$0xff] %vm3431_vm2, %v3444_v0 }
0x5687   :  { %4405 = shalt.err (!%p4402_p4)
}
0x5688   :  { %3455 = dma.vmem_to_hbm [thread:$0]  %s3453_s9, 128, %s5237_s11, [#allocation4]  }
0x5689   :  { %4414 = dma.done.wait [#allocation4], 128  }
0x568a   :  { %4415 = vsyncadd [#allocation4], 4294967168 }
0x568b   :  { %3459 = vsyncpa [#allocation4], 1 }

</bundles_post_ra>
